<compile_context>
chip_gen: v6e
topology: v6e:2x2x1
jax: 0.10.0
libtpu: 0.0.40
codegen_flags: <defaults>
</compile_context>

<pallas_src>
import functools

import jax
import jax.numpy as jnp
from jax.experimental import pallas as pl
from jax.experimental.pallas import tpu as pltpu


# ----------------------------------------------------------------------------
# Fused kernel: num_layer LSTM layers + Linear head, single invocation.
# refs = [x, (w_ih_t, w_hh_t, bias) * num_layer, w_lin_t, b_lin, out, gx_sc]
# ----------------------------------------------------------------------------
def _fused_lstm_kernel(num_layer, seq, bp, hidden, hp, *refs):
    x_ref = refs[0]
    layer_refs = refs[1:1 + 3 * num_layer]
    wlin_ref = refs[1 + 3 * num_layer]
    blin_ref = refs[2 + 3 * num_layer]
    o_ref = refs[3 + 3 * num_layer]
    gx_sc = refs[4 + 3 * num_layer]          # (seq*bp, hp) gate pre-activations

    wih = lambda l: layer_refs[3 * l + 0]
    whh = lambda l: layer_refs[3 * l + 1]
    bias = lambda l: layer_refs[3 * l + 2]

    mxu_dtype = whh(0).dtype                 # f32 (exact) or bf16 (fast MXU)

    # Lanes < hidden hold the real state; hoisted once (no per-step broadcast).
    lane_mask = jax.lax.broadcasted_iota(jnp.int32, (bp, hp), 1) < hidden

    # Layer 0 input projection for the WHOLE sequence (independent of the
    # recurrence): one (seq*bp, in) x (in, 128) MXU matmul, bias folded in.
    gx_sc[...] = (
        jnp.dot(x_ref[...].astype(mxu_dtype), wih(0)[...],
                preferred_element_type=jnp.float32)
        + bias(0)[...]
    )

    for l in range(num_layer):
        last = (l == num_layer - 1)
        w_rec = whh(l)[...]                  # recurrent weight, (hp, hp)
        if last:
            w_next = wlin_ref[...]           # Linear head weight, (hp, op)
            b_next = blin_ref[...]
        else:
            w_next = wih(l + 1)[...]         # next layer's input projection
            b_next = bias(l + 1)[...]

        def step(t, carry, w_rec=w_rec, w_next=w_next, b_next=b_next, last=last):
            h_prev, c_prev = carry
            row = pl.multiple_of(t * bp, bp)
            gates = gx_sc[pl.ds(row, bp), :] + jnp.dot(
                h_prev.astype(mxu_dtype), w_rec,
                preferred_element_type=jnp.float32)
            # One sigmoid + one tanh over the full 128-lane vreg (EUP), then
            # align f/g/o blocks onto the state lanes [0,hidden) via XLU rolls.
            sg = jax.nn.sigmoid(gates)
            th = jnp.tanh(gates)
            i_g = sg                                            # lanes [0,h)
            f_g = pltpu.roll(sg, shift=hp - hidden, axis=1)     # f -> [0,h)
            g_g = pltpu.roll(th, shift=hp - 2 * hidden, axis=1) # g -> [0,h)
            o_g = pltpu.roll(sg, shift=hp - 3 * hidden, axis=1) # o -> [0,h)
            c_new = f_g * c_prev + i_g * g_g
            h_new = o_g * jnp.tanh(c_new)
            # Re-zero lanes >= hidden so downstream K=128 matmuls stay exact
            # (c's padded lanes stay bounded and never feed a matmul, so only
            # h needs the mask).
            h_new = jnp.where(lane_mask, h_new, 0.0)
            # Interleave the next layer's projection (or the Linear head) into
            # the recurrence: the MXU is otherwise idle during the gate math.
            proj = jnp.dot(h_new.astype(mxu_dtype), w_next,
                           preferred_element_type=jnp.float32) + b_next
            if last:
                o_ref[pl.ds(row, bp), :] = proj.astype(o_ref.dtype)
            else:
                # Row t of gx_sc was already consumed above -> safe to reuse.
                gx_sc[pl.ds(row, bp), :] = proj
            return h_new, c_new

        h0 = jnp.zeros((bp, hp), jnp.float32)
        c0 = jnp.zeros((bp, hp), jnp.float32)
        # Full unroll for short sequences (scheduler visibility); partial
        # unroll for long ones to bound instruction memory / vreg live ranges.
        jax.lax.fori_loop(0, seq, step, (h0, c0),
                          unroll=True if seq <= 32 else 4)


# ----------------------------------------------------------------------------
# Host-side padding helpers.  Gates are PACKED: columns [g*hidden,(g+1)*hidden)
# of the hp-wide tile hold gate g (order i,f,g,o).  Rows >= hidden (or input
# dim) and columns >= 4*hidden are zero, so padded lanes never contribute.
# ----------------------------------------------------------------------------
def pad_params(params, hidden, output, hp, op, mxu_dtype=jnp.float32):
    assert 4 * hidden <= hp, "gate packing needs 4*hidden <= 128"
    padded = {"lstm": [], "linear": {}}
    for l, lp in enumerate(params["lstm"]):
        in_dim = lp["w_ih"].shape[1]
        rows = in_dim if l == 0 else hp
        w_ih_t = jnp.zeros((rows, hp), mxu_dtype).at[:in_dim, :4 * hidden].set(
            lp["w_ih"].T.astype(mxu_dtype))
        w_hh_t = jnp.zeros((hp, hp), mxu_dtype).at[:hidden, :4 * hidden].set(
            lp["w_hh"].T.astype(mxu_dtype))
        b = jnp.zeros((1, hp), jnp.float32).at[0, :4 * hidden].set(
            lp["b_ih"] + lp["b_hh"])
        padded["lstm"].append({"w_ih_t": w_ih_t, "w_hh_t": w_hh_t, "bias": b})
    w_lin_t = jnp.zeros((hp, op), mxu_dtype).at[:hidden, :output].set(
        params["linear"]["w"].T.astype(mxu_dtype))
    b_lin = jnp.zeros((1, op), jnp.float32).at[0, :output].set(
        params["linear"]["b"])
    padded["linear"] = {"w_t": w_lin_t, "b": b_lin}
    return padded


def init_params(key, input_size, hidden_size, output_size, num_layer):
    """Same shapes / uniform init range as nn.LSTM / nn.Linear."""
    params = {"lstm": [], "linear": {}}
    k = hidden_size ** -0.5
    for layer in range(num_layer):
        in_f = input_size if layer == 0 else hidden_size
        key, k1, k2, k3, k4 = jax.random.split(key, 5)
        params["lstm"].append({
            "w_ih": jax.random.uniform(k1, (4 * hidden_size, in_f), jnp.float32, -k, k),
            "w_hh": jax.random.uniform(k2, (4 * hidden_size, hidden_size), jnp.float32, -k, k),
            "b_ih": jax.random.uniform(k3, (4 * hidden_size,), jnp.float32, -k, k),
            "b_hh": jax.random.uniform(k4, (4 * hidden_size,), jnp.float32, -k, k),
        })
    key, k5, k6 = jax.random.split(key, 3)
    params["linear"] = {
        "w": jax.random.uniform(k5, (output_size, hidden_size), jnp.float32, -k, k),
        "b": jax.random.uniform(k6, (output_size,), jnp.float32, -k, k),
    }
    return params


# ----------------------------------------------------------------------------
# Forward pass wrapper: pad, single pallas_call, unpad.
# ----------------------------------------------------------------------------
def lstm_forward(x, padded, *, hidden_size, output_size, hp=128, op=128, bp=8):
    seq, batch, in_f = x.shape
    num_layer = len(padded["lstm"])

    x_pad = jnp.zeros((seq, bp, in_f), x.dtype).at[:, :batch, :].set(x)
    x_flat = x_pad.reshape(seq * bp, in_f)

    kernel = functools.partial(_fused_lstm_kernel, num_layer, seq, bp,
                               hidden_size, hp)

    in_specs = [pl.BlockSpec((seq * bp, in_f), lambda i: (0, 0))]
    operands = [x_flat]
    for l in range(num_layer):
        fin = in_f if l == 0 else hp
        lp = padded["lstm"][l]
        in_specs += [
            pl.BlockSpec((fin, hp), lambda i: (0, 0)),
            pl.BlockSpec((hp, hp), lambda i: (0, 0)),
            pl.BlockSpec((1, hp), lambda i: (0, 0)),
        ]
        operands += [lp["w_ih_t"], lp["w_hh_t"], lp["bias"]]
    in_specs += [
        pl.BlockSpec((hp, op), lambda i: (0, 0)),
        pl.BlockSpec((1, op), lambda i: (0, 0)),
    ]
    operands += [padded["linear"]["w_t"], padded["linear"]["b"]]

    out_flat = pl.pallas_call(
        kernel,
        out_shape=jax.ShapeDtypeStruct((seq * bp, op), jnp.float32),
        grid_spec=pltpu.PrefetchScalarGridSpec(
            num_scalar_prefetch=0,
            grid=(1,),
            in_specs=in_specs,
            out_specs=pl.BlockSpec((seq * bp, op), lambda i: (0, 0)),
            scratch_shapes=[
                pltpu.VMEM((seq * bp, hp), jnp.float32),  # packed gate pre-acts
            ],
        ),
        compiler_params=pltpu.CompilerParams(
            dimension_semantics=("arbitrary",),
        ),
    )(*operands)

    return out_flat.reshape(seq, bp, op)[:, :batch, :output_size]


# ----------------------------------------------------------------------------
# Pure-JAX reference (mirrors PyTorch nn.LSTM + nn.Linear forward).
# ----------------------------------------------------------------------------
def lstm_reference(params, x):
    h = x
    for lp in params["lstm"]:
        w_ih, w_hh = lp["w_ih"], lp["w_hh"]
        b = lp["b_ih"] + lp["b_hh"]
        hidden = w_hh.shape[1]

        def cell(carry, x_t, w_ih=w_ih, w_hh=w_hh, b=b):
            h_prev, c_prev = carry
            gates = x_t @ w_ih.T + h_prev @ w_hh.T + b
            i, f, g, o = jnp.split(gates, 4, axis=-1)
            i = jax.nn.sigmoid(i); f = jax.nn.sigmoid(f)
            g = jnp.tanh(g); o = jax.nn.sigmoid(o)
            c = f * c_prev + i * g
            hh = o * jnp.tanh(c)
            return (hh, c), hh

        init = (jnp.zeros((h.shape[1], hidden), jnp.float32),
                jnp.zeros((h.shape[1], hidden), jnp.float32))
        _, h = jax.lax.scan(cell, init, h)
    s, b_, hd = h.shape
    y = h.reshape(s * b_, hd) @ params["linear"]["w"].T + params["linear"]["b"]
    return y.reshape(s, b_, -1)


if __name__ == "__main__":
    SEQ, BATCH = 8, 4
    INPUT_SIZE, HIDDEN_SIZE, OUTPUT_SIZE, NUM_LAYER = 16, 32, 8, 2
    HP, OP, BP = 128, 128, 8

    key = jax.random.PRNGKey(0)
    key, xkey = jax.random.split(key)
    x = jax.random.normal(xkey, (SEQ, BATCH, INPUT_SIZE), dtype=jnp.float32)

    params = init_params(key, INPUT_SIZE, HIDDEN_SIZE, OUTPUT_SIZE, NUM_LAYER)
    ref = lstm_reference(params, x)

    fwd = jax.jit(functools.partial(lstm_forward, hidden_size=HIDDEN_SIZE,
                                    output_size=OUTPUT_SIZE, hp=HP, op=OP, bp=BP))

    # 1) f32 MXU path — matches PyTorch f32 forward semantics.
    padded_f32 = pad_params(params, HIDDEN_SIZE, OUTPUT_SIZE, HP, OP, jnp.float32)
    out_f32 = fwd(x, padded_f32)
    jax.block_until_ready(out_f32)
    assert out_f32.shape == (SEQ, BATCH, OUTPUT_SIZE)
    err_f32 = float(jnp.max(jnp.abs(out_f32 - ref)))
    assert err_f32 < 2e-3, f"f32 mismatch vs reference: {err_f32}"

    # 2) bf16 MXU-input path (f32 accumulate/state) — faster MXU on v6e/v7x,
    #    no longer bit-exact vs f32, so checked at a looser tolerance.
    padded_bf16 = pad_params(params, HIDDEN_SIZE, OUTPUT_SIZE, HP, OP, jnp.bfloat16)
    out_bf16 = fwd(x, padded_bf16)
    jax.block_until_ready(out_bf16)
    err_bf16 = float(jnp.max(jnp.abs(out_bf16 - ref)))
    assert err_bf16 < 2e-2, f"bf16 mismatch vs reference: {err_bf16}"

    print("KERNEL_OK")
</pallas_src>

<mosaic_0001>
module attributes {stable_mosaic.version = 11 : i64} {
  func.func @_fused_lstm_kernel(%arg0: i32, %arg1: memref<64x16xf32, #tpu.memory_space<vmem>>, %arg2: memref<16x128xf32, #tpu.memory_space<vmem>>, %arg3: memref<128x128xf32, #tpu.memory_space<vmem>>, %arg4: memref<1x128xf32, #tpu.memory_space<vmem>>, %arg5: memref<128x128xf32, #tpu.memory_space<vmem>>, %arg6: memref<128x128xf32, #tpu.memory_space<vmem>>, %arg7: memref<1x128xf32, #tpu.memory_space<vmem>>, %arg8: memref<128x128xf32, #tpu.memory_space<vmem>>, %arg9: memref<1x128xf32, #tpu.memory_space<vmem>>, %arg10: memref<64x128xf32, #tpu.memory_space<vmem>>, %arg11: memref<64x128xf32, #tpu.memory_space<vmem>>) attributes {dimension_semantics = [#tpu.dimension_semantics<arbitrary>], iteration_bounds = array<i64: 1>, scalar_prefetch = 0 : i64, scratch_operands = 1 : i64, tpu.core_type = #tpu.core_type<tc>, window_params = [{pipeline_mode = #tpu.pipeline_mode<synchronous>, transform_indices = @transform_0, window_bounds = array<i64: 64, 16>}, {pipeline_mode = #tpu.pipeline_mode<synchronous>, transform_indices = @transform_1, window_bounds = array<i64: 16, 128>}, {pipeline_mode = #tpu.pipeline_mode<synchronous>, transform_indices = @transform_2, window_bounds = array<i64: 128, 128>}, {pipeline_mode = #tpu.pipeline_mode<synchronous>, transform_indices = @transform_3, window_bounds = array<i64: 1, 128>}, {pipeline_mode = #tpu.pipeline_mode<synchronous>, transform_indices = @transform_4, window_bounds = array<i64: 128, 128>}, {pipeline_mode = #tpu.pipeline_mode<synchronous>, transform_indices = @transform_5, window_bounds = array<i64: 128, 128>}, {pipeline_mode = #tpu.pipeline_mode<synchronous>, transform_indices = @transform_6, window_bounds = array<i64: 1, 128>}, {pipeline_mode = #tpu.pipeline_mode<synchronous>, transform_indices = @transform_7, window_bounds = array<i64: 128, 128>}, {pipeline_mode = #tpu.pipeline_mode<synchronous>, transform_indices = @transform_8, window_bounds = array<i64: 1, 128>}, {pipeline_mode = #tpu.pipeline_mode<synchronous>, transform_indices = @transform_9, window_bounds = array<i64: 64, 128>}]} {
    %0 = tpu.iota {dimensions = array<i32: 1>} : vector<8x128xi32>
    %c32_i32 = arith.constant 32 : i32
    %1 = vector.broadcast %c32_i32 : i32 to vector<8x128xi32>
    %2 = arith.cmpi slt, %0, %1 : vector<8x128xi32>
    %c0 = arith.constant 0 : index
    %c0_0 = arith.constant 0 : index
    %3 = vector.load %arg1[%c0, %c0_0] : memref<64x16xf32, #tpu.memory_space<vmem>>, vector<64x16xf32>
    %c0_1 = arith.constant 0 : index
    %c0_2 = arith.constant 0 : index
    %4 = vector.load %arg2[%c0_1, %c0_2] : memref<16x128xf32, #tpu.memory_space<vmem>>, vector<16x128xf32>
    %cst = arith.constant dense<0.000000e+00> : vector<64x128xf32>
    %5 = tpu.matmul %3, %4, %cst {dimension_numbers = #tpu.dot_dimension_numbers<[1], [0], [0], [1], [0, 0, 1, 1], [], []>} : vector<64x16xf32>, vector<16x128xf32>, vector<64x128xf32> -> vector<64x128xf32>
    %c0_3 = arith.constant 0 : index
    %c0_4 = arith.constant 0 : index
    %6 = vector.load %arg4[%c0_3, %c0_4] : memref<1x128xf32, #tpu.memory_space<vmem>>, vector<1x128xf32>
    %7 = vector.broadcast %6 : vector<1x128xf32> to vector<64x128xf32>
    %8 = arith.addf %5, %7 : vector<64x128xf32>
    %c0_5 = arith.constant 0 : index
    %c0_6 = arith.constant 0 : index
    %9 = vector.load %arg11[%c0_5, %c0_6] : memref<64x128xf32, #tpu.memory_space<vmem>>, vector<64x128xf32>
    tpu.vector_store %arg11[%c0_5, %c0_6], %8 {strides = array<i32>} : memref<64x128xf32, #tpu.memory_space<vmem>>, vector<64x128xf32>,
    %c0_7 = arith.constant 0 : index
    %c0_8 = arith.constant 0 : index
    %10 = vector.load %arg3[%c0_7, %c0_8] : memref<128x128xf32, #tpu.memory_space<vmem>>, vector<128x128xf32>
    %c0_9 = arith.constant 0 : index
    %c0_10 = arith.constant 0 : index
    %11 = vector.load %arg5[%c0_9, %c0_10] : memref<128x128xf32, #tpu.memory_space<vmem>>, vector<128x128xf32>
    %c0_11 = arith.constant 0 : index
    %c0_12 = arith.constant 0 : index
    %12 = vector.load %arg7[%c0_11, %c0_12] : memref<1x128xf32, #tpu.memory_space<vmem>>, vector<1x128xf32>
    %cst_13 = arith.constant 0.000000e+00 : f32
    %13 = vector.broadcast %cst_13 : f32 to vector<8x128xf32>
    %cst_14 = arith.constant 0.000000e+00 : f32
    %14 = vector.broadcast %cst_14 : f32 to vector<8x128xf32>
    %c0_i32 = arith.constant 0 : i32
    %c8_i32 = arith.constant 8 : i32
    %15 = arith.muli %c0_i32, %c8_i32 : i32
    %16 = tpu.assume_multiple %15, 8 : i32
    %17 = arith.index_cast %16 : i32 to index
    %c0_15 = arith.constant 0 : index
    %18 = vector.load %arg11[%17, %c0_15] : memref<64x128xf32, #tpu.memory_space<vmem>>, vector<8x128xf32>
    %cst_16 = arith.constant dense<0.000000e+00> : vector<8x128xf32>
    %19 = tpu.matmul %13, %10, %cst_16 {dimension_numbers = #tpu.dot_dimension_numbers<[1], [0], [0], [1], [0, 0, 1, 1], [], []>} : vector<8x128xf32>, vector<128x128xf32>, vector<8x128xf32> -> vector<8x128xf32>
    %20 = arith.addf %18, %19 : vector<8x128xf32>
    %21 = arith.negf %20 : vector<8x128xf32>
    %22 = math.exp %21 : vector<8x128xf32>
    %cst_17 = arith.constant 1.000000e+00 : f32
    %23 = vector.broadcast %cst_17 : f32 to vector<8x128xf32>
    %24 = arith.addf %23, %22 : vector<8x128xf32>
    %25 = arith.divf %23, %24 : vector<8x128xf32>
    %26 = math.tanh %20 : vector<8x128xf32>
    %c96_i32 = arith.constant 96 : i32
    %27 = tpu.dynamic_rotate %25 by %c96_i32 dim 1 : vector<8x128xf32>, i32 -> vector<8x128xf32>
    %c64_i32 = arith.constant 64 : i32
    %28 = tpu.dynamic_rotate %26 by %c64_i32 dim 1 : vector<8x128xf32>, i32 -> vector<8x128xf32>
    %c32_i32_18 = arith.constant 32 : i32
    %29 = tpu.dynamic_rotate %25 by %c32_i32_18 dim 1 : vector<8x128xf32>, i32 -> vector<8x128xf32>
    %30 = arith.mulf %27, %14 : vector<8x128xf32>
    %31 = arith.mulf %25, %28 : vector<8x128xf32>
    %32 = arith.addf %30, %31 : vector<8x128xf32>
    %33 = math.tanh %32 : vector<8x128xf32>
    %34 = arith.mulf %29, %33 : vector<8x128xf32>
    %cst_19 = arith.constant 0.000000e+00 : f32
    %35 = vector.broadcast %cst_19 : f32 to vector<8x128xf32>
    %36 = arith.select %2, %34, %35 : vector<8x128xi1>, vector<8x128xf32>
    %cst_20 = arith.constant dense<0.000000e+00> : vector<8x128xf32>
    %37 = tpu.matmul %36, %11, %cst_20 {dimension_numbers = #tpu.dot_dimension_numbers<[1], [0], [0], [1], [0, 0, 1, 1], [], []>} : vector<8x128xf32>, vector<128x128xf32>, vector<8x128xf32> -> vector<8x128xf32>
    %38 = vector.broadcast %12 : vector<1x128xf32> to vector<8x128xf32>
    %39 = arith.addf %37, %38 : vector<8x128xf32>
    %40 = arith.index_cast %16 : i32 to index
    %c0_21 = arith.constant 0 : index
    %41 = vector.load %arg11[%40, %c0_21] : memref<64x128xf32, #tpu.memory_space<vmem>>, vector<8x128xf32>
    tpu.vector_store %arg11[%40, %c0_21], %39 {strides = array<i32>} : memref<64x128xf32, #tpu.memory_space<vmem>>, vector<8x128xf32>,
    %c1_i32 = arith.constant 1 : i32
    %c8_i32_22 = arith.constant 8 : i32
    %42 = arith.muli %c1_i32, %c8_i32_22 : i32
    %43 = tpu.assume_multiple %42, 8 : i32
    %44 = arith.index_cast %43 : i32 to index
    %c0_23 = arith.constant 0 : index
    %45 = vector.load %arg11[%44, %c0_23] : memref<64x128xf32, #tpu.memory_space<vmem>>, vector<8x128xf32>
    %cst_24 = arith.constant dense<0.000000e+00> : vector<8x128xf32>
    %46 = tpu.matmul %36, %10, %cst_24 {dimension_numbers = #tpu.dot_dimension_numbers<[1], [0], [0], [1], [0, 0, 1, 1], [], []>} : vector<8x128xf32>, vector<128x128xf32>, vector<8x128xf32> -> vector<8x128xf32>
    %47 = arith.addf %45, %46 : vector<8x128xf32>
    %48 = arith.negf %47 : vector<8x128xf32>
    %49 = math.exp %48 : vector<8x128xf32>
    %cst_25 = arith.constant 1.000000e+00 : f32
    %50 = vector.broadcast %cst_25 : f32 to vector<8x128xf32>
    %51 = arith.addf %50, %49 : vector<8x128xf32>
    %52 = arith.divf %50, %51 : vector<8x128xf32>
    %53 = math.tanh %47 : vector<8x128xf32>
    %c96_i32_26 = arith.constant 96 : i32
    %54 = tpu.dynamic_rotate %52 by %c96_i32_26 dim 1 : vector<8x128xf32>, i32 -> vector<8x128xf32>
    %c64_i32_27 = arith.constant 64 : i32
    %55 = tpu.dynamic_rotate %53 by %c64_i32_27 dim 1 : vector<8x128xf32>, i32 -> vector<8x128xf32>
    %c32_i32_28 = arith.constant 32 : i32
    %56 = tpu.dynamic_rotate %52 by %c32_i32_28 dim 1 : vector<8x128xf32>, i32 -> vector<8x128xf32>
    %57 = arith.mulf %54, %32 : vector<8x128xf32>
    %58 = arith.mulf %52, %55 : vector<8x128xf32>
    %59 = arith.addf %57, %58 : vector<8x128xf32>
    %60 = math.tanh %59 : vector<8x128xf32>
    %61 = arith.mulf %56, %60 : vector<8x128xf32>
    %cst_29 = arith.constant 0.000000e+00 : f32
    %62 = vector.broadcast %cst_29 : f32 to vector<8x128xf32>
    %63 = arith.select %2, %61, %62 : vector<8x128xi1>, vector<8x128xf32>
    %cst_30 = arith.constant dense<0.000000e+00> : vector<8x128xf32>
    %64 = tpu.matmul %63, %11, %cst_30 {dimension_numbers = #tpu.dot_dimension_numbers<[1], [0], [0], [1], [0, 0, 1, 1], [], []>} : vector<8x128xf32>, vector<128x128xf32>, vector<8x128xf32> -> vector<8x128xf32>
    %65 = vector.broadcast %12 : vector<1x128xf32> to vector<8x128xf32>
    %66 = arith.addf %64, %65 : vector<8x128xf32>
    %67 = arith.index_cast %43 : i32 to index
    %c0_31 = arith.constant 0 : index
    %68 = vector.load %arg11[%67, %c0_31] : memref<64x128xf32, #tpu.memory_space<vmem>>, vector<8x128xf32>
    tpu.vector_store %arg11[%67, %c0_31], %66 {strides = array<i32>} : memref<64x128xf32, #tpu.memory_space<vmem>>, vector<8x128xf32>,
    %c2_i32 = arith.constant 2 : i32
    %c8_i32_32 = arith.constant 8 : i32
    %69 = arith.muli %c2_i32, %c8_i32_32 : i32
    %70 = tpu.assume_multiple %69, 8 : i32
    %71 = arith.index_cast %70 : i32 to index
    %c0_33 = arith.constant 0 : index
    %72 = vector.load %arg11[%71, %c0_33] : memref<64x128xf32, #tpu.memory_space<vmem>>, vector<8x128xf32>
    %cst_34 = arith.constant dense<0.000000e+00> : vector<8x128xf32>
    %73 = tpu.matmul %63, %10, %cst_34 {dimension_numbers = #tpu.dot_dimension_numbers<[1], [0], [0], [1], [0, 0, 1, 1], [], []>} : vector<8x128xf32>, vector<128x128xf32>, vector<8x128xf32> -> vector<8x128xf32>
    %74 = arith.addf %72, %73 : vector<8x128xf32>
    %75 = arith.negf %74 : vector<8x128xf32>
    %76 = math.exp %75 : vector<8x128xf32>
    %cst_35 = arith.constant 1.000000e+00 : f32
    %77 = vector.broadcast %cst_35 : f32 to vector<8x128xf32>
    %78 = arith.addf %77, %76 : vector<8x128xf32>
    %79 = arith.divf %77, %78 : vector<8x128xf32>
    %80 = math.tanh %74 : vector<8x128xf32>
    %c96_i32_36 = arith.constant 96 : i32
    %81 = tpu.dynamic_rotate %79 by %c96_i32_36 dim 1 : vector<8x128xf32>, i32 -> vector<8x128xf32>
    %c64_i32_37 = arith.constant 64 : i32
    %82 = tpu.dynamic_rotate %80 by %c64_i32_37 dim 1 : vector<8x128xf32>, i32 -> vector<8x128xf32>
    %c32_i32_38 = arith.constant 32 : i32
    %83 = tpu.dynamic_rotate %79 by %c32_i32_38 dim 1 : vector<8x128xf32>, i32 -> vector<8x128xf32>
    %84 = arith.mulf %81, %59 : vector<8x128xf32>
    %85 = arith.mulf %79, %82 : vector<8x128xf32>
    %86 = arith.addf %84, %85 : vector<8x128xf32>
    %87 = math.tanh %86 : vector<8x128xf32>
    %88 = arith.mulf %83, %87 : vector<8x128xf32>
    %cst_39 = arith.constant 0.000000e+00 : f32
    %89 = vector.broadcast %cst_39 : f32 to vector<8x128xf32>
    %90 = arith.select %2, %88, %89 : vector<8x128xi1>, vector<8x128xf32>
    %cst_40 = arith.constant dense<0.000000e+00> : vector<8x128xf32>
    %91 = tpu.matmul %90, %11, %cst_40 {dimension_numbers = #tpu.dot_dimension_numbers<[1], [0], [0], [1], [0, 0, 1, 1], [], []>} : vector<8x128xf32>, vector<128x128xf32>, vector<8x128xf32> -> vector<8x128xf32>
    %92 = vector.broadcast %12 : vector<1x128xf32> to vector<8x128xf32>
    %93 = arith.addf %91, %92 : vector<8x128xf32>
    %94 = arith.index_cast %70 : i32 to index
    %c0_41 = arith.constant 0 : index
    %95 = vector.load %arg11[%94, %c0_41] : memref<64x128xf32, #tpu.memory_space<vmem>>, vector<8x128xf32>
    tpu.vector_store %arg11[%94, %c0_41], %93 {strides = array<i32>} : memref<64x128xf32, #tpu.memory_space<vmem>>, vector<8x128xf32>,
    %c3_i32 = arith.constant 3 : i32
    %c8_i32_42 = arith.constant 8 : i32
    %96 = arith.muli %c3_i32, %c8_i32_42 : i32
    %97 = tpu.assume_multiple %96, 8 : i32
    %98 = arith.index_cast %97 : i32 to index
    %c0_43 = arith.constant 0 : index
    %99 = vector.load %arg11[%98, %c0_43] : memref<64x128xf32, #tpu.memory_space<vmem>>, vector<8x128xf32>
    %cst_44 = arith.constant dense<0.000000e+00> : vector<8x128xf32>
    %100 = tpu.matmul %90, %10, %cst_44 {dimension_numbers = #tpu.dot_dimension_numbers<[1], [0], [0], [1], [0, 0, 1, 1], [], []>} : vector<8x128xf32>, vector<128x128xf32>, vector<8x128xf32> -> vector<8x128xf32>
    %101 = arith.addf %99, %100 : vector<8x128xf32>
    %102 = arith.negf %101 : vector<8x128xf32>
    %103 = math.exp %102 : vector<8x128xf32>
    %cst_45 = arith.constant 1.000000e+00 : f32
    %104 = vector.broadcast %cst_45 : f32 to vector<8x128xf32>
    %105 = arith.addf %104, %103 : vector<8x128xf32>
    %106 = arith.divf %104, %105 : vector<8x128xf32>
    %107 = math.tanh %101 : vector<8x128xf32>
    %c96_i32_46 = arith.constant 96 : i32
    %108 = tpu.dynamic_rotate %106 by %c96_i32_46 dim 1 : vector<8x128xf32>, i32 -> vector<8x128xf32>
    %c64_i32_47 = arith.constant 64 : i32
    %109 = tpu.dynamic_rotate %107 by %c64_i32_47 dim 1 : vector<8x128xf32>, i32 -> vector<8x128xf32>
    %c32_i32_48 = arith.constant 32 : i32
    %110 = tpu.dynamic_rotate %106 by %c32_i32_48 dim 1 : vector<8x128xf32>, i32 -> vector<8x128xf32>
    %111 = arith.mulf %108, %86 : vector<8x128xf32>
    %112 = arith.mulf %106, %109 : vector<8x128xf32>
    %113 = arith.addf %111, %112 : vector<8x128xf32>
    %114 = math.tanh %113 : vector<8x128xf32>
    %115 = arith.mulf %110, %114 : vector<8x128xf32>
    %cst_49 = arith.constant 0.000000e+00 : f32
    %116 = vector.broadcast %cst_49 : f32 to vector<8x128xf32>
    %117 = arith.select %2, %115, %116 : vector<8x128xi1>, vector<8x128xf32>
    %cst_50 = arith.constant dense<0.000000e+00> : vector<8x128xf32>
    %118 = tpu.matmul %117, %11, %cst_50 {dimension_numbers = #tpu.dot_dimension_numbers<[1], [0], [0], [1], [0, 0, 1, 1], [], []>} : vector<8x128xf32>, vector<128x128xf32>, vector<8x128xf32> -> vector<8x128xf32>
    %119 = vector.broadcast %12 : vector<1x128xf32> to vector<8x128xf32>
    %120 = arith.addf %118, %119 : vector<8x128xf32>
    %121 = arith.index_cast %97 : i32 to index
    %c0_51 = arith.constant 0 : index
    %122 = vector.load %arg11[%121, %c0_51] : memref<64x128xf32, #tpu.memory_space<vmem>>, vector<8x128xf32>
    tpu.vector_store %arg11[%121, %c0_51], %120 {strides = array<i32>} : memref<64x128xf32, #tpu.memory_space<vmem>>, vector<8x128xf32>,
    %c4_i32 = arith.constant 4 : i32
    %c8_i32_52 = arith.constant 8 : i32
    %123 = arith.muli %c4_i32, %c8_i32_52 : i32
    %124 = tpu.assume_multiple %123, 8 : i32
    %125 = arith.index_cast %124 : i32 to index
    %c0_53 = arith.constant 0 : index
    %126 = vector.load %arg11[%125, %c0_53] : memref<64x128xf32, #tpu.memory_space<vmem>>, vector<8x128xf32>
    %cst_54 = arith.constant dense<0.000000e+00> : vector<8x128xf32>
    %127 = tpu.matmul %117, %10, %cst_54 {dimension_numbers = #tpu.dot_dimension_numbers<[1], [0], [0], [1], [0, 0, 1, 1], [], []>} : vector<8x128xf32>, vector<128x128xf32>, vector<8x128xf32> -> vector<8x128xf32>
    %128 = arith.addf %126, %127 : vector<8x128xf32>
    %129 = arith.negf %128 : vector<8x128xf32>
    %130 = math.exp %129 : vector<8x128xf32>
    %cst_55 = arith.constant 1.000000e+00 : f32
    %131 = vector.broadcast %cst_55 : f32 to vector<8x128xf32>
    %132 = arith.addf %131, %130 : vector<8x128xf32>
    %133 = arith.divf %131, %132 : vector<8x128xf32>
    %134 = math.tanh %128 : vector<8x128xf32>
    %c96_i32_56 = arith.constant 96 : i32
    %135 = tpu.dynamic_rotate %133 by %c96_i32_56 dim 1 : vector<8x128xf32>, i32 -> vector<8x128xf32>
    %c64_i32_57 = arith.constant 64 : i32
    %136 = tpu.dynamic_rotate %134 by %c64_i32_57 dim 1 : vector<8x128xf32>, i32 -> vector<8x128xf32>
    %c32_i32_58 = arith.constant 32 : i32
    %137 = tpu.dynamic_rotate %133 by %c32_i32_58 dim 1 : vector<8x128xf32>, i32 -> vector<8x128xf32>
    %138 = arith.mulf %135, %113 : vector<8x128xf32>
    %139 = arith.mulf %133, %136 : vector<8x128xf32>
    %140 = arith.addf %138, %139 : vector<8x128xf32>
    %141 = math.tanh %140 : vector<8x128xf32>
    %142 = arith.mulf %137, %141 : vector<8x128xf32>
    %cst_59 = arith.constant 0.000000e+00 : f32
    %143 = vector.broadcast %cst_59 : f32 to vector<8x128xf32>
    %144 = arith.select %2, %142, %143 : vector<8x128xi1>, vector<8x128xf32>
    %cst_60 = arith.constant dense<0.000000e+00> : vector<8x128xf32>
    %145 = tpu.matmul %144, %11, %cst_60 {dimension_numbers = #tpu.dot_dimension_numbers<[1], [0], [0], [1], [0, 0, 1, 1], [], []>} : vector<8x128xf32>, vector<128x128xf32>, vector<8x128xf32> -> vector<8x128xf32>
    %146 = vector.broadcast %12 : vector<1x128xf32> to vector<8x128xf32>
    %147 = arith.addf %145, %146 : vector<8x128xf32>
    %148 = arith.index_cast %124 : i32 to index
    %c0_61 = arith.constant 0 : index
    %149 = vector.load %arg11[%148, %c0_61] : memref<64x128xf32, #tpu.memory_space<vmem>>, vector<8x128xf32>
    tpu.vector_store %arg11[%148, %c0_61], %147 {strides = array<i32>} : memref<64x128xf32, #tpu.memory_space<vmem>>, vector<8x128xf32>,
    %c5_i32 = arith.constant 5 : i32
    %c8_i32_62 = arith.constant 8 : i32
    %150 = arith.muli %c5_i32, %c8_i32_62 : i32
    %151 = tpu.assume_multiple %150, 8 : i32
    %152 = arith.index_cast %151 : i32 to index
    %c0_63 = arith.constant 0 : index
    %153 = vector.load %arg11[%152, %c0_63] : memref<64x128xf32, #tpu.memory_space<vmem>>, vector<8x128xf32>
    %cst_64 = arith.constant dense<0.000000e+00> : vector<8x128xf32>
    %154 = tpu.matmul %144, %10, %cst_64 {dimension_numbers = #tpu.dot_dimension_numbers<[1], [0], [0], [1], [0, 0, 1, 1], [], []>} : vector<8x128xf32>, vector<128x128xf32>, vector<8x128xf32> -> vector<8x128xf32>
    %155 = arith.addf %153, %154 : vector<8x128xf32>
    %156 = arith.negf %155 : vector<8x128xf32>
    %157 = math.exp %156 : vector<8x128xf32>
    %cst_65 = arith.constant 1.000000e+00 : f32
    %158 = vector.broadcast %cst_65 : f32 to vector<8x128xf32>
    %159 = arith.addf %158, %157 : vector<8x128xf32>
    %160 = arith.divf %158, %159 : vector<8x128xf32>
    %161 = math.tanh %155 : vector<8x128xf32>
    %c96_i32_66 = arith.constant 96 : i32
    %162 = tpu.dynamic_rotate %160 by %c96_i32_66 dim 1 : vector<8x128xf32>, i32 -> vector<8x128xf32>
    %c64_i32_67 = arith.constant 64 : i32
    %163 = tpu.dynamic_rotate %161 by %c64_i32_67 dim 1 : vector<8x128xf32>, i32 -> vector<8x128xf32>
    %c32_i32_68 = arith.constant 32 : i32
    %164 = tpu.dynamic_rotate %160 by %c32_i32_68 dim 1 : vector<8x128xf32>, i32 -> vector<8x128xf32>
    %165 = arith.mulf %162, %140 : vector<8x128xf32>
    %166 = arith.mulf %160, %163 : vector<8x128xf32>
    %167 = arith.addf %165, %166 : vector<8x128xf32>
    %168 = math.tanh %167 : vector<8x128xf32>
    %169 = arith.mulf %164, %168 : vector<8x128xf32>
    %cst_69 = arith.constant 0.000000e+00 : f32
    %170 = vector.broadcast %cst_69 : f32 to vector<8x128xf32>
    %171 = arith.select %2, %169, %170 : vector<8x128xi1>, vector<8x128xf32>
    %cst_70 = arith.constant dense<0.000000e+00> : vector<8x128xf32>
    %172 = tpu.matmul %171, %11, %cst_70 {dimension_numbers = #tpu.dot_dimension_numbers<[1], [0], [0], [1], [0, 0, 1, 1], [], []>} : vector<8x128xf32>, vector<128x128xf32>, vector<8x128xf32> -> vector<8x128xf32>
    %173 = vector.broadcast %12 : vector<1x128xf32> to vector<8x128xf32>
    %174 = arith.addf %172, %173 : vector<8x128xf32>
    %175 = arith.index_cast %151 : i32 to index
    %c0_71 = arith.constant 0 : index
    %176 = vector.load %arg11[%175, %c0_71] : memref<64x128xf32, #tpu.memory_space<vmem>>, vector<8x128xf32>
    tpu.vector_store %arg11[%175, %c0_71], %174 {strides = array<i32>} : memref<64x128xf32, #tpu.memory_space<vmem>>, vector<8x128xf32>,
    %c6_i32 = arith.constant 6 : i32
    %c8_i32_72 = arith.constant 8 : i32
    %177 = arith.muli %c6_i32, %c8_i32_72 : i32
    %178 = tpu.assume_multiple %177, 8 : i32
    %179 = arith.index_cast %178 : i32 to index
    %c0_73 = arith.constant 0 : index
    %180 = vector.load %arg11[%179, %c0_73] : memref<64x128xf32, #tpu.memory_space<vmem>>, vector<8x128xf32>
    %cst_74 = arith.constant dense<0.000000e+00> : vector<8x128xf32>
    %181 = tpu.matmul %171, %10, %cst_74 {dimension_numbers = #tpu.dot_dimension_numbers<[1], [0], [0], [1], [0, 0, 1, 1], [], []>} : vector<8x128xf32>, vector<128x128xf32>, vector<8x128xf32> -> vector<8x128xf32>
    %182 = arith.addf %180, %181 : vector<8x128xf32>
    %183 = arith.negf %182 : vector<8x128xf32>
    %184 = math.exp %183 : vector<8x128xf32>
    %cst_75 = arith.constant 1.000000e+00 : f32
    %185 = vector.broadcast %cst_75 : f32 to vector<8x128xf32>
    %186 = arith.addf %185, %184 : vector<8x128xf32>
    %187 = arith.divf %185, %186 : vector<8x128xf32>
    %188 = math.tanh %182 : vector<8x128xf32>
    %c96_i32_76 = arith.constant 96 : i32
    %189 = tpu.dynamic_rotate %187 by %c96_i32_76 dim 1 : vector<8x128xf32>, i32 -> vector<8x128xf32>
    %c64_i32_77 = arith.constant 64 : i32
    %190 = tpu.dynamic_rotate %188 by %c64_i32_77 dim 1 : vector<8x128xf32>, i32 -> vector<8x128xf32>
    %c32_i32_78 = arith.constant 32 : i32
    %191 = tpu.dynamic_rotate %187 by %c32_i32_78 dim 1 : vector<8x128xf32>, i32 -> vector<8x128xf32>
    %192 = arith.mulf %189, %167 : vector<8x128xf32>
    %193 = arith.mulf %187, %190 : vector<8x128xf32>
    %194 = arith.addf %192, %193 : vector<8x128xf32>
    %195 = math.tanh %194 : vector<8x128xf32>
    %196 = arith.mulf %191, %195 : vector<8x128xf32>
    %cst_79 = arith.constant 0.000000e+00 : f32
    %197 = vector.broadcast %cst_79 : f32 to vector<8x128xf32>
    %198 = arith.select %2, %196, %197 : vector<8x128xi1>, vector<8x128xf32>
    %cst_80 = arith.constant dense<0.000000e+00> : vector<8x128xf32>
    %199 = tpu.matmul %198, %11, %cst_80 {dimension_numbers = #tpu.dot_dimension_numbers<[1], [0], [0], [1], [0, 0, 1, 1], [], []>} : vector<8x128xf32>, vector<128x128xf32>, vector<8x128xf32> -> vector<8x128xf32>
    %200 = vector.broadcast %12 : vector<1x128xf32> to vector<8x128xf32>
    %201 = arith.addf %199, %200 : vector<8x128xf32>
    %202 = arith.index_cast %178 : i32 to index
    %c0_81 = arith.constant 0 : index
    %203 = vector.load %arg11[%202, %c0_81] : memref<64x128xf32, #tpu.memory_space<vmem>>, vector<8x128xf32>
    tpu.vector_store %arg11[%202, %c0_81], %201 {strides = array<i32>} : memref<64x128xf32, #tpu.memory_space<vmem>>, vector<8x128xf32>,
    %c7_i32 = arith.constant 7 : i32
    %c8_i32_82 = arith.constant 8 : i32
    %204 = arith.muli %c7_i32, %c8_i32_82 : i32
    %205 = tpu.assume_multiple %204, 8 : i32
    %206 = arith.index_cast %205 : i32 to index
    %c0_83 = arith.constant 0 : index
    %207 = vector.load %arg11[%206, %c0_83] : memref<64x128xf32, #tpu.memory_space<vmem>>, vector<8x128xf32>
    %cst_84 = arith.constant dense<0.000000e+00> : vector<8x128xf32>
    %208 = tpu.matmul %198, %10, %cst_84 {dimension_numbers = #tpu.dot_dimension_numbers<[1], [0], [0], [1], [0, 0, 1, 1], [], []>} : vector<8x128xf32>, vector<128x128xf32>, vector<8x128xf32> -> vector<8x128xf32>
    %209 = arith.addf %207, %208 : vector<8x128xf32>
    %210 = arith.negf %209 : vector<8x128xf32>
    %211 = math.exp %210 : vector<8x128xf32>
    %cst_85 = arith.constant 1.000000e+00 : f32
    %212 = vector.broadcast %cst_85 : f32 to vector<8x128xf32>
    %213 = arith.addf %212, %211 : vector<8x128xf32>
    %214 = arith.divf %212, %213 : vector<8x128xf32>
    %215 = math.tanh %209 : vector<8x128xf32>
    %c96_i32_86 = arith.constant 96 : i32
    %216 = tpu.dynamic_rotate %214 by %c96_i32_86 dim 1 : vector<8x128xf32>, i32 -> vector<8x128xf32>
    %c64_i32_87 = arith.constant 64 : i32
    %217 = tpu.dynamic_rotate %215 by %c64_i32_87 dim 1 : vector<8x128xf32>, i32 -> vector<8x128xf32>
    %c32_i32_88 = arith.constant 32 : i32
    %218 = tpu.dynamic_rotate %214 by %c32_i32_88 dim 1 : vector<8x128xf32>, i32 -> vector<8x128xf32>
    %219 = arith.mulf %216, %194 : vector<8x128xf32>
    %220 = arith.mulf %214, %217 : vector<8x128xf32>
    %221 = arith.addf %219, %220 : vector<8x128xf32>
    %222 = math.tanh %221 : vector<8x128xf32>
    %223 = arith.mulf %218, %222 : vector<8x128xf32>
    %cst_89 = arith.constant 0.000000e+00 : f32
    %224 = vector.broadcast %cst_89 : f32 to vector<8x128xf32>
    %225 = arith.select %2, %223, %224 : vector<8x128xi1>, vector<8x128xf32>
    %cst_90 = arith.constant dense<0.000000e+00> : vector<8x128xf32>
    %226 = tpu.matmul %225, %11, %cst_90 {dimension_numbers = #tpu.dot_dimension_numbers<[1], [0], [0], [1], [0, 0, 1, 1], [], []>} : vector<8x128xf32>, vector<128x128xf32>, vector<8x128xf32> -> vector<8x128xf32>
    %227 = vector.broadcast %12 : vector<1x128xf32> to vector<8x128xf32>
    %228 = arith.addf %226, %227 : vector<8x128xf32>
    %229 = arith.index_cast %205 : i32 to index
    %c0_91 = arith.constant 0 : index
    %230 = vector.load %arg11[%229, %c0_91] : memref<64x128xf32, #tpu.memory_space<vmem>>, vector<8x128xf32>
    tpu.vector_store %arg11[%229, %c0_91], %228 {strides = array<i32>} : memref<64x128xf32, #tpu.memory_space<vmem>>, vector<8x128xf32>,
    %c8_i32_92 = arith.constant 8 : i32
    %c0_93 = arith.constant 0 : index
    %c0_94 = arith.constant 0 : index
    %231 = vector.load %arg6[%c0_93, %c0_94] : memref<128x128xf32, #tpu.memory_space<vmem>>, vector<128x128xf32>
    %c0_95 = arith.constant 0 : index
    %c0_96 = arith.constant 0 : index
    %232 = vector.load %arg8[%c0_95, %c0_96] : memref<128x128xf32, #tpu.memory_space<vmem>>, vector<128x128xf32>
    %c0_97 = arith.constant 0 : index
    %c0_98 = arith.constant 0 : index
    %233 = vector.load %arg9[%c0_97, %c0_98] : memref<1x128xf32, #tpu.memory_space<vmem>>, vector<1x128xf32>
    %cst_99 = arith.constant 0.000000e+00 : f32
    %234 = vector.broadcast %cst_99 : f32 to vector<8x128xf32>
    %cst_100 = arith.constant 0.000000e+00 : f32
    %235 = vector.broadcast %cst_100 : f32 to vector<8x128xf32>
    %c0_i32_101 = arith.constant 0 : i32
    %c8_i32_102 = arith.constant 8 : i32
    %236 = arith.muli %c0_i32_101, %c8_i32_102 : i32
    %237 = tpu.assume_multiple %236, 8 : i32
    %238 = arith.index_cast %237 : i32 to index
    %c0_103 = arith.constant 0 : index
    %239 = vector.load %arg11[%238, %c0_103] : memref<64x128xf32, #tpu.memory_space<vmem>>, vector<8x128xf32>
    %cst_104 = arith.constant dense<0.000000e+00> : vector<8x128xf32>
    %240 = tpu.matmul %234, %231, %cst_104 {dimension_numbers = #tpu.dot_dimension_numbers<[1], [0], [0], [1], [0, 0, 1, 1], [], []>} : vector<8x128xf32>, vector<128x128xf32>, vector<8x128xf32> -> vector<8x128xf32>
    %241 = arith.addf %239, %240 : vector<8x128xf32>
    %242 = arith.negf %241 : vector<8x128xf32>
    %243 = math.exp %242 : vector<8x128xf32>
    %cst_105 = arith.constant 1.000000e+00 : f32
    %244 = vector.broadcast %cst_105 : f32 to vector<8x128xf32>
    %245 = arith.addf %244, %243 : vector<8x128xf32>
    %246 = arith.divf %244, %245 : vector<8x128xf32>
    %247 = math.tanh %241 : vector<8x128xf32>
    %c96_i32_106 = arith.constant 96 : i32
    %248 = tpu.dynamic_rotate %246 by %c96_i32_106 dim 1 : vector<8x128xf32>, i32 -> vector<8x128xf32>
    %c64_i32_107 = arith.constant 64 : i32
    %249 = tpu.dynamic_rotate %247 by %c64_i32_107 dim 1 : vector<8x128xf32>, i32 -> vector<8x128xf32>
    %c32_i32_108 = arith.constant 32 : i32
    %250 = tpu.dynamic_rotate %246 by %c32_i32_108 dim 1 : vector<8x128xf32>, i32 -> vector<8x128xf32>
    %251 = arith.mulf %248, %235 : vector<8x128xf32>
    %252 = arith.mulf %246, %249 : vector<8x128xf32>
    %253 = arith.addf %251, %252 : vector<8x128xf32>
    %254 = math.tanh %253 : vector<8x128xf32>
    %255 = arith.mulf %250, %254 : vector<8x128xf32>
    %cst_109 = arith.constant 0.000000e+00 : f32
    %256 = vector.broadcast %cst_109 : f32 to vector<8x128xf32>
    %257 = arith.select %2, %255, %256 : vector<8x128xi1>, vector<8x128xf32>
    %cst_110 = arith.constant dense<0.000000e+00> : vector<8x128xf32>
    %258 = tpu.matmul %257, %232, %cst_110 {dimension_numbers = #tpu.dot_dimension_numbers<[1], [0], [0], [1], [0, 0, 1, 1], [], []>} : vector<8x128xf32>, vector<128x128xf32>, vector<8x128xf32> -> vector<8x128xf32>
    %259 = vector.broadcast %233 : vector<1x128xf32> to vector<8x128xf32>
    %260 = arith.addf %258, %259 : vector<8x128xf32>
    %261 = arith.index_cast %237 : i32 to index
    %c0_111 = arith.constant 0 : index
    %262 = vector.load %arg10[%261, %c0_111] : memref<64x128xf32, #tpu.memory_space<vmem>>, vector<8x128xf32>
    tpu.vector_store %arg10[%261, %c0_111], %260 {strides = array<i32>} : memref<64x128xf32, #tpu.memory_space<vmem>>, vector<8x128xf32>,
    %c1_i32_112 = arith.constant 1 : i32
    %c8_i32_113 = arith.constant 8 : i32
    %263 = arith.muli %c1_i32_112, %c8_i32_113 : i32
    %264 = tpu.assume_multiple %263, 8 : i32
    %265 = arith.index_cast %264 : i32 to index
    %c0_114 = arith.constant 0 : index
    %266 = vector.load %arg11[%265, %c0_114] : memref<64x128xf32, #tpu.memory_space<vmem>>, vector<8x128xf32>
    %cst_115 = arith.constant dense<0.000000e+00> : vector<8x128xf32>
    %267 = tpu.matmul %257, %231, %cst_115 {dimension_numbers = #tpu.dot_dimension_numbers<[1], [0], [0], [1], [0, 0, 1, 1], [], []>} : vector<8x128xf32>, vector<128x128xf32>, vector<8x128xf32> -> vector<8x128xf32>
    %268 = arith.addf %266, %267 : vector<8x128xf32>
    %269 = arith.negf %268 : vector<8x128xf32>
    %270 = math.exp %269 : vector<8x128xf32>
    %cst_116 = arith.constant 1.000000e+00 : f32
    %271 = vector.broadcast %cst_116 : f32 to vector<8x128xf32>
    %272 = arith.addf %271, %270 : vector<8x128xf32>
    %273 = arith.divf %271, %272 : vector<8x128xf32>
    %274 = math.tanh %268 : vector<8x128xf32>
    %c96_i32_117 = arith.constant 96 : i32
    %275 = tpu.dynamic_rotate %273 by %c96_i32_117 dim 1 : vector<8x128xf32>, i32 -> vector<8x128xf32>
    %c64_i32_118 = arith.constant 64 : i32
    %276 = tpu.dynamic_rotate %274 by %c64_i32_118 dim 1 : vector<8x128xf32>, i32 -> vector<8x128xf32>
    %c32_i32_119 = arith.constant 32 : i32
    %277 = tpu.dynamic_rotate %273 by %c32_i32_119 dim 1 : vector<8x128xf32>, i32 -> vector<8x128xf32>
    %278 = arith.mulf %275, %253 : vector<8x128xf32>
    %279 = arith.mulf %273, %276 : vector<8x128xf32>
    %280 = arith.addf %278, %279 : vector<8x128xf32>
    %281 = math.tanh %280 : vector<8x128xf32>
    %282 = arith.mulf %277, %281 : vector<8x128xf32>
    %cst_120 = arith.constant 0.000000e+00 : f32
    %283 = vector.broadcast %cst_120 : f32 to vector<8x128xf32>
    %284 = arith.select %2, %282, %283 : vector<8x128xi1>, vector<8x128xf32>
    %cst_121 = arith.constant dense<0.000000e+00> : vector<8x128xf32>
    %285 = tpu.matmul %284, %232, %cst_121 {dimension_numbers = #tpu.dot_dimension_numbers<[1], [0], [0], [1], [0, 0, 1, 1], [], []>} : vector<8x128xf32>, vector<128x128xf32>, vector<8x128xf32> -> vector<8x128xf32>
    %286 = vector.broadcast %233 : vector<1x128xf32> to vector<8x128xf32>
    %287 = arith.addf %285, %286 : vector<8x128xf32>
    %288 = arith.index_cast %264 : i32 to index
    %c0_122 = arith.constant 0 : index
    %289 = vector.load %arg10[%288, %c0_122] : memref<64x128xf32, #tpu.memory_space<vmem>>, vector<8x128xf32>
    tpu.vector_store %arg10[%288, %c0_122], %287 {strides = array<i32>} : memref<64x128xf32, #tpu.memory_space<vmem>>, vector<8x128xf32>,
    %c2_i32_123 = arith.constant 2 : i32
    %c8_i32_124 = arith.constant 8 : i32
    %290 = arith.muli %c2_i32_123, %c8_i32_124 : i32
    %291 = tpu.assume_multiple %290, 8 : i32
    %292 = arith.index_cast %291 : i32 to index
    %c0_125 = arith.constant 0 : index
    %293 = vector.load %arg11[%292, %c0_125] : memref<64x128xf32, #tpu.memory_space<vmem>>, vector<8x128xf32>
    %cst_126 = arith.constant dense<0.000000e+00> : vector<8x128xf32>
    %294 = tpu.matmul %284, %231, %cst_126 {dimension_numbers = #tpu.dot_dimension_numbers<[1], [0], [0], [1], [0, 0, 1, 1], [], []>} : vector<8x128xf32>, vector<128x128xf32>, vector<8x128xf32> -> vector<8x128xf32>
    %295 = arith.addf %293, %294 : vector<8x128xf32>
    %296 = arith.negf %295 : vector<8x128xf32>
    %297 = math.exp %296 : vector<8x128xf32>
    %cst_127 = arith.constant 1.000000e+00 : f32
    %298 = vector.broadcast %cst_127 : f32 to vector<8x128xf32>
    %299 = arith.addf %298, %297 : vector<8x128xf32>
    %300 = arith.divf %298, %299 : vector<8x128xf32>
    %301 = math.tanh %295 : vector<8x128xf32>
    %c96_i32_128 = arith.constant 96 : i32
    %302 = tpu.dynamic_rotate %300 by %c96_i32_128 dim 1 : vector<8x128xf32>, i32 -> vector<8x128xf32>
    %c64_i32_129 = arith.constant 64 : i32
    %303 = tpu.dynamic_rotate %301 by %c64_i32_129 dim 1 : vector<8x128xf32>, i32 -> vector<8x128xf32>
    %c32_i32_130 = arith.constant 32 : i32
    %304 = tpu.dynamic_rotate %300 by %c32_i32_130 dim 1 : vector<8x128xf32>, i32 -> vector<8x128xf32>
    %305 = arith.mulf %302, %280 : vector<8x128xf32>
    %306 = arith.mulf %300, %303 : vector<8x128xf32>
    %307 = arith.addf %305, %306 : vector<8x128xf32>
    %308 = math.tanh %307 : vector<8x128xf32>
    %309 = arith.mulf %304, %308 : vector<8x128xf32>
    %cst_131 = arith.constant 0.000000e+00 : f32
    %310 = vector.broadcast %cst_131 : f32 to vector<8x128xf32>
    %311 = arith.select %2, %309, %310 : vector<8x128xi1>, vector<8x128xf32>
    %cst_132 = arith.constant dense<0.000000e+00> : vector<8x128xf32>
    %312 = tpu.matmul %311, %232, %cst_132 {dimension_numbers = #tpu.dot_dimension_numbers<[1], [0], [0], [1], [0, 0, 1, 1], [], []>} : vector<8x128xf32>, vector<128x128xf32>, vector<8x128xf32> -> vector<8x128xf32>
    %313 = vector.broadcast %233 : vector<1x128xf32> to vector<8x128xf32>
    %314 = arith.addf %312, %313 : vector<8x128xf32>
    %315 = arith.index_cast %291 : i32 to index
    %c0_133 = arith.constant 0 : index
    %316 = vector.load %arg10[%315, %c0_133] : memref<64x128xf32, #tpu.memory_space<vmem>>, vector<8x128xf32>
    tpu.vector_store %arg10[%315, %c0_133], %314 {strides = array<i32>} : memref<64x128xf32, #tpu.memory_space<vmem>>, vector<8x128xf32>,
    %c3_i32_134 = arith.constant 3 : i32
    %c8_i32_135 = arith.constant 8 : i32
    %317 = arith.muli %c3_i32_134, %c8_i32_135 : i32
    %318 = tpu.assume_multiple %317, 8 : i32
    %319 = arith.index_cast %318 : i32 to index
    %c0_136 = arith.constant 0 : index
    %320 = vector.load %arg11[%319, %c0_136] : memref<64x128xf32, #tpu.memory_space<vmem>>, vector<8x128xf32>
    %cst_137 = arith.constant dense<0.000000e+00> : vector<8x128xf32>
    %321 = tpu.matmul %311, %231, %cst_137 {dimension_numbers = #tpu.dot_dimension_numbers<[1], [0], [0], [1], [0, 0, 1, 1], [], []>} : vector<8x128xf32>, vector<128x128xf32>, vector<8x128xf32> -> vector<8x128xf32>
    %322 = arith.addf %320, %321 : vector<8x128xf32>
    %323 = arith.negf %322 : vector<8x128xf32>
    %324 = math.exp %323 : vector<8x128xf32>
    %cst_138 = arith.constant 1.000000e+00 : f32
    %325 = vector.broadcast %cst_138 : f32 to vector<8x128xf32>
    %326 = arith.addf %325, %324 : vector<8x128xf32>
    %327 = arith.divf %325, %326 : vector<8x128xf32>
    %328 = math.tanh %322 : vector<8x128xf32>
    %c96_i32_139 = arith.constant 96 : i32
    %329 = tpu.dynamic_rotate %327 by %c96_i32_139 dim 1 : vector<8x128xf32>, i32 -> vector<8x128xf32>
    %c64_i32_140 = arith.constant 64 : i32
    %330 = tpu.dynamic_rotate %328 by %c64_i32_140 dim 1 : vector<8x128xf32>, i32 -> vector<8x128xf32>
    %c32_i32_141 = arith.constant 32 : i32
    %331 = tpu.dynamic_rotate %327 by %c32_i32_141 dim 1 : vector<8x128xf32>, i32 -> vector<8x128xf32>
    %332 = arith.mulf %329, %307 : vector<8x128xf32>
    %333 = arith.mulf %327, %330 : vector<8x128xf32>
    %334 = arith.addf %332, %333 : vector<8x128xf32>
    %335 = math.tanh %334 : vector<8x128xf32>
    %336 = arith.mulf %331, %335 : vector<8x128xf32>
    %cst_142 = arith.constant 0.000000e+00 : f32
    %337 = vector.broadcast %cst_142 : f32 to vector<8x128xf32>
    %338 = arith.select %2, %336, %337 : vector<8x128xi1>, vector<8x128xf32>
    %cst_143 = arith.constant dense<0.000000e+00> : vector<8x128xf32>
    %339 = tpu.matmul %338, %232, %cst_143 {dimension_numbers = #tpu.dot_dimension_numbers<[1], [0], [0], [1], [0, 0, 1, 1], [], []>} : vector<8x128xf32>, vector<128x128xf32>, vector<8x128xf32> -> vector<8x128xf32>
    %340 = vector.broadcast %233 : vector<1x128xf32> to vector<8x128xf32>
    %341 = arith.addf %339, %340 : vector<8x128xf32>
    %342 = arith.index_cast %318 : i32 to index
    %c0_144 = arith.constant 0 : index
    %343 = vector.load %arg10[%342, %c0_144] : memref<64x128xf32, #tpu.memory_space<vmem>>, vector<8x128xf32>
    tpu.vector_store %arg10[%342, %c0_144], %341 {strides = array<i32>} : memref<64x128xf32, #tpu.memory_space<vmem>>, vector<8x128xf32>,
    %c4_i32_145 = arith.constant 4 : i32
    %c8_i32_146 = arith.constant 8 : i32
    %344 = arith.muli %c4_i32_145, %c8_i32_146 : i32
    %345 = tpu.assume_multiple %344, 8 : i32
    %346 = arith.index_cast %345 : i32 to index
    %c0_147 = arith.constant 0 : index
    %347 = vector.load %arg11[%346, %c0_147] : memref<64x128xf32, #tpu.memory_space<vmem>>, vector<8x128xf32>
    %cst_148 = arith.constant dense<0.000000e+00> : vector<8x128xf32>
    %348 = tpu.matmul %338, %231, %cst_148 {dimension_numbers = #tpu.dot_dimension_numbers<[1], [0], [0], [1], [0, 0, 1, 1], [], []>} : vector<8x128xf32>, vector<128x128xf32>, vector<8x128xf32> -> vector<8x128xf32>
    %349 = arith.addf %347, %348 : vector<8x128xf32>
    %350 = arith.negf %349 : vector<8x128xf32>
    %351 = math.exp %350 : vector<8x128xf32>
    %cst_149 = arith.constant 1.000000e+00 : f32
    %352 = vector.broadcast %cst_149 : f32 to vector<8x128xf32>
    %353 = arith.addf %352, %351 : vector<8x128xf32>
    %354 = arith.divf %352, %353 : vector<8x128xf32>
    %355 = math.tanh %349 : vector<8x128xf32>
    %c96_i32_150 = arith.constant 96 : i32
    %356 = tpu.dynamic_rotate %354 by %c96_i32_150 dim 1 : vector<8x128xf32>, i32 -> vector<8x128xf32>
    %c64_i32_151 = arith.constant 64 : i32
    %357 = tpu.dynamic_rotate %355 by %c64_i32_151 dim 1 : vector<8x128xf32>, i32 -> vector<8x128xf32>
    %c32_i32_152 = arith.constant 32 : i32
    %358 = tpu.dynamic_rotate %354 by %c32_i32_152 dim 1 : vector<8x128xf32>, i32 -> vector<8x128xf32>
    %359 = arith.mulf %356, %334 : vector<8x128xf32>
    %360 = arith.mulf %354, %357 : vector<8x128xf32>
    %361 = arith.addf %359, %360 : vector<8x128xf32>
    %362 = math.tanh %361 : vector<8x128xf32>
    %363 = arith.mulf %358, %362 : vector<8x128xf32>
    %cst_153 = arith.constant 0.000000e+00 : f32
    %364 = vector.broadcast %cst_153 : f32 to vector<8x128xf32>
    %365 = arith.select %2, %363, %364 : vector<8x128xi1>, vector<8x128xf32>
    %cst_154 = arith.constant dense<0.000000e+00> : vector<8x128xf32>
    %366 = tpu.matmul %365, %232, %cst_154 {dimension_numbers = #tpu.dot_dimension_numbers<[1], [0], [0], [1], [0, 0, 1, 1], [], []>} : vector<8x128xf32>, vector<128x128xf32>, vector<8x128xf32> -> vector<8x128xf32>
    %367 = vector.broadcast %233 : vector<1x128xf32> to vector<8x128xf32>
    %368 = arith.addf %366, %367 : vector<8x128xf32>
    %369 = arith.index_cast %345 : i32 to index
    %c0_155 = arith.constant 0 : index
    %370 = vector.load %arg10[%369, %c0_155] : memref<64x128xf32, #tpu.memory_space<vmem>>, vector<8x128xf32>
    tpu.vector_store %arg10[%369, %c0_155], %368 {strides = array<i32>} : memref<64x128xf32, #tpu.memory_space<vmem>>, vector<8x128xf32>,
    %c5_i32_156 = arith.constant 5 : i32
    %c8_i32_157 = arith.constant 8 : i32
    %371 = arith.muli %c5_i32_156, %c8_i32_157 : i32
    %372 = tpu.assume_multiple %371, 8 : i32
    %373 = arith.index_cast %372 : i32 to index
    %c0_158 = arith.constant 0 : index
    %374 = vector.load %arg11[%373, %c0_158] : memref<64x128xf32, #tpu.memory_space<vmem>>, vector<8x128xf32>
    %cst_159 = arith.constant dense<0.000000e+00> : vector<8x128xf32>
    %375 = tpu.matmul %365, %231, %cst_159 {dimension_numbers = #tpu.dot_dimension_numbers<[1], [0], [0], [1], [0, 0, 1, 1], [], []>} : vector<8x128xf32>, vector<128x128xf32>, vector<8x128xf32> -> vector<8x128xf32>
    %376 = arith.addf %374, %375 : vector<8x128xf32>
    %377 = arith.negf %376 : vector<8x128xf32>
    %378 = math.exp %377 : vector<8x128xf32>
    %cst_160 = arith.constant 1.000000e+00 : f32
    %379 = vector.broadcast %cst_160 : f32 to vector<8x128xf32>
    %380 = arith.addf %379, %378 : vector<8x128xf32>
    %381 = arith.divf %379, %380 : vector<8x128xf32>
    %382 = math.tanh %376 : vector<8x128xf32>
    %c96_i32_161 = arith.constant 96 : i32
    %383 = tpu.dynamic_rotate %381 by %c96_i32_161 dim 1 : vector<8x128xf32>, i32 -> vector<8x128xf32>
    %c64_i32_162 = arith.constant 64 : i32
    %384 = tpu.dynamic_rotate %382 by %c64_i32_162 dim 1 : vector<8x128xf32>, i32 -> vector<8x128xf32>
    %c32_i32_163 = arith.constant 32 : i32
    %385 = tpu.dynamic_rotate %381 by %c32_i32_163 dim 1 : vector<8x128xf32>, i32 -> vector<8x128xf32>
    %386 = arith.mulf %383, %361 : vector<8x128xf32>
    %387 = arith.mulf %381, %384 : vector<8x128xf32>
    %388 = arith.addf %386, %387 : vector<8x128xf32>
    %389 = math.tanh %388 : vector<8x128xf32>
    %390 = arith.mulf %385, %389 : vector<8x128xf32>
    %cst_164 = arith.constant 0.000000e+00 : f32
    %391 = vector.broadcast %cst_164 : f32 to vector<8x128xf32>
    %392 = arith.select %2, %390, %391 : vector<8x128xi1>, vector<8x128xf32>
    %cst_165 = arith.constant dense<0.000000e+00> : vector<8x128xf32>
    %393 = tpu.matmul %392, %232, %cst_165 {dimension_numbers = #tpu.dot_dimension_numbers<[1], [0], [0], [1], [0, 0, 1, 1], [], []>} : vector<8x128xf32>, vector<128x128xf32>, vector<8x128xf32> -> vector<8x128xf32>
    %394 = vector.broadcast %233 : vector<1x128xf32> to vector<8x128xf32>
    %395 = arith.addf %393, %394 : vector<8x128xf32>
    %396 = arith.index_cast %372 : i32 to index
    %c0_166 = arith.constant 0 : index
    %397 = vector.load %arg10[%396, %c0_166] : memref<64x128xf32, #tpu.memory_space<vmem>>, vector<8x128xf32>
    tpu.vector_store %arg10[%396, %c0_166], %395 {strides = array<i32>} : memref<64x128xf32, #tpu.memory_space<vmem>>, vector<8x128xf32>,
    %c6_i32_167 = arith.constant 6 : i32
    %c8_i32_168 = arith.constant 8 : i32
    %398 = arith.muli %c6_i32_167, %c8_i32_168 : i32
    %399 = tpu.assume_multiple %398, 8 : i32
    %400 = arith.index_cast %399 : i32 to index
    %c0_169 = arith.constant 0 : index
    %401 = vector.load %arg11[%400, %c0_169] : memref<64x128xf32, #tpu.memory_space<vmem>>, vector<8x128xf32>
    %cst_170 = arith.constant dense<0.000000e+00> : vector<8x128xf32>
    %402 = tpu.matmul %392, %231, %cst_170 {dimension_numbers = #tpu.dot_dimension_numbers<[1], [0], [0], [1], [0, 0, 1, 1], [], []>} : vector<8x128xf32>, vector<128x128xf32>, vector<8x128xf32> -> vector<8x128xf32>
    %403 = arith.addf %401, %402 : vector<8x128xf32>
    %404 = arith.negf %403 : vector<8x128xf32>
    %405 = math.exp %404 : vector<8x128xf32>
    %cst_171 = arith.constant 1.000000e+00 : f32
    %406 = vector.broadcast %cst_171 : f32 to vector<8x128xf32>
    %407 = arith.addf %406, %405 : vector<8x128xf32>
    %408 = arith.divf %406, %407 : vector<8x128xf32>
    %409 = math.tanh %403 : vector<8x128xf32>
    %c96_i32_172 = arith.constant 96 : i32
    %410 = tpu.dynamic_rotate %408 by %c96_i32_172 dim 1 : vector<8x128xf32>, i32 -> vector<8x128xf32>
    %c64_i32_173 = arith.constant 64 : i32
    %411 = tpu.dynamic_rotate %409 by %c64_i32_173 dim 1 : vector<8x128xf32>, i32 -> vector<8x128xf32>
    %c32_i32_174 = arith.constant 32 : i32
    %412 = tpu.dynamic_rotate %408 by %c32_i32_174 dim 1 : vector<8x128xf32>, i32 -> vector<8x128xf32>
    %413 = arith.mulf %410, %388 : vector<8x128xf32>
    %414 = arith.mulf %408, %411 : vector<8x128xf32>
    %415 = arith.addf %413, %414 : vector<8x128xf32>
    %416 = math.tanh %415 : vector<8x128xf32>
    %417 = arith.mulf %412, %416 : vector<8x128xf32>
    %cst_175 = arith.constant 0.000000e+00 : f32
    %418 = vector.broadcast %cst_175 : f32 to vector<8x128xf32>
    %419 = arith.select %2, %417, %418 : vector<8x128xi1>, vector<8x128xf32>
    %cst_176 = arith.constant dense<0.000000e+00> : vector<8x128xf32>
    %420 = tpu.matmul %419, %232, %cst_176 {dimension_numbers = #tpu.dot_dimension_numbers<[1], [0], [0], [1], [0, 0, 1, 1], [], []>} : vector<8x128xf32>, vector<128x128xf32>, vector<8x128xf32> -> vector<8x128xf32>
    %421 = vector.broadcast %233 : vector<1x128xf32> to vector<8x128xf32>
    %422 = arith.addf %420, %421 : vector<8x128xf32>
    %423 = arith.index_cast %399 : i32 to index
    %c0_177 = arith.constant 0 : index
    %424 = vector.load %arg10[%423, %c0_177] : memref<64x128xf32, #tpu.memory_space<vmem>>, vector<8x128xf32>
    tpu.vector_store %arg10[%423, %c0_177], %422 {strides = array<i32>} : memref<64x128xf32, #tpu.memory_space<vmem>>, vector<8x128xf32>,
    %c7_i32_178 = arith.constant 7 : i32
    %c8_i32_179 = arith.constant 8 : i32
    %425 = arith.muli %c7_i32_178, %c8_i32_179 : i32
    %426 = tpu.assume_multiple %425, 8 : i32
    %427 = arith.index_cast %426 : i32 to index
    %c0_180 = arith.constant 0 : index
    %428 = vector.load %arg11[%427, %c0_180] : memref<64x128xf32, #tpu.memory_space<vmem>>, vector<8x128xf32>
    %cst_181 = arith.constant dense<0.000000e+00> : vector<8x128xf32>
    %429 = tpu.matmul %419, %231, %cst_181 {dimension_numbers = #tpu.dot_dimension_numbers<[1], [0], [0], [1], [0, 0, 1, 1], [], []>} : vector<8x128xf32>, vector<128x128xf32>, vector<8x128xf32> -> vector<8x128xf32>
    %430 = arith.addf %428, %429 : vector<8x128xf32>
    %431 = arith.negf %430 : vector<8x128xf32>
    %432 = math.exp %431 : vector<8x128xf32>
    %cst_182 = arith.constant 1.000000e+00 : f32
    %433 = vector.broadcast %cst_182 : f32 to vector<8x128xf32>
    %434 = arith.addf %433, %432 : vector<8x128xf32>
    %435 = arith.divf %433, %434 : vector<8x128xf32>
    %436 = math.tanh %430 : vector<8x128xf32>
    %c96_i32_183 = arith.constant 96 : i32
    %437 = tpu.dynamic_rotate %435 by %c96_i32_183 dim 1 : vector<8x128xf32>, i32 -> vector<8x128xf32>
    %c64_i32_184 = arith.constant 64 : i32
    %438 = tpu.dynamic_rotate %436 by %c64_i32_184 dim 1 : vector<8x128xf32>, i32 -> vector<8x128xf32>
    %c32_i32_185 = arith.constant 32 : i32
    %439 = tpu.dynamic_rotate %435 by %c32_i32_185 dim 1 : vector<8x128xf32>, i32 -> vector<8x128xf32>
    %440 = arith.mulf %437, %415 : vector<8x128xf32>
    %441 = arith.mulf %435, %438 : vector<8x128xf32>
    %442 = arith.addf %440, %441 : vector<8x128xf32>
    %443 = math.tanh %442 : vector<8x128xf32>
    %444 = arith.mulf %439, %443 : vector<8x128xf32>
    %cst_186 = arith.constant 0.000000e+00 : f32
    %445 = vector.broadcast %cst_186 : f32 to vector<8x128xf32>
    %446 = arith.select %2, %444, %445 : vector<8x128xi1>, vector<8x128xf32>
    %cst_187 = arith.constant dense<0.000000e+00> : vector<8x128xf32>
    %447 = tpu.matmul %446, %232, %cst_187 {dimension_numbers = #tpu.dot_dimension_numbers<[1], [0], [0], [1], [0, 0, 1, 1], [], []>} : vector<8x128xf32>, vector<128x128xf32>, vector<8x128xf32> -> vector<8x128xf32>
    %448 = vector.broadcast %233 : vector<1x128xf32> to vector<8x128xf32>
    %449 = arith.addf %447, %448 : vector<8x128xf32>
    %450 = arith.index_cast %426 : i32 to index
    %c0_188 = arith.constant 0 : index
    %451 = vector.load %arg10[%450, %c0_188] : memref<64x128xf32, #tpu.memory_space<vmem>>, vector<8x128xf32>
    tpu.vector_store %arg10[%450, %c0_188], %449 {strides = array<i32>} : memref<64x128xf32, #tpu.memory_space<vmem>>, vector<8x128xf32>,
    %c8_i32_189 = arith.constant 8 : i32
    return
  }
  func.func @transform_0(%arg0: i32) -> (i32, i32) {
    %c0_i32 = arith.constant 0 : i32
    %c0_i32_0 = arith.constant 0 : i32
    %c0_i32_1 = arith.constant 0 : i32
    return %c0_i32, %c0_i32_0 : i32, i32
  }
  func.func @transform_1(%arg0: i32) -> (i32, i32) {
    %c0_i32 = arith.constant 0 : i32
    %c0_i32_0 = arith.constant 0 : i32
    %c0_i32_1 = arith.constant 0 : i32
    return %c0_i32, %c0_i32_0 : i32, i32
  }
  func.func @transform_2(%arg0: i32) -> (i32, i32) {
    %c0_i32 = arith.constant 0 : i32
    %c0_i32_0 = arith.constant 0 : i32
    %c0_i32_1 = arith.constant 0 : i32
    return %c0_i32, %c0_i32_0 : i32, i32
  }
  func.func @transform_3(%arg0: i32) -> (i32, i32) {
    %c0_i32 = arith.constant 0 : i32
    %c0_i32_0 = arith.constant 0 : i32
    %c0_i32_1 = arith.constant 0 : i32
    return %c0_i32, %c0_i32_0 : i32, i32
  }
  func.func @transform_4(%arg0: i32) -> (i32, i32) {
    %c0_i32 = arith.constant 0 : i32
    %c0_i32_0 = arith.constant 0 : i32
    %c0_i32_1 = arith.constant 0 : i32
    return %c0_i32, %c0_i32_0 : i32, i32
  }
  func.func @transform_5(%arg0: i32) -> (i32, i32) {
    %c0_i32 = arith.constant 0 : i32
    %c0_i32_0 = arith.constant 0 : i32
    %c0_i32_1 = arith.constant 0 : i32
    return %c0_i32, %c0_i32_0 : i32, i32
  }
  func.func @transform_6(%arg0: i32) -> (i32, i32) {
    %c0_i32 = arith.constant 0 : i32
    %c0_i32_0 = arith.constant 0 : i32
    %c0_i32_1 = arith.constant 0 : i32
    return %c0_i32, %c0_i32_0 : i32, i32
  }
  func.func @transform_7(%arg0: i32) -> (i32, i32) {
    %c0_i32 = arith.constant 0 : i32
    %c0_i32_0 = arith.constant 0 : i32
    %c0_i32_1 = arith.constant 0 : i32
    return %c0_i32, %c0_i32_0 : i32, i32
  }
  func.func @transform_8(%arg0: i32) -> (i32, i32) {
    %c0_i32 = arith.constant 0 : i32
    %c0_i32_0 = arith.constant 0 : i32
    %c0_i32_1 = arith.constant 0 : i32
    return %c0_i32, %c0_i32_0 : i32, i32
  }
  func.func @transform_9(%arg0: i32) -> (i32, i32) {
    %c0_i32 = arith.constant 0 : i32
    %c0_i32_0 = arith.constant 0 : i32
    %c0_i32_1 = arith.constant 0 : i32
    return %c0_i32, %c0_i32_0 : i32, i32
  }
}

</mosaic_0001>

<bundles_post_ra>
// kernel: lstm_forward.1
= control target key start
LH: loop header
LB: loop body
LE: loop exit
PB: predicated region body
PF: predicated region fallthrough
CT: control target
= control target key end

     0   :  { %14 = vsyncpa [#allocation4], 0  ;;  %s6654_s0 = inlined_call_operand.vmem [shape: f32[64,16], index: 0, kind: input, shape index: {}]   ;;  %s6655_s1 = inlined_call_operand.vmem [shape: f32[16,128], index: 1, kind: input, shape index: {}]   ;;  %s6656_s2 = inlined_call_operand.hbm [shape: f32[128,128], index: 2, kind: input, shape index: {}]   ;;  %s6657_s3 = inlined_call_operand.vmem [shape: f32[1,128], index: 3, kind: input, shape index: {}]   ;;  %s6658_s4 = inlined_call_operand.hbm [shape: f32[128,128], index: 4, kind: input, shape index: {}]   ;;  %s6659_s5 = inlined_call_operand.hbm [shape: f32[128,128], index: 5, kind: input, shape index: {}]   ;;  %s6660_s6 = inlined_call_operand.vmem [shape: f32[1,128], index: 6, kind: input, shape index: {}]   ;;  %s6661_s7 = inlined_call_operand.hbm [shape: f32[128,128], index: 7, kind: input, shape index: {}]   ;;  %s6662_s8 = inlined_call_operand.vmem [shape: f32[1,128], index: 8, kind: input, shape index: {}]   ;;  %s6663_s9 = inlined_call_operand.vmem [shape: f32[64,128], index: 9, kind: output, shape index: {}]  }
   0x1   :  { %15 = vsyncpa [#allocation6], 0 }
   0x2   :  { %16 = vsyncpa [#allocation9], 0  ;;  %s4949_s30 = smov [#allocation5]   ;;  %s4950_s11 = smov [#allocation3]  }
   0x3   :  { %s40_s10 = sshll.u32 %s4949_s30, 4  ;;  %s26_s12 = sshll.u32 %s4950_s11, 4  ;;  %s41_s10 = int_to_ptr.vmem [resolvable:$true] %s40_s10  ;;  %s27_s12 = int_to_ptr.vmem [resolvable:$true] %s26_s12 }
   0x4   :  { %s4871_s13 = scalar_lea.vmem %s41_s10, 2048  ;;  %p4876_p1 = scmp.lt.s32.totalorder %s41_s10, %s41_s10 }
   0x5   :  { %p4872_p0 = scmp.ne.s32.totalorder %s41_s10, %s4871_s13  ;;  %p4877_p2 = scmp.lt.s32.totalorder %s4871_s13, %s4871_s13 }
   0x7   :  { %p4878_p3 = por %p4877_p2, %p4876_p1 }
   0x9   :  { %p4879_p4 = pnand %p4878_p3, %p4872_p0 }
   0xb   :  { %4882 = shalt.err (!%p4879_p4)
}
   0xc   :  { %s4951_s14 = smov 128   ;;  %s4952_s15 = smov 8  }
   0xd   :  { %46 = dma.hbm_to_vmem [thread:$0]  %s6658_s4, 2048, %s41_s10, [#allocation6], %s4951_s14, %s4951_s14, %s4952_s15  }
   0xe   :  { %s4891_s18 = scalar_lea.vmem %s27_s12, 2048  ;;  %p4896_p6 = scmp.lt.s32.totalorder %s27_s12, %s27_s12 }
   0xf   :  { %p4892_p5 = scmp.ne.s32.totalorder %s27_s12, %s4891_s18  ;;  %p4897_p7 = scmp.lt.s32.totalorder %s4891_s18, %s4891_s18 }
  0x11   :  { %p4898_p8 = por %p4897_p7, %p4896_p6 }
  0x13   :  { %p4899_p9 = pnand %p4898_p8, %p4892_p5 }
  0x15   :  { %4902 = shalt.err (!%p4899_p9)
}
  0x16   :  { %32 = dma.hbm_to_vmem [thread:$0]  %s6656_s2, 2048, %s27_s12, [#allocation4], %s4951_s14, %s4951_s14, %s4952_s15  }
  0x17   :  { %s4953_s21 = smov [#allocation7]   ;;  %s4954_s23 = smov [#allocation8]  }
  0x18   :  { %s52_s22 = sshll.u32 %s4953_s21, 4  ;;  %s66_s24 = sshll.u32 %s4954_s23, 4  ;;  %s53_s22 = int_to_ptr.vmem [resolvable:$true] %s52_s22  ;;  %s67_s24 = int_to_ptr.vmem [resolvable:$true] %s66_s24 }
  0x19   :  { %s4911_s4 = scalar_lea.vmem %s53_s22, 2048  ;;  %p4916_p11 = scmp.lt.s32.totalorder %s53_s22, %s53_s22 }
  0x1a   :  { %p4912_p10 = scmp.ne.s32.totalorder %s53_s22, %s4911_s4  ;;  %p4917_p12 = scmp.lt.s32.totalorder %s4911_s4, %s4911_s4 }
  0x1c   :  { %p4918_p13 = por %p4917_p12, %p4916_p11 }
  0x1e   :  { %p4919_p0 = pnand %p4918_p13, %p4912_p10 }
  0x20   :  { %4922 = shalt.err (!%p4919_p0)
}
  0x21   :  { %58 = dma.hbm_to_vmem [thread:$0]  %s6659_s5, 2048, %s53_s22, [#allocation6], %s4951_s14, %s4951_s14, %s4952_s15  }
  0x22   :  { %s4931_s2 = scalar_lea.vmem %s67_s24, 2048  ;;  %p4936_p2 = scmp.lt.s32.totalorder %s67_s24, %s67_s24 }
  0x23   :  { %p4932_p1 = scmp.ne.s32.totalorder %s67_s24, %s4931_s2  ;;  %p4937_p3 = scmp.lt.s32.totalorder %s4931_s2, %s4931_s2 }
  0x25   :  { %p4938_p4 = por %p4937_p3, %p4936_p2 }
  0x27   :  { %p4939_p5 = pnand %p4938_p4, %p4932_p1 }
  0x29   :  { %4942 = shalt.err (!%p4939_p5)
}
  0x2a   :  { %72 = dma.hbm_to_vmem [thread:$0]  %s6661_s7, 2048, %s67_s24, [#allocation9], %s4951_s14, %s4951_s14, %s4952_s15  }
  0x2b   :  { %4943 = dma.done.wait [#allocation4], 2048  }
  0x2c   :  { %4944 = vsyncadd [#allocation4], 4294965248 }
  0x2d   :  { %4945 = dma.done.wait [#allocation6], 4096  }
  0x2e   :  { %4946 = vsyncadd [#allocation6], 4294963200 }
  0x2f   :  { %4947 = dma.done.wait [#allocation9], 2048  }
  0x30   :  { %4948 = vsyncadd [#allocation9], 4294965248  ;;  %v4955_v0 = vmov 0.0   ;;  %vm4956_vm0 = vmmov 0   ;;  %v5037_v1 = vld [vmem:[#allocation3 + $0x78] sm:$0xff]  ;;  %v5039_v2 = vld [vmem:[#allocation3 + $0x70] sm:$0xff]  ;;  %v87_v60 = vlaneseq }
  0x31   :  { %3570 = vmatprep.subr.mxu1 %v4955_v0  ;;  %3602 = vmatprep.mubr.msk.f32.mxu1 %vm4956_vm0, %v4955_v0  ;;  %v5043_v3 = vld [vmem:[#allocation3 + $0x68] sm:$0xff]  ;;  %v5050_v5 = vld [vmem:[#allocation3 + $0x60] sm:$0xff]  ;;  %vm107_vm1 = vcmask 130048   ;;  %v5060_v8 = vld [vmem:[#allocation3 + $0x58] sm:$0xff]  ;;  %s4957_s23 = smov 32   ;;  %s4958_s24 = smov 96  }
  0x32   :  { %3571 = vmatpush3.msra.mxu1 %v5037_v1  ;;  %v99_v4 = vld [vmem:[%s6655_s1 + $0x8] sm:$0xff]  ;;  %v98_v6 = vld [vmem:[%s6655_s1] sm:$0xff]  ;;  %v5067_v10 = vld [vmem:[#allocation3 + $0x50] sm:$0xff]  ;;  %s4959_s27 = smov 64   ;;  %v5255_v61 = vand.u32 127, %v87_v60 }
  0x33   :  { %3572 = vmatprep.subr.mxu1 %v4955_v0  ;;  %3554 = vmatprep.subr.mxu0 %v99_v4  ;;  %v90_v7 = vld [vmem:[%s6654_s0] sm:$0xff]  ;;  %v91_v9 = vld [vmem:[%s6654_s0 + $0x8] sm:$0xff]  ;;  %v5082_v13 = vld [vmem:[#allocation3 + $0x38] sm:$0xff] }
  0x34   :  { %3573 = vmatpush3.msra.mxu1 %v5039_v2  ;;  %3555 = vmatpush3.msra.mxu0 %v99_v4  ;;  %v5073_v11 = vld [vmem:[#allocation3 + $0x48] sm:$0xff]  ;;  %v5078_v12 = vld [vmem:[#allocation3 + $0x40] sm:$0xff]  ;;  %v5086_v14 = vld [vmem:[#allocation3 + $0x30] sm:$0xff]  ;;  %vm89_vm2 = vcmp.lt.s32.totalorder %v5255_v61, 32 }
  0x35   :  { %3574 = vmatprep.subr.mxu1 %v4955_v0  ;;  %3556 = vmatprep.subr.mxu0 %v98_v6  ;;  %v5090_v15 = vld [vmem:[#allocation3 + $0x28] sm:$0xff]  ;;  %v5094_v16 = vld [vmem:[#allocation3 + $0x20] sm:$0xff]  ;;  %v5098_v17 = vld [vmem:[#allocation3 + $0x18] sm:$0xff] }
  0x36   :  { %3575 = vmatpush3.msra.mxu1 %v5043_v3  ;;  %3557 = vmatpush3.msra.mxu0 %v98_v6  ;;  %v5102_v18 = vld [vmem:[#allocation3 + $0x10] sm:$0xff]  ;;  %v5106_v19 = vld [vmem:[#allocation3 + $0x8] sm:$0xff]  ;;  %v5110_v20 = vld [vmem:[#allocation3] sm:$0xff] }
  0x37   :  { %3576 = vmatprep.subr.mxu1 %v4955_v0  ;;  %3558 = vmatprep.mubr.msk.f32.mxu0 %vm107_vm1, %v90_v7  ;;  %v5151_v21 = vld [vmem:[#allocation5 + $0x78] sm:$0xff]  ;;  %v5153_v22 = vld [vmem:[#allocation5 + $0x70] sm:$0xff]  ;;  %v5157_v23 = vld [vmem:[#allocation5 + $0x68] sm:$0xff] }
  0x38   :  { %3577 = vmatpush3.msra.mxu1 %v5050_v5  ;;  %3559 = vmatmul.mubr.msk.f32.vlgmr.msra.gmra.mxu0 %vm107_vm1, %v91_v9  ;;  %v5161_v24 = vld [vmem:[#allocation5 + $0x60] sm:$0xff]  ;;  %v5175_v35 = vld [vmem:[#allocation5 + $0x58] sm:$0xff]  ;;  %v5177_v36 = vld [vmem:[#allocation5 + $0x50] sm:$0xff] }
  0x39   :  { %3578 = vmatprep.subr.mxu1 %v4955_v0  ;;  %3605 = vmatprep.subr.mxu0 %v4955_v0  ;;  %v5172_v26 = vld [vmem:[%s6657_s3] ss:$0 sm:$0xff]  ;;  %v5183_v37 = vld [vmem:[#allocation5 + $0x48] sm:$0xff]  ;;  %v5191_v39 = vld [vmem:[#allocation5 + $0x38] sm:$0xff] }
  0x3a   :  { %3579 = vmatpush3.msra.mxu1 %v5060_v8  ;;  %3606 = vmatpush3.msra.mxu0 %v5151_v21  ;;  %v5187_v38 = vld [vmem:[#allocation5 + $0x40] sm:$0xff]  ;;  %v92_v40 = vld [vmem:[%s6654_s0 + $0x10] sm:$0xff]  ;;  %v93_v42 = vld [vmem:[%s6654_s0 + $0x18] sm:$0xff] }
  0x3b   :  { %3580 = vmatprep.subr.mxu1 %v4955_v0  ;;  %3607 = vmatprep.subr.mxu0 %v4955_v0  ;;  %v5196_v41 = vld [vmem:[#allocation5 + $0x30] sm:$0xff]  ;;  %v94_v43 = vld [vmem:[%s6654_s0 + $0x20] sm:$0xff]  ;;  %v5209_v44 = vld [vmem:[#allocation5 + $0x28] sm:$0xff] }
  0x3c   :  { %3581 = vmatpush3.msra.mxu1 %v5067_v10  ;;  %3608 = vmatpush3.msra.mxu0 %v5153_v22  ;;  %v95_v46 = vld [vmem:[%s6654_s0 + $0x28] sm:$0xff]  ;;  %v5218_v47 = vld [vmem:[#allocation5 + $0x20] sm:$0xff]  ;;  %v96_v48 = vld [vmem:[%s6654_s0 + $0x30] sm:$0xff] }
  0x3d   :  { %3582 = vmatprep.subr.mxu1 %v4955_v0  ;;  %3609 = vmatprep.subr.mxu0 %v4955_v0  ;;  %v5226_v49 = vld [vmem:[#allocation5 + $0x18] sm:$0xff]  ;;  %v5235_v52 = vld [vmem:[#allocation5 + $0x10] sm:$0xff]  ;;  %v5240_v53 = vld [vmem:[#allocation5 + $0x8] sm:$0xff] }
  0x3e   :  { %3583 = vmatpush3.msra.mxu1 %v5073_v11  ;;  %3610 = vmatpush3.msra.mxu0 %v5157_v23  ;;  %v97_v51 = vld [vmem:[%s6654_s0 + $0x38] sm:$0xff]  ;;  %v5246_v54 = vld [vmem:[#allocation5] sm:$0xff] }
  0x3f   :  { %3584 = vmatprep.subr.mxu1 %v4955_v0  ;;  %3611 = vmatprep.subr.mxu0 %v4955_v0 }
  0x40   :  { %3585 = vmatpush3.msra.mxu1 %v5078_v12  ;;  %3612 = vmatpush3.msra.mxu0 %v5161_v24 }
  0x41   :  { %3586 = vmatprep.subr.mxu1 %v4955_v0  ;;  %3613 = vmatprep.subr.mxu0 %v4955_v0 }
  0x42   :  { %3587 = vmatpush3.msra.mxu1 %v5082_v13  ;;  %3614 = vmatpush3.msra.mxu0 %v5175_v35 }
  0x43   :  { %3588 = vmatprep.subr.mxu1 %v4955_v0  ;;  %3615 = vmatprep.subr.mxu0 %v4955_v0 }
  0x44   :  { %3589 = vmatpush3.msra.mxu1 %v5086_v14  ;;  %3616 = vmatpush3.msra.mxu0 %v5177_v36 }
  0x45   :  { %3590 = vmatprep.subr.mxu1 %v4955_v0  ;;  %3617 = vmatprep.subr.mxu0 %v4955_v0 }
  0x46   :  { %3591 = vmatpush3.msra.mxu1 %v5090_v15  ;;  %3618 = vmatpush3.msra.mxu0 %v5183_v37 }
  0x47   :  { %3592 = vmatprep.subr.mxu1 %v4955_v0  ;;  %3619 = vmatprep.subr.mxu0 %v4955_v0 }
  0x48   :  { %3593 = vmatpush3.msra.mxu1 %v5094_v16  ;;  %3620 = vmatpush3.msra.mxu0 %v5187_v38 }
  0x49   :  { %3594 = vmatprep.subr.mxu1 %v4955_v0  ;;  %3621 = vmatprep.subr.mxu0 %v4955_v0 }
  0x4a   :  { %3595 = vmatpush3.msra.mxu1 %v5098_v17  ;;  %3622 = vmatpush3.msra.mxu0 %v5191_v39 }
  0x4b   :  { %3596 = vmatprep.subr.mxu1 %v4955_v0  ;;  %3561 = vmatprep.mubr.msk.f32.mxu0 %vm107_vm1, %v92_v40 }
  0x4c   :  { %3597 = vmatpush3.msra.mxu1 %v5102_v18  ;;  %3623 = vmatprep.subr.mxu0 %v4955_v0 }
  0x4d   :  { %3598 = vmatprep.subr.mxu1 %v4955_v0  ;;  %3562 = vmatmul.mubr.msk.f32.gmra.mxu0 %vm107_vm1, %v93_v42 }
  0x4e   :  { %3599 = vmatpush3.msra.mxu1 %v5106_v19  ;;  %3624 = vmatpush3.msra.mxu0 %v5196_v41 }
  0x4f   :  { %3600 = vmatprep.subr.mxu1 %v4955_v0  ;;  %3564 = vmatprep.mubr.msk.f32.mxu0 %vm107_vm1, %v94_v43 }
  0x50   :  { %3601 = vmatpush3.msra.mxu1 %v5110_v20  ;;  %3625 = vmatprep.subr.mxu0 %v4955_v0 }
  0x51   :  { %3603 = vmatmul.mubr.f32.vlgmr.msra.gmra.mxu1 %v4955_v0  ;;  %3640 = vmatprep.subr.mxu1 %v4955_v0 }
  0x52   :  { %3641 = vmatpush3.msra.mxu1 %v5037_v1  ;;  %3672 = vmatprep.mubr.msk.f32.mxu1 %vm4956_vm0, %v4955_v0 }
  0x53   :  { %3642 = vmatprep.subr.mxu1 %v4955_v0  ;;  %3626 = vmatpush3.msra.mxu0 %v5209_v44 }
  0x54   :  { %3643 = vmatpush3.msra.mxu1 %v5039_v2  ;;  %3627 = vmatprep.subr.mxu0 %v4955_v0 }
  0x55   :  { %3644 = vmatprep.subr.mxu1 %v4955_v0  ;;  %3565 = vmatmul.mubr.msk.f32.gmra.mxu0 %vm107_vm1, %v95_v46 }
  0x56   :  { %3645 = vmatpush3.msra.mxu1 %v5043_v3  ;;  %3628 = vmatpush3.msra.mxu0 %v5218_v47 }
  0x57   :  { %3646 = vmatprep.subr.mxu1 %v4955_v0  ;;  %3567 = vmatprep.mubr.msk.f32.mxu0 %vm107_vm1, %v96_v48 }
  0x58   :  { %3647 = vmatpush3.msra.mxu1 %v5050_v5  ;;  %3629 = vmatprep.subr.mxu0 %v4955_v0 }
  0x59   :  { %3648 = vmatprep.subr.mxu1 %v4955_v0  ;;  %3630 = vmatpush3.msra.mxu0 %v5226_v49 }
  0x5a   :  { %3649 = vmatpush3.msra.mxu1 %v5060_v8  ;;  %3631 = vmatprep.subr.mxu0 %v4955_v0 }
  0x5b   :  { %3650 = vmatprep.subr.mxu1 %v4955_v0  ;;  %3568 = vmatmul.mubr.msk.f32.gmra.mxu0 %vm107_vm1, %v97_v51 }
  0x5c   :  { %3651 = vmatpush3.msra.mxu1 %v5067_v10  ;;  %3632 = vmatpush3.msra.mxu0 %v5235_v52 }
  0x5d   :  { %3652 = vmatprep.subr.mxu1 %v4955_v0  ;;  %3637 = vmatprep.mubr.msk.f32.mxu0 %vm4956_vm0, %v4955_v0 }
  0x5e   :  { %3653 = vmatpush3.msra.mxu1 %v5073_v11  ;;  %3633 = vmatprep.subr.mxu0 %v4955_v0 }
  0x5f   :  { %3654 = vmatprep.subr.mxu1 %v4955_v0  ;;  %3634 = vmatpush3.msra.mxu0 %v5240_v53 }
  0x60   :  { %3655 = vmatpush3.msra.mxu1 %v5078_v12  ;;  %3635 = vmatprep.subr.mxu0 %v4955_v0 }
  0x61   :  { %3656 = vmatprep.subr.mxu1 %v4955_v0  ;;  %3636 = vmatpush3.msra.mxu0 %v5246_v54 }
  0x62   :  { %3657 = vmatpush3.msra.mxu1 %v5082_v13  ;;  %3675 = vmatprep.subr.mxu0 %v4955_v0 }
  0x63   :  { %3658 = vmatprep.subr.mxu1 %v4955_v0 }
  0x64   :  { %3659 = vmatpush3.msra.mxu1 %v5086_v14 }
  0x65   :  { %3660 = vmatprep.subr.mxu1 %v4955_v0 }
  0x66   :  { %3661 = vmatpush3.msra.mxu1 %v5090_v15 }
  0x67   :  { %3662 = vmatprep.subr.mxu1 %v4955_v0 }
  0x68   :  { %3663 = vmatpush3.msra.mxu1 %v5094_v16 }
  0x69   :  { %3664 = vmatprep.subr.mxu1 %v4955_v0 }
  0x6a   :  { %3665 = vmatpush3.msra.mxu1 %v5098_v17 }
  0x6b   :  { %3666 = vmatprep.subr.mxu1 %v4955_v0 }
  0x6c   :  { %3667 = vmatpush3.msra.mxu1 %v5102_v18 }
  0x6d   :  { %3668 = vmatprep.subr.mxu1 %v4955_v0 }
  0x6e   :  { %3669 = vmatpush3.msra.mxu1 %v5106_v19 }
  0x6f   :  { %3670 = vmatprep.subr.mxu1 %v4955_v0 }
  0x70   :  { %3671 = vmatpush3.msra.mxu1 %v5110_v20 }
  0x71   :  { %3710 = vmatprep.subr.mxu1 %v4955_v0 }
  0xf8   :  { %v5167_v25 = vpop.f32.mrf.mxu0 }
  0xfa   :  { %v198_v27 = vpop.f32.mrf.mxu0 }
  0xfb   :  { %v199_v28 = vadd.f32 %v5172_v26, %v198_v27 }
 0x10d   :  { %v5330_v6 = vpop.f32.mrf.mxu0 }
 0x10f   :  { %v5332_v7 = vpop.f32.mrf.mxu0 }
 0x111   :  { %v345_v29 = vpop.f32.mrf.mxu1 }
 0x112   :  { %v349_v30 = vadd.f32 %v345_v29, %v199_v28 }
 0x113   :  { %v3604_v31 = vpop.f32.mrf.mxu1 }
 0x114   :  { %v2945_v32 = vmul.f32 -1.442695, %v349_v30 }
 0x115   :  { %v5334_v9 = vpop.f32.mrf.mxu0 }
 0x116   :  { %4701 = vpow2.f32 %v2945_v32 }
 0x117   :  { %v5336_v27 = vpop.f32.mrf.mxu0 }
 0x11b   :  { %v5338_v28 = vpop.f32.mrf.mxu0 }
 0x11d   :  { %v5340_v29 = vpop.f32.mrf.mxu0 }
 0x123   :  { %v4702_v33 = vpop.eup %4701 }
 0x124   :  { %v353_v34 = vadd.f32 1.0, %v4702_v33 }
 0x126   :  { %4703 = vrcp.f32 %v353_v34 }
 0x127   :  { %4705 = vtanh.f32 %v349_v30  ;;  %v204_v30 = vadd.f32 %v5167_v25, %v5172_v26 }
 0x133   :  { %v4704_v45 = vpop.eup %4703 }
 0x134   :  { %361 = vrot.lane.b32.xlu1 %v4704_v45, %s4957_s23  ;;  %357 = vrot.lane.b32.xlu0 %v4704_v45, %s4958_s24  ;;  %v4706_v50 = vpop.eup %4705 }
 0x138   :  { %359 = vrot.lane.b32.xlu0 %v4706_v50, %s4959_s27 }
 0x1a6   :  { %v358_v55 = vpop.permute.xlu0 %357  ;;  %v362_v63 = vpop.permute.xlu1 %361 }
 0x1a7   :  { %v363_v57 = vmul.f32 0.0, %v358_v55 }
 0x1aa   :  { %v360_v56 = vpop.permute.xlu0 %359 }
 0x1ab   :  { %v364_v58 = vmul.f32 %v4704_v45, %v360_v56 }
 0x1ad   :  { %v5252_v59 = vadd.f32 %v364_v58, %v363_v57 }
 0x1af   :  { %4707 = vtanh.f32 %v5252_v59 }
 0x1bc   :  { %v4708_v62 = vpop.eup %4707 }
 0x1bd   :  { %v367_v4 = vmul.f32 %v4708_v62, %v362_v63 }
 0x1bf   :  { %3638 = vmatmul.mubr.msk.f32.vlgmr.msra.gmra.mxu0 %vm89_vm2, %v367_v4  ;;  %3673 = vmatmul.mubr.msk.f32.vlgmr.msra.gmra.mxu1 %vm89_vm2, %v367_v4 }
 0x1c0   :  { %3676 = vmatpush3.msra.mxu0 %v5151_v21  ;;  %3711 = vmatpush3.msra.mxu1 %v5037_v1 }
 0x1c1   :  { %3677 = vmatprep.subr.mxu0 %v4955_v0  ;;  %3712 = vmatprep.subr.mxu1 %v4955_v0 }
 0x1c2   :  { %3678 = vmatpush3.msra.mxu0 %v5153_v22  ;;  %3713 = vmatpush3.msra.mxu1 %v5039_v2 }
 0x1c3   :  { %3679 = vmatprep.subr.mxu0 %v4955_v0  ;;  %3714 = vmatprep.subr.mxu1 %v4955_v0 }
 0x1c4   :  { %3680 = vmatpush3.msra.mxu0 %v5157_v23  ;;  %3715 = vmatpush3.msra.mxu1 %v5043_v3 }
 0x1c5   :  { %3681 = vmatprep.subr.mxu0 %v4955_v0  ;;  %3716 = vmatprep.subr.mxu1 %v4955_v0 }
 0x1c6   :  { %3682 = vmatpush3.msra.mxu0 %v5161_v24  ;;  %3717 = vmatpush3.msra.mxu1 %v5050_v5 }
 0x1c7   :  { %3683 = vmatprep.subr.mxu0 %v4955_v0  ;;  %3718 = vmatprep.subr.mxu1 %v4955_v0 }
 0x1c8   :  { %3684 = vmatpush3.msra.mxu0 %v5175_v35  ;;  %3719 = vmatpush3.msra.mxu1 %v5060_v8 }
 0x1c9   :  { %3685 = vmatprep.subr.mxu0 %v4955_v0  ;;  %3720 = vmatprep.subr.mxu1 %v4955_v0 }
 0x1ca   :  { %3721 = vmatpush3.msra.mxu1 %v5067_v10  ;;  %3686 = vmatpush3.msra.mxu0 %v5177_v36 }
 0x1cb   :  { %3687 = vmatprep.subr.mxu0 %v4955_v0  ;;  %3722 = vmatprep.subr.mxu1 %v4955_v0 }
 0x1cc   :  { %3688 = vmatpush3.msra.mxu0 %v5183_v37  ;;  %3723 = vmatpush3.msra.mxu1 %v5073_v11 }
 0x1cd   :  { %3689 = vmatprep.subr.mxu0 %v4955_v0  ;;  %3724 = vmatprep.subr.mxu1 %v4955_v0 }
 0x1ce   :  { %3725 = vmatpush3.msra.mxu1 %v5078_v12  ;;  %3690 = vmatpush3.msra.mxu0 %v5187_v38 }
 0x1cf   :  { %3691 = vmatprep.subr.mxu0 %v4955_v0  ;;  %3726 = vmatprep.subr.mxu1 %v4955_v0 }
 0x1d0   :  { %3692 = vmatpush3.msra.mxu0 %v5191_v39  ;;  %3727 = vmatpush3.msra.mxu1 %v5082_v13 }
 0x1d1   :  { %3693 = vmatprep.subr.mxu0 %v4955_v0  ;;  %3728 = vmatprep.subr.mxu1 %v4955_v0 }
 0x1d2   :  { %3694 = vmatpush3.msra.mxu0 %v5196_v41  ;;  %3729 = vmatpush3.msra.mxu1 %v5086_v14 }
 0x1d3   :  { %3695 = vmatprep.subr.mxu0 %v4955_v0  ;;  %3730 = vmatprep.subr.mxu1 %v4955_v0 }
 0x1d4   :  { %3696 = vmatpush3.msra.mxu0 %v5209_v44  ;;  %3731 = vmatpush3.msra.mxu1 %v5090_v15 }
 0x1d5   :  { %3697 = vmatprep.subr.mxu0 %v4955_v0  ;;  %3732 = vmatprep.subr.mxu1 %v4955_v0 }
 0x1d6   :  { %3698 = vmatpush3.msra.mxu0 %v5218_v47  ;;  %3733 = vmatpush3.msra.mxu1 %v5094_v16 }
 0x1d7   :  { %3699 = vmatprep.subr.mxu0 %v4955_v0  ;;  %3734 = vmatprep.subr.mxu1 %v4955_v0 }
 0x1d8   :  { %3700 = vmatpush3.msra.mxu0 %v5226_v49  ;;  %3735 = vmatpush3.msra.mxu1 %v5098_v17 }
 0x1d9   :  { %3701 = vmatprep.subr.mxu0 %v4955_v0  ;;  %3736 = vmatprep.subr.mxu1 %v4955_v0 }
 0x1da   :  { %3702 = vmatpush3.msra.mxu0 %v5235_v52  ;;  %3737 = vmatpush3.msra.mxu1 %v5102_v18 }
 0x1db   :  { %3703 = vmatprep.subr.mxu0 %v4955_v0  ;;  %3738 = vmatprep.subr.mxu1 %v4955_v0 }
 0x1dc   :  { %3704 = vmatpush3.msra.mxu0 %v5240_v53  ;;  %3739 = vmatpush3.msra.mxu1 %v5106_v19 }
 0x1dd   :  { %3705 = vmatprep.subr.mxu0 %v4955_v0  ;;  %3740 = vmatprep.subr.mxu1 %v4955_v0 }
 0x1de   :  { %3706 = vmatpush3.msra.mxu0 %v5246_v54  ;;  %3707 = vmatprep.mubr.msk.f32.mxu0 %vm4956_vm0, %v4955_v0 }
 0x1df   :  { %3741 = vmatpush3.msra.mxu1 %v5110_v20  ;;  %3742 = vmatprep.mubr.msk.f32.mxu1 %vm4956_vm0, %v4955_v0 }
 0x1e0   :  { %3745 = vmatprep.subr.mxu0 %v4955_v0  ;;  %3780 = vmatprep.subr.mxu1 %v4955_v0 }
 0x27f   :  { %v5344_v31 = vpop.f32.mrf.mxu0  ;;  %v514_v32 = vpop.f32.mrf.mxu1 }
 0x280   :  { %v518_v33 = vadd.f32 %v514_v32, %v204_v30 }
 0x281   :  { %v3639_v34 = vpop.f32.mrf.mxu0  ;;  %v3674_v40 = vpop.f32.mrf.mxu1 }
 0x282   :  { %v2949_v42 = vmul.f32 -1.442695, %v518_v33  ;;  %4709 = vtanh.f32 %v518_v33 }
 0x284   :  { %4711 = vpow2.f32 %v2949_v42 }
 0x28f   :  { %v4710_v43 = vpop.eup %4709 }
 0x290   :  { %528 = vrot.lane.b32.xlu0 %v4710_v43, %s4959_s27 }
 0x291   :  { %v4712_v45 = vpop.eup %4711 }
 0x292   :  { %v522_v46 = vadd.f32 1.0, %v4712_v45 }
 0x294   :  { %4713 = vrcp.f32 %v522_v46 }
 0x2a1   :  { %v4714_v48 = vpop.eup %4713 }
 0x2a2   :  { %526 = vrot.lane.b32.xlu1 %v4714_v48, %s4958_s24 }
 0x2a6   :  { %530 = vrot.lane.b32.xlu1 %v4714_v48, %s4957_s23 }
 0x302   :  { %v529_v25 = vpop.permute.xlu0 %528 }
 0x303   :  { %v533_v51 = vmul.f32 %v4714_v48, %v529_v25 }
 0x314   :  { %v527_v50 = vpop.permute.xlu1 %526 }
 0x315   :  { %v532_v55 = vmul.f32 %v527_v50, %v5252_v59  ;;  %v209_v59 = vadd.f32 %v5172_v26, %v5332_v7 }
 0x317   :  { %v5350_v56 = vadd.f32 %v533_v51, %v532_v55 }
 0x318   :  { %v531_v58 = vpop.permute.xlu1 %530 }
 0x319   :  { %4715 = vtanh.f32 %v5350_v56 }
 0x326   :  { %v4716_v57 = vpop.eup %4715 }
 0x327   :  { %v536_v60 = vmul.f32 %v4716_v57, %v531_v58 }
 0x329   :  { %3708 = vmatmul.mubr.msk.f32.vlgmr.msra.gmra.mxu0 %vm89_vm2, %v536_v60  ;;  %3743 = vmatmul.mubr.msk.f32.vlgmr.msra.gmra.mxu1 %vm89_vm2, %v536_v60 }
 0x32a   :  { %3746 = vmatpush3.msra.mxu0 %v5151_v21  ;;  %3781 = vmatpush3.msra.mxu1 %v5037_v1 }
 0x32b   :  { %3747 = vmatprep.subr.mxu0 %v4955_v0  ;;  %3782 = vmatprep.subr.mxu1 %v4955_v0 }
 0x32c   :  { %3748 = vmatpush3.msra.mxu0 %v5153_v22  ;;  %3783 = vmatpush3.msra.mxu1 %v5039_v2 }
 0x32d   :  { %3749 = vmatprep.subr.mxu0 %v4955_v0  ;;  %3784 = vmatprep.subr.mxu1 %v4955_v0 }
 0x32e   :  { %3750 = vmatpush3.msra.mxu0 %v5157_v23  ;;  %3785 = vmatpush3.msra.mxu1 %v5043_v3 }
 0x32f   :  { %3751 = vmatprep.subr.mxu0 %v4955_v0  ;;  %3786 = vmatprep.subr.mxu1 %v4955_v0 }
 0x330   :  { %3752 = vmatpush3.msra.mxu0 %v5161_v24  ;;  %3787 = vmatpush3.msra.mxu1 %v5050_v5 }
 0x331   :  { %3753 = vmatprep.subr.mxu0 %v4955_v0  ;;  %3788 = vmatprep.subr.mxu1 %v4955_v0 }
 0x332   :  { %3754 = vmatpush3.msra.mxu0 %v5175_v35  ;;  %3789 = vmatpush3.msra.mxu1 %v5060_v8 }
 0x333   :  { %3755 = vmatprep.subr.mxu0 %v4955_v0  ;;  %3790 = vmatprep.subr.mxu1 %v4955_v0 }
 0x334   :  { %3791 = vmatpush3.msra.mxu1 %v5067_v10  ;;  %3756 = vmatpush3.msra.mxu0 %v5177_v36 }
 0x335   :  { %3757 = vmatprep.subr.mxu0 %v4955_v0  ;;  %3792 = vmatprep.subr.mxu1 %v4955_v0 }
 0x336   :  { %3758 = vmatpush3.msra.mxu0 %v5183_v37  ;;  %3793 = vmatpush3.msra.mxu1 %v5073_v11 }
 0x337   :  { %3759 = vmatprep.subr.mxu0 %v4955_v0  ;;  %3794 = vmatprep.subr.mxu1 %v4955_v0 }
 0x338   :  { %3795 = vmatpush3.msra.mxu1 %v5078_v12  ;;  %3760 = vmatpush3.msra.mxu0 %v5187_v38 }
 0x339   :  { %3761 = vmatprep.subr.mxu0 %v4955_v0  ;;  %3796 = vmatprep.subr.mxu1 %v4955_v0 }
 0x33a   :  { %3762 = vmatpush3.msra.mxu0 %v5191_v39  ;;  %3797 = vmatpush3.msra.mxu1 %v5082_v13 }
 0x33b   :  { %3763 = vmatprep.subr.mxu0 %v4955_v0  ;;  %3798 = vmatprep.subr.mxu1 %v4955_v0 }
 0x33c   :  { %3764 = vmatpush3.msra.mxu0 %v5196_v41  ;;  %3799 = vmatpush3.msra.mxu1 %v5086_v14 }
 0x33d   :  { %3765 = vmatprep.subr.mxu0 %v4955_v0  ;;  %3800 = vmatprep.subr.mxu1 %v4955_v0 }
 0x33e   :  { %3766 = vmatpush3.msra.mxu0 %v5209_v44  ;;  %3801 = vmatpush3.msra.mxu1 %v5090_v15 }
 0x33f   :  { %3767 = vmatprep.subr.mxu0 %v4955_v0  ;;  %3802 = vmatprep.subr.mxu1 %v4955_v0 }
 0x340   :  { %3768 = vmatpush3.msra.mxu0 %v5218_v47  ;;  %3803 = vmatpush3.msra.mxu1 %v5094_v16 }
 0x341   :  { %3769 = vmatprep.subr.mxu0 %v4955_v0  ;;  %3804 = vmatprep.subr.mxu1 %v4955_v0 }
 0x342   :  { %3770 = vmatpush3.msra.mxu0 %v5226_v49  ;;  %3805 = vmatpush3.msra.mxu1 %v5098_v17 }
 0x343   :  { %3771 = vmatprep.subr.mxu0 %v4955_v0  ;;  %3806 = vmatprep.subr.mxu1 %v4955_v0 }
 0x344   :  { %3772 = vmatpush3.msra.mxu0 %v5235_v52  ;;  %3807 = vmatpush3.msra.mxu1 %v5102_v18 }
 0x345   :  { %3773 = vmatprep.subr.mxu0 %v4955_v0  ;;  %3808 = vmatprep.subr.mxu1 %v4955_v0 }
 0x346   :  { %3774 = vmatpush3.msra.mxu0 %v5240_v53  ;;  %3809 = vmatpush3.msra.mxu1 %v5106_v19 }
 0x347   :  { %3775 = vmatprep.subr.mxu0 %v4955_v0  ;;  %3810 = vmatprep.subr.mxu1 %v4955_v0 }
 0x348   :  { %3776 = vmatpush3.msra.mxu0 %v5246_v54  ;;  %3777 = vmatprep.mubr.msk.f32.mxu0 %vm4956_vm0, %v4955_v0 }
 0x349   :  { %3811 = vmatpush3.msra.mxu1 %v5110_v20  ;;  %3812 = vmatprep.mubr.msk.f32.mxu1 %vm4956_vm0, %v4955_v0 }
 0x34a   :  { %3815 = vmatprep.subr.mxu0 %v4955_v0  ;;  %3850 = vmatprep.subr.mxu1 %v4955_v0 }
 0x3e9   :  { %v5427_v62 = vpop.f32.mrf.mxu0  ;;  %v677_v63 = vpop.f32.mrf.mxu1 }
 0x3ea   :  { %v681_v4 = vadd.f32 %v677_v63, %v209_v59 }
 0x3eb   :  { %v3709_v30 = vpop.f32.mrf.mxu0  ;;  %v3744_v32 = vpop.f32.mrf.mxu1 }
 0x3ec   :  { %v2952_v33 = vmul.f32 -1.442695, %v681_v4  ;;  %4717 = vtanh.f32 %v681_v4 }
 0x3ee   :  { %4719 = vpow2.f32 %v2952_v33 }
 0x3f9   :  { %v4718_v34 = vpop.eup %4717 }
 0x3fa   :  { %691 = vrot.lane.b32.xlu1 %v4718_v34, %s4959_s27 }
 0x3fb   :  { %v4720_v40 = vpop.eup %4719 }
 0x3fc   :  { %v685_v42 = vadd.f32 1.0, %v4720_v40 }
 0x3fe   :  { %4721 = vrcp.f32 %v685_v42 }
 0x40b   :  { %v4722_v43 = vpop.eup %4721 }
 0x40c   :  { %689 = vrot.lane.b32.xlu0 %v4722_v43, %s4958_s24 }
 0x410   :  { %693 = vrot.lane.b32.xlu0 %v4722_v43, %s4957_s23 }
 0x46c   :  { %v692_v7 = vpop.permute.xlu1 %691 }
 0x46d   :  { %v696_v46 = vmul.f32 %v4722_v43, %v692_v7 }
 0x47e   :  { %v690_v45 = vpop.permute.xlu0 %689 }
 0x47f   :  { %v695_v48 = vmul.f32 %v690_v45, %v5350_v56  ;;  %v214_v56 = vadd.f32 %v5330_v6, %v5172_v26 }
 0x481   :  { %v5433_v25 = vadd.f32 %v696_v46, %v695_v48 }
 0x482   :  { %v694_v51 = vpop.permute.xlu0 %693 }
 0x483   :  { %4723 = vtanh.f32 %v5433_v25 }
 0x490   :  { %v4724_v50 = vpop.eup %4723 }
 0x491   :  { %v699_v55 = vmul.f32 %v4724_v50, %v694_v51  ;;  %v5607_v50 = vld [vmem:[#allocation3 + $0x78] sm:$0xff]  ;;  %v5613_v51 = vld [vmem:[#allocation3 + $0x70] sm:$0xff] }
 0x493   :  { %3778 = vmatmul.mubr.msk.f32.vlgmr.msra.gmra.mxu0 %vm89_vm2, %v699_v55  ;;  %3813 = vmatmul.mubr.msk.f32.vlgmr.msra.gmra.mxu1 %vm89_vm2, %v699_v55  ;;  %v5636_v55 = vld [vmem:[#allocation3 + $0x50] sm:$0xff] }
 0x494   :  { %3816 = vmatpush3.msra.mxu0 %v5151_v21  ;;  %3851 = vmatpush3.msra.mxu1 %v5037_v1 }
 0x495   :  { %3817 = vmatprep.subr.mxu0 %v4955_v0  ;;  %3852 = vmatprep.subr.mxu1 %v4955_v0 }
 0x496   :  { %3818 = vmatpush3.msra.mxu0 %v5153_v22  ;;  %3853 = vmatpush3.msra.mxu1 %v5039_v2 }
 0x497   :  { %3819 = vmatprep.subr.mxu0 %v4955_v0  ;;  %3854 = vmatprep.subr.mxu1 %v4955_v0 }
 0x498   :  { %3820 = vmatpush3.msra.mxu0 %v5157_v23  ;;  %3855 = vmatpush3.msra.mxu1 %v5043_v3 }
 0x499   :  { %3821 = vmatprep.subr.mxu0 %v4955_v0  ;;  %3856 = vmatprep.subr.mxu1 %v4955_v0 }
 0x49a   :  { %3822 = vmatpush3.msra.mxu0 %v5161_v24  ;;  %3857 = vmatpush3.msra.mxu1 %v5050_v5 }
 0x49b   :  { %3823 = vmatprep.subr.mxu0 %v4955_v0  ;;  %3858 = vmatprep.subr.mxu1 %v4955_v0 }
 0x49c   :  { %3824 = vmatpush3.msra.mxu0 %v5175_v35  ;;  %3859 = vmatpush3.msra.mxu1 %v5060_v8 }
 0x49d   :  { %3825 = vmatprep.subr.mxu0 %v4955_v0  ;;  %3860 = vmatprep.subr.mxu1 %v4955_v0 }
 0x49e   :  { %3861 = vmatpush3.msra.mxu1 %v5067_v10  ;;  %3826 = vmatpush3.msra.mxu0 %v5177_v36 }
 0x49f   :  { %3827 = vmatprep.subr.mxu0 %v4955_v0  ;;  %3862 = vmatprep.subr.mxu1 %v4955_v0 }
 0x4a0   :  { %3828 = vmatpush3.msra.mxu0 %v5183_v37  ;;  %3863 = vmatpush3.msra.mxu1 %v5073_v11 }
 0x4a1   :  { %3829 = vmatprep.subr.mxu0 %v4955_v0  ;;  %3864 = vmatprep.subr.mxu1 %v4955_v0 }
 0x4a2   :  { %3865 = vmatpush3.msra.mxu1 %v5078_v12  ;;  %3830 = vmatpush3.msra.mxu0 %v5187_v38 }
 0x4a3   :  { %3831 = vmatprep.subr.mxu0 %v4955_v0  ;;  %3866 = vmatprep.subr.mxu1 %v4955_v0 }
 0x4a4   :  { %3832 = vmatpush3.msra.mxu0 %v5191_v39  ;;  %3867 = vmatpush3.msra.mxu1 %v5082_v13 }
 0x4a5   :  { %3833 = vmatprep.subr.mxu0 %v4955_v0  ;;  %3868 = vmatprep.subr.mxu1 %v4955_v0 }
 0x4a6   :  { %3834 = vmatpush3.msra.mxu0 %v5196_v41  ;;  %3869 = vmatpush3.msra.mxu1 %v5086_v14 }
 0x4a7   :  { %3835 = vmatprep.subr.mxu0 %v4955_v0  ;;  %3870 = vmatprep.subr.mxu1 %v4955_v0 }
 0x4a8   :  { %3836 = vmatpush3.msra.mxu0 %v5209_v44  ;;  %3871 = vmatpush3.msra.mxu1 %v5090_v15 }
 0x4a9   :  { %3837 = vmatprep.subr.mxu0 %v4955_v0  ;;  %3872 = vmatprep.subr.mxu1 %v4955_v0 }
 0x4aa   :  { %3838 = vmatpush3.msra.mxu0 %v5218_v47  ;;  %3873 = vmatpush3.msra.mxu1 %v5094_v16 }
 0x4ab   :  { %3839 = vmatprep.subr.mxu0 %v4955_v0  ;;  %3874 = vmatprep.subr.mxu1 %v4955_v0 }
 0x4ac   :  { %3840 = vmatpush3.msra.mxu0 %v5226_v49  ;;  %3875 = vmatpush3.msra.mxu1 %v5098_v17 }
 0x4ad   :  { %3841 = vmatprep.subr.mxu0 %v4955_v0  ;;  %3876 = vmatprep.subr.mxu1 %v4955_v0 }
 0x4ae   :  { %3842 = vmatpush3.msra.mxu0 %v5235_v52  ;;  %3877 = vmatpush3.msra.mxu1 %v5102_v18 }
 0x4af   :  { %3843 = vmatprep.subr.mxu0 %v4955_v0  ;;  %3878 = vmatprep.subr.mxu1 %v4955_v0 }
 0x4b0   :  { %3844 = vmatpush3.msra.mxu0 %v5240_v53  ;;  %3879 = vmatpush3.msra.mxu1 %v5106_v19 }
 0x4b1   :  { %3845 = vmatprep.subr.mxu0 %v4955_v0  ;;  %3880 = vmatprep.subr.mxu1 %v4955_v0 }
 0x4b2   :  { %3846 = vmatpush3.msra.mxu0 %v5246_v54  ;;  %3847 = vmatprep.mubr.msk.f32.mxu0 %vm4956_vm0, %v4955_v0 }
 0x4b3   :  { %3881 = vmatpush3.msra.mxu1 %v5110_v20  ;;  %3882 = vmatprep.mubr.msk.f32.mxu1 %vm4956_vm0, %v4955_v0 }
 0x4b4   :  { %3885 = vmatprep.subr.mxu0 %v4955_v0  ;;  %3920 = vmatprep.subr.mxu1 %v4955_v0 }
 0x553   :  { %v5510_v57 = vpop.f32.mrf.mxu0  ;;  %v840_v58 = vpop.f32.mrf.mxu1 }
 0x554   :  { %v844_v60 = vadd.f32 %v840_v58, %v214_v56 }
 0x555   :  { %v3779_v59 = vpop.f32.mrf.mxu0  ;;  %v3814_v63 = vpop.f32.mrf.mxu1 }
 0x556   :  { %v2955_v4 = vmul.f32 -1.442695, %v844_v60  ;;  %4725 = vtanh.f32 %v844_v60 }
 0x558   :  { %4727 = vpow2.f32 %v2955_v4 }
 0x563   :  { %v4726_v30 = vpop.eup %4725 }
 0x564   :  { %854 = vrot.lane.b32.xlu0 %v4726_v30, %s4959_s27 }
 0x565   :  { %v4728_v32 = vpop.eup %4727 }
 0x566   :  { %v848_v33 = vadd.f32 1.0, %v4728_v32 }
 0x568   :  { %4729 = vrcp.f32 %v848_v33 }
 0x575   :  { %v4730_v34 = vpop.eup %4729 }
 0x576   :  { %852 = vrot.lane.b32.xlu1 %v4730_v34, %s4958_s24 }
 0x57a   :  { %856 = vrot.lane.b32.xlu1 %v4730_v34, %s4957_s23 }
 0x5d6   :  { %v855_v6 = vpop.permute.xlu0 %854 }
 0x5d7   :  { %v859_v42 = vmul.f32 %v4730_v34, %v855_v6 }
 0x5e8   :  { %v853_v40 = vpop.permute.xlu1 %852 }
 0x5e9   :  { %v858_v43 = vmul.f32 %v853_v40, %v5433_v25 }
 0x5eb   :  { %v5516_v7 = vadd.f32 %v859_v42, %v858_v43 }
 0x5ec   :  { %v857_v46 = vpop.permute.xlu1 %856 }
 0x5ed   :  { %4731 = vtanh.f32 %v5516_v7 }
 0x5fa   :  { %v4732_v45 = vpop.eup %4731 }
 0x5fb   :  { %v862_v48 = vmul.f32 %v4732_v45, %v857_v46  ;;  %v5727_v46 = vld [vmem:[#allocation5 + $0x78] sm:$0xff] }
 0x5fd   :  { %3848 = vmatmul.mubr.msk.f32.vlgmr.msra.gmra.mxu0 %vm89_vm2, %v862_v48  ;;  %3883 = vmatmul.mubr.msk.f32.vlgmr.msra.gmra.mxu1 %vm89_vm2, %v862_v48  ;;  %v5733_v48 = vld [vmem:[#allocation5 + $0x70] sm:$0xff] }
 0x5fe   :  { %3886 = vmatpush3.msra.mxu0 %v5151_v21  ;;  %3921 = vmatpush3.msra.mxu1 %v5037_v1  ;;  %v219_v1 = vadd.f32 %v5172_v26, %v5336_v27 }
 0x5ff   :  { %3887 = vmatprep.subr.mxu0 %v4955_v0  ;;  %3922 = vmatprep.subr.mxu1 %v4955_v0 }
 0x600   :  { %3888 = vmatpush3.msra.mxu0 %v5153_v22  ;;  %3923 = vmatpush3.msra.mxu1 %v5039_v2 }
 0x601   :  { %3889 = vmatprep.subr.mxu0 %v4955_v0  ;;  %3924 = vmatprep.subr.mxu1 %v4955_v0 }
 0x602   :  { %3890 = vmatpush3.msra.mxu0 %v5157_v23  ;;  %3925 = vmatpush3.msra.mxu1 %v5043_v3 }
 0x603   :  { %3891 = vmatprep.subr.mxu0 %v4955_v0  ;;  %3926 = vmatprep.subr.mxu1 %v4955_v0 }
 0x604   :  { %3892 = vmatpush3.msra.mxu0 %v5161_v24  ;;  %3927 = vmatpush3.msra.mxu1 %v5050_v5 }
 0x605   :  { %3893 = vmatprep.subr.mxu0 %v4955_v0  ;;  %3928 = vmatprep.subr.mxu1 %v4955_v0 }
 0x606   :  { %3894 = vmatpush3.msra.mxu0 %v5175_v35  ;;  %3929 = vmatpush3.msra.mxu1 %v5060_v8 }
 0x607   :  { %3895 = vmatprep.subr.mxu0 %v4955_v0  ;;  %3930 = vmatprep.subr.mxu1 %v4955_v0 }
 0x608   :  { %3931 = vmatpush3.msra.mxu1 %v5067_v10  ;;  %3896 = vmatpush3.msra.mxu0 %v5177_v36 }
 0x609   :  { %3897 = vmatprep.subr.mxu0 %v4955_v0  ;;  %3932 = vmatprep.subr.mxu1 %v4955_v0 }
 0x60a   :  { %3898 = vmatpush3.msra.mxu0 %v5183_v37  ;;  %3933 = vmatpush3.msra.mxu1 %v5073_v11 }
 0x60b   :  { %3899 = vmatprep.subr.mxu0 %v4955_v0  ;;  %3934 = vmatprep.subr.mxu1 %v4955_v0 }
 0x60c   :  { %3935 = vmatpush3.msra.mxu1 %v5078_v12  ;;  %3900 = vmatpush3.msra.mxu0 %v5187_v38 }
 0x60d   :  { %3901 = vmatprep.subr.mxu0 %v4955_v0  ;;  %3936 = vmatprep.subr.mxu1 %v4955_v0 }
 0x60e   :  { %3902 = vmatpush3.msra.mxu0 %v5191_v39  ;;  %3937 = vmatpush3.msra.mxu1 %v5082_v13 }
 0x60f   :  { %3903 = vmatprep.subr.mxu0 %v4955_v0  ;;  %3938 = vmatprep.subr.mxu1 %v4955_v0 }
 0x610   :  { %3904 = vmatpush3.msra.mxu0 %v5196_v41  ;;  %3939 = vmatpush3.msra.mxu1 %v5086_v14 }
 0x611   :  { %3905 = vmatprep.subr.mxu0 %v4955_v0  ;;  %3940 = vmatprep.subr.mxu1 %v4955_v0 }
 0x612   :  { %3906 = vmatpush3.msra.mxu0 %v5209_v44  ;;  %3941 = vmatpush3.msra.mxu1 %v5090_v15 }
 0x613   :  { %3907 = vmatprep.subr.mxu0 %v4955_v0  ;;  %3942 = vmatprep.subr.mxu1 %v4955_v0 }
 0x614   :  { %3908 = vmatpush3.msra.mxu0 %v5218_v47  ;;  %3943 = vmatpush3.msra.mxu1 %v5094_v16 }
 0x615   :  { %3909 = vmatprep.subr.mxu0 %v4955_v0  ;;  %3944 = vmatprep.subr.mxu1 %v4955_v0 }
 0x616   :  { %3910 = vmatpush3.msra.mxu0 %v5226_v49  ;;  %3945 = vmatpush3.msra.mxu1 %v5098_v17 }
 0x617   :  { %3911 = vmatprep.subr.mxu0 %v4955_v0  ;;  %3946 = vmatprep.subr.mxu1 %v4955_v0 }
 0x618   :  { %3912 = vmatpush3.msra.mxu0 %v5235_v52  ;;  %3947 = vmatpush3.msra.mxu1 %v5102_v18 }
 0x619   :  { %3913 = vmatprep.subr.mxu0 %v4955_v0  ;;  %3948 = vmatprep.subr.mxu1 %v4955_v0 }
 0x61a   :  { %3914 = vmatpush3.msra.mxu0 %v5240_v53  ;;  %3949 = vmatpush3.msra.mxu1 %v5106_v19 }
 0x61b   :  { %3915 = vmatprep.subr.mxu0 %v4955_v0  ;;  %3950 = vmatprep.subr.mxu1 %v4955_v0 }
 0x61c   :  { %3916 = vmatpush3.msra.mxu0 %v5246_v54  ;;  %3917 = vmatprep.mubr.msk.f32.mxu0 %vm4956_vm0, %v4955_v0 }
 0x61d   :  { %3951 = vmatpush3.msra.mxu1 %v5110_v20  ;;  %3952 = vmatprep.mubr.msk.f32.mxu1 %vm4956_vm0, %v4955_v0 }
 0x61e   :  { %3955 = vmatprep.subr.mxu0 %v4955_v0  ;;  %3990 = vmatprep.subr.mxu1 %v4955_v0 }
 0x6bd   :  { %v5593_v2 = vpop.f32.mrf.mxu0  ;;  %v1003_v3 = vpop.f32.mrf.mxu1 }
 0x6be   :  { %v1007_v5 = vadd.f32 %v1003_v3, %v219_v1  ;;  %v5739_v1 = vld [vmem:[#allocation5 + $0x68] sm:$0xff]  ;;  %v5745_v3 = vld [vmem:[#allocation5 + $0x60] sm:$0xff] }
 0x6bf   :  { %v3849_v8 = vpop.f32.mrf.mxu0  ;;  %v3884_v10 = vpop.f32.mrf.mxu1 }
 0x6c0   :  { %v2958_v11 = vmul.f32 -1.442695, %v1007_v5  ;;  %4733 = vtanh.f32 %v1007_v5  ;;  %v5751_v5 = vld [vmem:[#allocation5 + $0x58] sm:$0xff]  ;;  %v5757_v8 = vld [vmem:[#allocation5 + $0x50] sm:$0xff]  ;;  %v5763_v10 = vld [vmem:[#allocation5 + $0x48] sm:$0xff] }
 0x6c2   :  { %4735 = vpow2.f32 %v2958_v11  ;;  %v5769_v11 = vld [vmem:[#allocation5 + $0x40] sm:$0xff] }
 0x6cd   :  { %v4734_v12 = vpop.eup %4733 }
 0x6ce   :  { %1017 = vrot.lane.b32.xlu1 %v4734_v12, %s4959_s27  ;;  %v5775_v12 = vld [vmem:[#allocation5 + $0x38] sm:$0xff] }
 0x6cf   :  { %v4736_v13 = vpop.eup %4735 }
 0x6d0   :  { %v1011_v14 = vadd.f32 1.0, %v4736_v13  ;;  %v5781_v13 = vld [vmem:[#allocation5 + $0x30] sm:$0xff] }
 0x6d2   :  { %4737 = vrcp.f32 %v1011_v14  ;;  %v5787_v14 = vld [vmem:[#allocation5 + $0x28] sm:$0xff] }
 0x6df   :  { %v4738_v15 = vpop.eup %4737 }
 0x6e0   :  { %1015 = vrot.lane.b32.xlu0 %v4738_v15, %s4958_s24 }
 0x6e4   :  { %1019 = vrot.lane.b32.xlu0 %v4738_v15, %s4957_s23 }
 0x740   :  { %v1018_v16 = vpop.permute.xlu1 %1017 }
 0x741   :  { %v1022_v18 = vmul.f32 %v4738_v15, %v1018_v16  ;;  %v5793_v15 = vld [vmem:[#allocation5 + $0x20] sm:$0xff]  ;;  %v5799_v16 = vld [vmem:[#allocation5 + $0x18] sm:$0xff] }
 0x752   :  { %v1016_v17 = vpop.permute.xlu0 %1015 }
 0x753   :  { %v1021_v19 = vmul.f32 %v1016_v17, %v5516_v7  ;;  %v5805_v17 = vld [vmem:[#allocation5 + $0x10] sm:$0xff] }
 0x755   :  { %v5599_v20 = vadd.f32 %v1022_v18, %v1021_v19  ;;  %v5811_v18 = vld [vmem:[#allocation5 + $0x8] sm:$0xff]  ;;  %v5817_v19 = vld [vmem:[#allocation5] sm:$0xff] }
 0x756   :  { %v1020_v27 = vpop.permute.xlu0 %1019 }
 0x757   :  { %4739 = vtanh.f32 %v5599_v20 }
 0x764   :  { %v4740_v26 = vpop.eup %4739 }
 0x765   :  { %v1025_v25 = vmul.f32 %v4740_v26, %v1020_v27 }
 0x767   :  { %3918 = vmatmul.mubr.msk.f32.vlgmr.msra.gmra.mxu0 %vm89_vm2, %v1025_v25  ;;  %3953 = vmatmul.mubr.msk.f32.vlgmr.msra.gmra.mxu1 %vm89_vm2, %v1025_v25 }
 0x768   :  { %3956 = vmatpush3.msra.mxu0 %v5151_v21  ;;  %3991 = vmatpush3.msra.mxu1 %v5607_v50  ;;  %v5619_v21 = vld [vmem:[#allocation3 + $0x68] sm:$0xff] }
 0x769   :  { %3957 = vmatprep.subr.mxu0 %v4955_v0  ;;  %3992 = vmatprep.subr.mxu1 %v4955_v0 }
 0x76a   :  { %3958 = vmatpush3.msra.mxu0 %v5153_v22  ;;  %3993 = vmatpush3.msra.mxu1 %v5613_v51  ;;  %v5625_v22 = vld [vmem:[#allocation3 + $0x60] sm:$0xff] }
 0x76b   :  { %3959 = vmatprep.subr.mxu0 %v4955_v0  ;;  %3994 = vmatprep.subr.mxu1 %v4955_v0 }
 0x76c   :  { %3960 = vmatpush3.msra.mxu0 %v5157_v23  ;;  %3995 = vmatpush3.msra.mxu1 %v5619_v21  ;;  %v5631_v23 = vld [vmem:[#allocation3 + $0x58] sm:$0xff] }
 0x76d   :  { %3961 = vmatprep.subr.mxu0 %v4955_v0  ;;  %3996 = vmatprep.subr.mxu1 %v4955_v0 }
 0x76e   :  { %3962 = vmatpush3.msra.mxu0 %v5161_v24  ;;  %3997 = vmatpush3.msra.mxu1 %v5625_v22  ;;  %v5643_v24 = vld [vmem:[#allocation3 + $0x48] sm:$0xff] }
 0x76f   :  { %3963 = vmatprep.subr.mxu0 %v4955_v0  ;;  %3998 = vmatprep.subr.mxu1 %v4955_v0 }
 0x770   :  { %3964 = vmatpush3.msra.mxu0 %v5175_v35  ;;  %3999 = vmatpush3.msra.mxu1 %v5631_v23  ;;  %v5648_v35 = vld [vmem:[#allocation3 + $0x40] sm:$0xff] }
 0x771   :  { %3965 = vmatprep.subr.mxu0 %v4955_v0  ;;  %4000 = vmatprep.subr.mxu1 %v4955_v0 }
 0x772   :  { %4001 = vmatpush3.msra.mxu1 %v5636_v55  ;;  %3966 = vmatpush3.msra.mxu0 %v5177_v36  ;;  %v5655_v36 = vld [vmem:[#allocation3 + $0x38] sm:$0xff] }
 0x773   :  { %3967 = vmatprep.subr.mxu0 %v4955_v0  ;;  %4002 = vmatprep.subr.mxu1 %v4955_v0 }
 0x774   :  { %3968 = vmatpush3.msra.mxu0 %v5183_v37  ;;  %4003 = vmatpush3.msra.mxu1 %v5643_v24  ;;  %v5661_v37 = vld [vmem:[#allocation3 + $0x30] sm:$0xff] }
 0x775   :  { %3969 = vmatprep.subr.mxu0 %v4955_v0  ;;  %4004 = vmatprep.subr.mxu1 %v4955_v0 }
 0x776   :  { %4005 = vmatpush3.msra.mxu1 %v5648_v35  ;;  %3970 = vmatpush3.msra.mxu0 %v5187_v38  ;;  %v5667_v38 = vld [vmem:[#allocation3 + $0x28] sm:$0xff] }
 0x777   :  { %3971 = vmatprep.subr.mxu0 %v4955_v0  ;;  %4006 = vmatprep.subr.mxu1 %v4955_v0 }
 0x778   :  { %3972 = vmatpush3.msra.mxu0 %v5191_v39  ;;  %4007 = vmatpush3.msra.mxu1 %v5655_v36  ;;  %v5673_v39 = vld [vmem:[#allocation3 + $0x20] sm:$0xff] }
 0x779   :  { %3973 = vmatprep.subr.mxu0 %v4955_v0  ;;  %4008 = vmatprep.subr.mxu1 %v4955_v0 }
 0x77a   :  { %3974 = vmatpush3.msra.mxu0 %v5196_v41  ;;  %4009 = vmatpush3.msra.mxu1 %v5661_v37  ;;  %v5679_v41 = vld [vmem:[#allocation3 + $0x18] sm:$0xff] }
 0x77b   :  { %3975 = vmatprep.subr.mxu0 %v4955_v0  ;;  %4010 = vmatprep.subr.mxu1 %v4955_v0 }
 0x77c   :  { %3976 = vmatpush3.msra.mxu0 %v5209_v44  ;;  %4011 = vmatpush3.msra.mxu1 %v5667_v38  ;;  %v5685_v44 = vld [vmem:[#allocation3 + $0x10] sm:$0xff] }
 0x77d   :  { %3977 = vmatprep.subr.mxu0 %v4955_v0  ;;  %4012 = vmatprep.subr.mxu1 %v4955_v0 }
 0x77e   :  { %3978 = vmatpush3.msra.mxu0 %v5218_v47  ;;  %4013 = vmatpush3.msra.mxu1 %v5673_v39  ;;  %v5691_v47 = vld [vmem:[#allocation3 + $0x8] sm:$0xff] }
 0x77f   :  { %3979 = vmatprep.subr.mxu0 %v4955_v0  ;;  %4014 = vmatprep.subr.mxu1 %v4955_v0 }
 0x780   :  { %3980 = vmatpush3.msra.mxu0 %v5226_v49  ;;  %4015 = vmatpush3.msra.mxu1 %v5679_v41  ;;  %v5699_v49 = vld [vmem:[#allocation3] sm:$0xff] }
 0x781   :  { %3981 = vmatprep.subr.mxu0 %v4955_v0  ;;  %4016 = vmatprep.subr.mxu1 %v4955_v0 }
 0x782   :  { %3982 = vmatpush3.msra.mxu0 %v5235_v52  ;;  %4017 = vmatpush3.msra.mxu1 %v5685_v44  ;;  %v5709_v52 = vld [vmem:[%s6657_s3] ss:$0 sm:$0xff] }
 0x783   :  { %3983 = vmatprep.subr.mxu0 %v4955_v0  ;;  %4018 = vmatprep.subr.mxu1 %v4955_v0 }
 0x784   :  { %3984 = vmatpush3.msra.mxu0 %v5240_v53  ;;  %4019 = vmatpush3.msra.mxu1 %v5691_v47  ;;  %v224_v53 = vadd.f32 %v5709_v52, %v5334_v9 }
 0x785   :  { %3985 = vmatprep.subr.mxu0 %v4955_v0  ;;  %4020 = vmatprep.subr.mxu1 %v4955_v0 }
 0x786   :  { %3986 = vmatpush3.msra.mxu0 %v5246_v54  ;;  %3987 = vmatprep.mubr.msk.f32.mxu0 %vm4956_vm0, %v4955_v0 }
 0x787   :  { %4021 = vmatpush3.msra.mxu1 %v5699_v49  ;;  %4022 = vmatprep.mubr.msk.f32.mxu1 %vm4956_vm0, %v4955_v0 }
 0x788   :  { %4060 = vmatprep.subr.mxu1 %v4955_v0  ;;  %4025 = vmatprep.subr.mxu0 %v4955_v0 }
 0x827   :  { %v5713_v54 = vpop.f32.mrf.mxu0  ;;  %v1166_v56 = vpop.f32.mrf.mxu1 }
 0x828   :  { %v1170_v58 = vadd.f32 %v1166_v56, %v224_v53  ;;  %v5849_v53 = vld [vmem:[#allocation7 + $0x68] sm:$0xff]  ;;  %v5855_v56 = vld [vmem:[#allocation7 + $0x60] sm:$0xff] }
 0x829   :  { %v3919_v60 = vpop.f32.mrf.mxu0  ;;  %v3954_v59 = vpop.f32.mrf.mxu1 }
 0x82a   :  { %v2961_v63 = vmul.f32 -1.442695, %v1170_v58  ;;  %4741 = vtanh.f32 %v1170_v58  ;;  %v5861_v58 = vld [vmem:[#allocation7 + $0x58] sm:$0xff]  ;;  %v5867_v60 = vld [vmem:[#allocation7 + $0x50] sm:$0xff]  ;;  %v5873_v59 = vld [vmem:[#allocation7 + $0x48] sm:$0xff] }
 0x82c   :  { %4743 = vpow2.f32 %v2961_v63  ;;  %v5879_v63 = vld [vmem:[#allocation7 + $0x40] sm:$0xff] }
 0x837   :  { %v4742_v4 = vpop.eup %4741 }
 0x838   :  { %1180 = vrot.lane.b32.xlu0 %v4742_v4, %s4959_s27  ;;  %v5885_v4 = vld [vmem:[#allocation7 + $0x38] sm:$0xff] }
 0x839   :  { %v4744_v30 = vpop.eup %4743 }
 0x83a   :  { %v1174_v32 = vadd.f32 1.0, %v4744_v30  ;;  %v5891_v30 = vld [vmem:[#allocation7 + $0x30] sm:$0xff] }
 0x83c   :  { %4745 = vrcp.f32 %v1174_v32  ;;  %v5897_v32 = vld [vmem:[#allocation7 + $0x28] sm:$0xff] }
 0x849   :  { %v4746_v33 = vpop.eup %4745 }
 0x84a   :  { %1178 = vrot.lane.b32.xlu1 %v4746_v33, %s4958_s24 }
 0x84e   :  { %1182 = vrot.lane.b32.xlu1 %v4746_v33, %s4957_s23 }
 0x8aa   :  { %v1181_v9 = vpop.permute.xlu0 %1180 }
 0x8ab   :  { %v1185_v6 = vmul.f32 %v4746_v33, %v1181_v9  ;;  %v5903_v33 = vld [vmem:[#allocation7 + $0x20] sm:$0xff]  ;;  %v5909_v9 = vld [vmem:[#allocation7 + $0x18] sm:$0xff] }
 0x8bc   :  { %v1179_v34 = vpop.permute.xlu1 %1178 }
 0x8bd   :  { %v1184_v40 = vmul.f32 %v1179_v34, %v5599_v20  ;;  %v229_v20 = vadd.f32 %v5709_v52, %v5340_v29  ;;  %v5915_v34 = vld [vmem:[#allocation7 + $0x10] sm:$0xff] }
 0x8bf   :  { %v5719_v42 = vadd.f32 %v1185_v6, %v1184_v40  ;;  %v5921_v6 = vld [vmem:[#allocation7 + $0x8] sm:$0xff]  ;;  %v5927_v40 = vld [vmem:[#allocation7] sm:$0xff] }
 0x8c0   :  { %v1183_v7 = vpop.permute.xlu1 %1182 }
 0x8c1   :  { %4747 = vtanh.f32 %v5719_v42 }
 0x8ce   :  { %v4748_v43 = vpop.eup %4747 }
 0x8cf   :  { %v1188_v45 = vmul.f32 %v4748_v43, %v1183_v7 }
 0x8d1   :  { %3988 = vmatmul.mubr.msk.f32.vlgmr.msra.gmra.mxu0 %vm89_vm2, %v1188_v45  ;;  %4023 = vmatmul.mubr.msk.f32.vlgmr.msra.gmra.mxu1 %vm89_vm2, %v1188_v45 }
 0x8d2   :  { %4061 = vmatpush3.msra.mxu1 %v5607_v50  ;;  %4026 = vmatpush3.msra.mxu0 %v5727_v46 }
 0x8d3   :  { %4062 = vmatprep.subr.mxu1 %v4955_v0  ;;  %4027 = vmatprep.subr.mxu0 %v4955_v0 }
 0x8d4   :  { %4063 = vmatpush3.msra.mxu1 %v5613_v51  ;;  %4028 = vmatpush3.msra.mxu0 %v5733_v48 }
 0x8d5   :  { %4064 = vmatprep.subr.mxu1 %v4955_v0  ;;  %4029 = vmatprep.subr.mxu0 %v4955_v0 }
 0x8d6   :  { %4065 = vmatpush3.msra.mxu1 %v5619_v21  ;;  %4030 = vmatpush3.msra.mxu0 %v5739_v1 }
 0x8d7   :  { %4066 = vmatprep.subr.mxu1 %v4955_v0  ;;  %4031 = vmatprep.subr.mxu0 %v4955_v0 }
 0x8d8   :  { %4067 = vmatpush3.msra.mxu1 %v5625_v22  ;;  %4032 = vmatpush3.msra.mxu0 %v5745_v3 }
 0x8d9   :  { %4068 = vmatprep.subr.mxu1 %v4955_v0  ;;  %4033 = vmatprep.subr.mxu0 %v4955_v0 }
 0x8da   :  { %4069 = vmatpush3.msra.mxu1 %v5631_v23  ;;  %4034 = vmatpush3.msra.mxu0 %v5751_v5 }
 0x8db   :  { %4070 = vmatprep.subr.mxu1 %v4955_v0  ;;  %4035 = vmatprep.subr.mxu0 %v4955_v0 }
 0x8dc   :  { %4071 = vmatpush3.msra.mxu1 %v5636_v55  ;;  %4036 = vmatpush3.msra.mxu0 %v5757_v8 }
 0x8dd   :  { %4072 = vmatprep.subr.mxu1 %v4955_v0  ;;  %4037 = vmatprep.subr.mxu0 %v4955_v0 }
 0x8de   :  { %4073 = vmatpush3.msra.mxu1 %v5643_v24  ;;  %4038 = vmatpush3.msra.mxu0 %v5763_v10 }
 0x8df   :  { %4074 = vmatprep.subr.mxu1 %v4955_v0  ;;  %4039 = vmatprep.subr.mxu0 %v4955_v0 }
 0x8e0   :  { %4075 = vmatpush3.msra.mxu1 %v5648_v35  ;;  %4040 = vmatpush3.msra.mxu0 %v5769_v11 }
 0x8e1   :  { %4076 = vmatprep.subr.mxu1 %v4955_v0  ;;  %4041 = vmatprep.subr.mxu0 %v4955_v0 }
 0x8e2   :  { %4077 = vmatpush3.msra.mxu1 %v5655_v36  ;;  %4042 = vmatpush3.msra.mxu0 %v5775_v12 }
 0x8e3   :  { %4078 = vmatprep.subr.mxu1 %v4955_v0  ;;  %4043 = vmatprep.subr.mxu0 %v4955_v0 }
 0x8e4   :  { %4079 = vmatpush3.msra.mxu1 %v5661_v37  ;;  %4044 = vmatpush3.msra.mxu0 %v5781_v13 }
 0x8e5   :  { %4080 = vmatprep.subr.mxu1 %v4955_v0  ;;  %4045 = vmatprep.subr.mxu0 %v4955_v0 }
 0x8e6   :  { %4081 = vmatpush3.msra.mxu1 %v5667_v38  ;;  %4046 = vmatpush3.msra.mxu0 %v5787_v14 }
 0x8e7   :  { %4082 = vmatprep.subr.mxu1 %v4955_v0  ;;  %4047 = vmatprep.subr.mxu0 %v4955_v0 }
 0x8e8   :  { %4083 = vmatpush3.msra.mxu1 %v5673_v39  ;;  %4048 = vmatpush3.msra.mxu0 %v5793_v15 }
 0x8e9   :  { %4084 = vmatprep.subr.mxu1 %v4955_v0  ;;  %4049 = vmatprep.subr.mxu0 %v4955_v0 }
 0x8ea   :  { %4085 = vmatpush3.msra.mxu1 %v5679_v41  ;;  %4050 = vmatpush3.msra.mxu0 %v5799_v16 }
 0x8eb   :  { %4086 = vmatprep.subr.mxu1 %v4955_v0  ;;  %4051 = vmatprep.subr.mxu0 %v4955_v0 }
 0x8ec   :  { %4087 = vmatpush3.msra.mxu1 %v5685_v44  ;;  %4052 = vmatpush3.msra.mxu0 %v5805_v17 }
 0x8ed   :  { %4088 = vmatprep.subr.mxu1 %v4955_v0  ;;  %4053 = vmatprep.subr.mxu0 %v4955_v0 }
 0x8ee   :  { %4089 = vmatpush3.msra.mxu1 %v5691_v47  ;;  %4054 = vmatpush3.msra.mxu0 %v5811_v18  ;;  %v5837_v47 = vld [vmem:[#allocation7 + $0x78] sm:$0xff] }
 0x8ef   :  { %4090 = vmatprep.subr.mxu1 %v4955_v0  ;;  %4055 = vmatprep.subr.mxu0 %v4955_v0 }
 0x8f0   :  { %4091 = vmatpush3.msra.mxu1 %v5699_v49  ;;  %4056 = vmatpush3.msra.mxu0 %v5817_v19  ;;  %v5843_v49 = vld [vmem:[#allocation7 + $0x70] sm:$0xff] }
 0x8f1   :  { %4057 = vmatprep.mubr.msk.f32.mxu0 %vm4956_vm0, %v4955_v0  ;;  %4092 = vmatprep.mubr.msk.f32.mxu1 %vm4956_vm0, %v4955_v0 }
 0x8f2   :  { %4130 = vmatprep.subr.mxu1 %v4955_v0  ;;  %4095 = vmatprep.subr.mxu0 %v4955_v0 }
 0x991   :  { %v5828_v26 = vpop.f32.mrf.mxu0  ;;  %v1329_v27 = vpop.f32.mrf.mxu1 }
 0x992   :  { %v1333_v25 = vadd.f32 %v1329_v27, %v229_v20 }
 0x993   :  { %v3989_v50 = vpop.f32.mrf.mxu0  ;;  %v4024_v51 = vpop.f32.mrf.mxu1 }
 0x994   :  { %v2964_v21 = vmul.f32 -1.442695, %v1333_v25  ;;  %4749 = vtanh.f32 %v1333_v25 }
 0x996   :  { %4751 = vpow2.f32 %v2964_v21 }
 0x9a1   :  { %v4750_v22 = vpop.eup %4749 }
 0x9a2   :  { %1343 = vrot.lane.b32.xlu1 %v4750_v22, %s4959_s27 }
 0x9a3   :  { %v4752_v23 = vpop.eup %4751 }
 0x9a4   :  { %v1337_v55 = vadd.f32 1.0, %v4752_v23 }
 0x9a6   :  { %4753 = vrcp.f32 %v1337_v55 }
 0x9b3   :  { %v4754_v24 = vpop.eup %4753 }
 0x9b4   :  { %1341 = vrot.lane.b32.xlu0 %v4754_v24, %s4958_s24 }
 0x9b8   :  { %1345 = vrot.lane.b32.xlu0 %v4754_v24, %s4957_s23 }
 0xa14   :  { %v1344_v29 = vpop.permute.xlu1 %1343 }
 0xa15   :  { %v1348_v36 = vmul.f32 %v4754_v24, %v1344_v29 }
 0xa26   :  { %v1342_v35 = vpop.permute.xlu0 %1341 }
 0xa27   :  { %v1347_v37 = vmul.f32 %v1342_v35, %v5719_v42  ;;  %v234_v42 = vadd.f32 %v5709_v52, %v5338_v28 }
 0xa29   :  { %v5834_v38 = vadd.f32 %v1348_v36, %v1347_v37 }
 0xa2a   :  { %v1346_v41 = vpop.permute.xlu0 %1345 }
 0xa2b   :  { %4755 = vtanh.f32 %v5834_v38 }
 0xa38   :  { %v4756_v39 = vpop.eup %4755 }
 0xa39   :  { %v1351_v44 = vmul.f32 %v4756_v39, %v1346_v41 }
 0xa3b   :  { %4058 = vmatmul.mubr.msk.f32.vlgmr.msra.gmra.mxu0 %vm89_vm2, %v1351_v44  ;;  %4093 = vmatmul.mubr.msk.f32.vlgmr.msra.gmra.mxu1 %vm89_vm2, %v1351_v44 }
 0xa3c   :  { %4131 = vmatpush3.msra.mxu1 %v5837_v47  ;;  %4162 = vmatprep.mubr.msk.f32.mxu1 %vm4956_vm0, %v4955_v0 }
 0xa3d   :  { %4132 = vmatprep.subr.mxu1 %v4955_v0  ;;  %4096 = vmatpush3.msra.mxu0 %v5727_v46 }
 0xa3e   :  { %4133 = vmatpush3.msra.mxu1 %v5843_v49  ;;  %4097 = vmatprep.subr.mxu0 %v4955_v0 }
 0xa3f   :  { %4134 = vmatprep.subr.mxu1 %v4955_v0  ;;  %4098 = vmatpush3.msra.mxu0 %v5733_v48 }
 0xa40   :  { %4135 = vmatpush3.msra.mxu1 %v5849_v53  ;;  %4099 = vmatprep.subr.mxu0 %v4955_v0 }
 0xa41   :  { %4136 = vmatprep.subr.mxu1 %v4955_v0  ;;  %4100 = vmatpush3.msra.mxu0 %v5739_v1  ;;  %v5985_v1 = vld [vmem:[%s6660_s6] ss:$0 sm:$0xff] }
 0xa42   :  { %4137 = vmatpush3.msra.mxu1 %v5855_v56  ;;  %4101 = vmatprep.subr.mxu0 %v4955_v0  ;;  %v605_v27 = vadd.f32 %v5985_v1, %v5427_v62 }
 0xa43   :  { %4138 = vmatprep.subr.mxu1 %v4955_v0  ;;  %4102 = vmatpush3.msra.mxu0 %v5745_v3  ;;  %v442_v3 = vadd.f32 %v5985_v1, %v5344_v31 }
 0xa44   :  { %4139 = vmatpush3.msra.mxu1 %v5861_v58  ;;  %4103 = vmatprep.subr.mxu0 %v4955_v0 }
 0xa45   :  { %4140 = vmatprep.subr.mxu1 %v4955_v0  ;;  %4104 = vmatpush3.msra.mxu0 %v5751_v5 }
 0xa46   :  { %4141 = vmatpush3.msra.mxu1 %v5867_v60  ;;  %4105 = vmatprep.subr.mxu0 %v4955_v0 }
 0xa47   :  { %4142 = vmatprep.subr.mxu1 %v4955_v0  ;;  %4106 = vmatpush3.msra.mxu0 %v5757_v8 }
 0xa48   :  { %4143 = vmatpush3.msra.mxu1 %v5873_v59  ;;  %4107 = vmatprep.subr.mxu0 %v4955_v0 }
 0xa49   :  { %4144 = vmatprep.subr.mxu1 %v4955_v0  ;;  %4108 = vmatpush3.msra.mxu0 %v5763_v10 }
 0xa4a   :  { %4145 = vmatpush3.msra.mxu1 %v5879_v63  ;;  %4109 = vmatprep.subr.mxu0 %v4955_v0 }
 0xa4b   :  { %4146 = vmatprep.subr.mxu1 %v4955_v0  ;;  %4110 = vmatpush3.msra.mxu0 %v5769_v11 }
 0xa4c   :  { %4147 = vmatpush3.msra.mxu1 %v5885_v4  ;;  %4111 = vmatprep.subr.mxu0 %v4955_v0 }
 0xa4d   :  { %4148 = vmatprep.subr.mxu1 %v4955_v0  ;;  %4112 = vmatpush3.msra.mxu0 %v5775_v12 }
 0xa4e   :  { %4149 = vmatpush3.msra.mxu1 %v5891_v30  ;;  %4113 = vmatprep.subr.mxu0 %v4955_v0 }
 0xa4f   :  { %4150 = vmatprep.subr.mxu1 %v4955_v0  ;;  %4114 = vmatpush3.msra.mxu0 %v5781_v13 }
 0xa50   :  { %4151 = vmatpush3.msra.mxu1 %v5897_v32  ;;  %4115 = vmatprep.subr.mxu0 %v4955_v0 }
 0xa51   :  { %4152 = vmatprep.subr.mxu1 %v4955_v0  ;;  %4116 = vmatpush3.msra.mxu0 %v5787_v14 }
 0xa52   :  { %4153 = vmatpush3.msra.mxu1 %v5903_v33  ;;  %4117 = vmatprep.subr.mxu0 %v4955_v0 }
 0xa53   :  { %4154 = vmatprep.subr.mxu1 %v4955_v0  ;;  %4118 = vmatpush3.msra.mxu0 %v5793_v15 }
 0xa54   :  { %4155 = vmatpush3.msra.mxu1 %v5909_v9  ;;  %4119 = vmatprep.subr.mxu0 %v4955_v0 }
 0xa55   :  { %4156 = vmatprep.subr.mxu1 %v4955_v0  ;;  %4120 = vmatpush3.msra.mxu0 %v5799_v16 }
 0xa56   :  { %4157 = vmatpush3.msra.mxu1 %v5915_v34  ;;  %4121 = vmatprep.subr.mxu0 %v4955_v0 }
 0xa57   :  { %4158 = vmatprep.subr.mxu1 %v4955_v0  ;;  %4122 = vmatpush3.msra.mxu0 %v5805_v17 }
 0xa58   :  { %4159 = vmatpush3.msra.mxu1 %v5921_v6  ;;  %4123 = vmatprep.subr.mxu0 %v4955_v0 }
 0xa59   :  { %4160 = vmatprep.subr.mxu1 %v4955_v0  ;;  %4124 = vmatpush3.msra.mxu0 %v5811_v18 }
 0xa5a   :  { %4161 = vmatpush3.msra.mxu1 %v5927_v40  ;;  %4125 = vmatprep.subr.mxu0 %v4955_v0 }
 0xa5b   :  { %4163 = vmatmul.mubr.f32.vlgmr.msra.gmra.mxu1 %v4955_v0  ;;  %4200 = vmatprep.subr.mxu1 %v4955_v0 }
 0xa5c   :  { %4201 = vmatpush3.msra.mxu1 %v5837_v47  ;;  %4232 = vmatprep.mubr.msk.f32.mxu1 %vm4956_vm0, %v4955_v0 }
 0xa5d   :  { %4202 = vmatprep.subr.mxu1 %v4955_v0  ;;  %4126 = vmatpush3.msra.mxu0 %v5817_v19 }
 0xa5e   :  { %4203 = vmatpush3.msra.mxu1 %v5843_v49  ;;  %4127 = vmatprep.mubr.msk.f32.mxu0 %vm4956_vm0, %v4955_v0 }
 0xa5f   :  { %4204 = vmatprep.subr.mxu1 %v4955_v0  ;;  %4165 = vmatprep.subr.mxu0 %v4955_v0 }
 0xa60   :  { %4205 = vmatpush3.msra.mxu1 %v5849_v53 }
 0xa61   :  { %4206 = vmatprep.subr.mxu1 %v4955_v0 }
 0xa62   :  { %4207 = vmatpush3.msra.mxu1 %v5855_v56 }
 0xa63   :  { %4208 = vmatprep.subr.mxu1 %v4955_v0 }
 0xa64   :  { %4209 = vmatpush3.msra.mxu1 %v5861_v58 }
 0xa65   :  { %4210 = vmatprep.subr.mxu1 %v4955_v0 }
 0xa66   :  { %4211 = vmatpush3.msra.mxu1 %v5867_v60 }
 0xa67   :  { %4212 = vmatprep.subr.mxu1 %v4955_v0 }
 0xa68   :  { %4213 = vmatpush3.msra.mxu1 %v5873_v59 }
 0xa69   :  { %4214 = vmatprep.subr.mxu1 %v4955_v0 }
 0xa6a   :  { %4215 = vmatpush3.msra.mxu1 %v5879_v63 }
 0xa6b   :  { %4216 = vmatprep.subr.mxu1 %v4955_v0 }
 0xa6c   :  { %4217 = vmatpush3.msra.mxu1 %v5885_v4 }
 0xa6d   :  { %4218 = vmatprep.subr.mxu1 %v4955_v0 }
 0xa6e   :  { %4219 = vmatpush3.msra.mxu1 %v5891_v30 }
 0xa6f   :  { %4220 = vmatprep.subr.mxu1 %v4955_v0 }
 0xa70   :  { %4221 = vmatpush3.msra.mxu1 %v5897_v32 }
 0xa71   :  { %4222 = vmatprep.subr.mxu1 %v4955_v0 }
 0xa72   :  { %4223 = vmatpush3.msra.mxu1 %v5903_v33 }
 0xa73   :  { %4224 = vmatprep.subr.mxu1 %v4955_v0 }
 0xa74   :  { %4225 = vmatpush3.msra.mxu1 %v5909_v9 }
 0xa75   :  { %4226 = vmatprep.subr.mxu1 %v4955_v0 }
 0xa76   :  { %4227 = vmatpush3.msra.mxu1 %v5915_v34 }
 0xa77   :  { %4228 = vmatprep.subr.mxu1 %v4955_v0 }
 0xa78   :  { %4229 = vmatpush3.msra.mxu1 %v5921_v6 }
 0xa79   :  { %4230 = vmatprep.subr.mxu1 %v4955_v0 }
 0xa7a   :  { %4231 = vmatpush3.msra.mxu1 %v5927_v40 }
 0xa7b   :  { %4270 = vmatprep.subr.mxu1 %v4955_v0 }
 0xafb   :  { %v5978_v43 = vpop.f32.mrf.mxu0  ;;  %v1492_v7 = vpop.f32.mrf.mxu1 }
 0xafc   :  { %v5980_v45 = vadd.f32 %v1492_v7, %v234_v42  ;;  %v768_v42 = vadd.f32 %v5985_v1, %v5510_v57 }
 0xafd   :  { %v4059_v46 = vpop.f32.mrf.mxu0  ;;  %v4094_v48 = vpop.f32.mrf.mxu1 }
 0xb1b   :  { %v1687_v5 = vpop.f32.mrf.mxu1 }
 0xb1c   :  { %v1691_v8 = vadd.f32 %v1687_v5, %v442_v3 }
 0xb1d   :  { %v4164_v10 = vpop.f32.mrf.mxu1 }
 0xb1e   :  { %v2969_v11 = vmul.f32 -1.442695, %v1691_v8  ;;  %4757 = vtanh.f32 %v1691_v8 }
 0xb20   :  { %4759 = vpow2.f32 %v2969_v11 }
 0xb2b   :  { %v4758_v28 = vpop.eup %4757 }
 0xb2c   :  { %1701 = vrot.lane.b32.xlu0 %v4758_v28, %s4959_s27 }
 0xb2d   :  { %v4760_v52 = vpop.eup %4759 }
 0xb2e   :  { %v1695_v12 = vadd.f32 1.0, %v4760_v52 }
 0xb30   :  { %4761 = vrcp.f32 %v1695_v12 }
 0xb3d   :  { %v4762_v13 = vpop.eup %4761 }
 0xb3e   :  { %1699 = vrot.lane.b32.xlu1 %v4762_v13, %s4958_s24 }
 0xb42   :  { %1703 = vrot.lane.b32.xlu1 %v4762_v13, %s4957_s23 }
 0xb9e   :  { %v1702_v14 = vpop.permute.xlu0 %1701 }
 0xb9f   :  { %v1706_v31 = vmul.f32 %v4762_v13, %v1702_v14 }
 0xbb0   :  { %v1700_v15 = vpop.permute.xlu1 %1699 }
 0xbb1   :  { %v1705_v16 = vmul.f32 0.0, %v1700_v15 }
 0xbb3   :  { %v1707_v17 = vadd.f32 %v1706_v31, %v1705_v16  ;;  %v931_v16 = vadd.f32 %v5985_v1, %v5593_v2 }
 0xbb4   :  { %v1704_v19 = vpop.permute.xlu1 %1703 }
 0xbb5   :  { %4763 = vtanh.f32 %v1707_v17 }
 0xbc2   :  { %v4764_v18 = vpop.eup %4763 }
 0xbc3   :  { %v5992_v20 = vmul.f32 %v4764_v18, %v1704_v19 }
 0xbc5   :  { %4233 = vmatmul.mubr.msk.f32.vlgmr.msra.gmra.mxu1 %vm89_vm2, %v5992_v20 }
 0xbc6   :  { %4271 = vmatpush3.msra.mxu1 %v5837_v47  ;;  %4302 = vmatprep.mubr.msk.f32.mxu1 %vm4956_vm0, %v4955_v0 }
 0xbc7   :  { %4272 = vmatprep.subr.mxu1 %v4955_v0 }
 0xbc8   :  { %4273 = vmatpush3.msra.mxu1 %v5843_v49 }
 0xbc9   :  { %4274 = vmatprep.subr.mxu1 %v4955_v0 }
 0xbca   :  { %4275 = vmatpush3.msra.mxu1 %v5849_v53 }
 0xbcb   :  { %4276 = vmatprep.subr.mxu1 %v4955_v0 }
 0xbcc   :  { %4277 = vmatpush3.msra.mxu1 %v5855_v56 }
 0xbcd   :  { %4278 = vmatprep.subr.mxu1 %v4955_v0 }
 0xbce   :  { %4279 = vmatpush3.msra.mxu1 %v5861_v58 }
 0xbcf   :  { %4280 = vmatprep.subr.mxu1 %v4955_v0 }
 0xbd0   :  { %4281 = vmatpush3.msra.mxu1 %v5867_v60 }
 0xbd1   :  { %4282 = vmatprep.subr.mxu1 %v4955_v0 }
 0xbd2   :  { %4283 = vmatpush3.msra.mxu1 %v5873_v59 }
 0xbd3   :  { %4284 = vmatprep.subr.mxu1 %v4955_v0 }
 0xbd4   :  { %4285 = vmatpush3.msra.mxu1 %v5879_v63 }
 0xbd5   :  { %4286 = vmatprep.subr.mxu1 %v4955_v0 }
 0xbd6   :  { %4287 = vmatpush3.msra.mxu1 %v5885_v4 }
 0xbd7   :  { %4288 = vmatprep.subr.mxu1 %v4955_v0 }
 0xbd8   :  { %4289 = vmatpush3.msra.mxu1 %v5891_v30 }
 0xbd9   :  { %4290 = vmatprep.subr.mxu1 %v4955_v0 }
 0xbda   :  { %4291 = vmatpush3.msra.mxu1 %v5897_v32 }
 0xbdb   :  { %4292 = vmatprep.subr.mxu1 %v4955_v0 }
 0xbdc   :  { %4293 = vmatpush3.msra.mxu1 %v5903_v33 }
 0xbdd   :  { %4294 = vmatprep.subr.mxu1 %v4955_v0 }
 0xbde   :  { %4295 = vmatpush3.msra.mxu1 %v5909_v9 }
 0xbdf   :  { %4296 = vmatprep.subr.mxu1 %v4955_v0 }
 0xbe0   :  { %4297 = vmatpush3.msra.mxu1 %v5915_v34 }
 0xbe1   :  { %4298 = vmatprep.subr.mxu1 %v4955_v0 }
 0xbe2   :  { %4299 = vmatpush3.msra.mxu1 %v5921_v6 }
 0xbe3   :  { %4300 = vmatprep.subr.mxu1 %v4955_v0 }
 0xbe4   :  { %4301 = vmatpush3.msra.mxu1 %v5927_v40 }
 0xbe5   :  { %4340 = vmatprep.subr.mxu1 %v4955_v0 }
 0xc85   :  { %v1855_v25 = vpop.f32.mrf.mxu1 }
 0xc86   :  { %v1859_v50 = vadd.f32 %v1855_v25, %v605_v27 }
 0xc87   :  { %v4234_v51 = vpop.f32.mrf.mxu1 }
 0xc88   :  { %v2973_v21 = vmul.f32 -1.442695, %v1859_v50  ;;  %4765 = vtanh.f32 %v1859_v50 }
 0xc8a   :  { %4767 = vpow2.f32 %v2973_v21 }
 0xc95   :  { %v4766_v22 = vpop.eup %4765 }
 0xc96   :  { %1869 = vrot.lane.b32.xlu1 %v4766_v22, %s4959_s27 }
 0xc97   :  { %v4768_v23 = vpop.eup %4767 }
 0xc98   :  { %v1863_v55 = vadd.f32 1.0, %v4768_v23 }
 0xc9a   :  { %4769 = vrcp.f32 %v1863_v55 }
 0xca7   :  { %v4770_v24 = vpop.eup %4769 }
 0xca8   :  { %1867 = vrot.lane.b32.xlu0 %v4770_v24, %s4958_s24 }
 0xcac   :  { %1871 = vrot.lane.b32.xlu0 %v4770_v24, %s4957_s23 }
 0xd08   :  { %v1870_v29 = vpop.permute.xlu1 %1869 }
 0xd09   :  { %v1874_v62 = vmul.f32 %v4770_v24, %v1870_v29 }
 0xd1a   :  { %v1868_v35 = vpop.permute.xlu0 %1867 }
 0xd1b   :  { %v1873_v36 = vmul.f32 %v1868_v35, %v1707_v17 }
 0xd1d   :  { %v1875_v37 = vadd.f32 %v1874_v62, %v1873_v36  ;;  %v1094_v36 = vadd.f32 %v5985_v1, %v5713_v54 }
 0xd1e   :  { %v1872_v41 = vpop.permute.xlu0 %1871 }
 0xd1f   :  { %4771 = vtanh.f32 %v1875_v37 }
 0xd2c   :  { %v4772_v39 = vpop.eup %4771 }
 0xd2d   :  { %v6036_v44 = vmul.f32 %v4772_v39, %v1872_v41 }
 0xd2f   :  { %4303 = vmatmul.mubr.msk.f32.vlgmr.msra.gmra.mxu1 %vm89_vm2, %v6036_v44 }
 0xd30   :  { %4341 = vmatpush3.msra.mxu1 %v5837_v47  ;;  %4372 = vmatprep.mubr.msk.f32.mxu1 %vm4956_vm0, %v4955_v0 }
 0xd31   :  { %4342 = vmatprep.subr.mxu1 %v4955_v0 }
 0xd32   :  { %4343 = vmatpush3.msra.mxu1 %v5843_v49 }
 0xd33   :  { %4344 = vmatprep.subr.mxu1 %v4955_v0 }
 0xd34   :  { %4345 = vmatpush3.msra.mxu1 %v5849_v53 }
 0xd35   :  { %4346 = vmatprep.subr.mxu1 %v4955_v0 }
 0xd36   :  { %4347 = vmatpush3.msra.mxu1 %v5855_v56 }
 0xd37   :  { %4348 = vmatprep.subr.mxu1 %v4955_v0 }
 0xd38   :  { %4349 = vmatpush3.msra.mxu1 %v5861_v58 }
 0xd39   :  { %4350 = vmatprep.subr.mxu1 %v4955_v0 }
 0xd3a   :  { %4351 = vmatpush3.msra.mxu1 %v5867_v60 }
 0xd3b   :  { %4352 = vmatprep.subr.mxu1 %v4955_v0 }
 0xd3c   :  { %4353 = vmatpush3.msra.mxu1 %v5873_v59 }
 0xd3d   :  { %4354 = vmatprep.subr.mxu1 %v4955_v0 }
 0xd3e   :  { %4355 = vmatpush3.msra.mxu1 %v5879_v63 }
 0xd3f   :  { %4356 = vmatprep.subr.mxu1 %v4955_v0 }
 0xd40   :  { %4357 = vmatpush3.msra.mxu1 %v5885_v4 }
 0xd41   :  { %4358 = vmatprep.subr.mxu1 %v4955_v0 }
 0xd42   :  { %4359 = vmatpush3.msra.mxu1 %v5891_v30 }
 0xd43   :  { %4360 = vmatprep.subr.mxu1 %v4955_v0 }
 0xd44   :  { %4361 = vmatpush3.msra.mxu1 %v5897_v32 }
 0xd45   :  { %4362 = vmatprep.subr.mxu1 %v4955_v0 }
 0xd46   :  { %4363 = vmatpush3.msra.mxu1 %v5903_v33 }
 0xd47   :  { %4364 = vmatprep.subr.mxu1 %v4955_v0 }
 0xd48   :  { %4365 = vmatpush3.msra.mxu1 %v5909_v9 }
 0xd49   :  { %4366 = vmatprep.subr.mxu1 %v4955_v0 }
 0xd4a   :  { %4367 = vmatpush3.msra.mxu1 %v5915_v34 }
 0xd4b   :  { %4368 = vmatprep.subr.mxu1 %v4955_v0 }
 0xd4c   :  { %4369 = vmatpush3.msra.mxu1 %v5921_v6 }
 0xd4d   :  { %4370 = vmatprep.subr.mxu1 %v4955_v0 }
 0xd4e   :  { %4371 = vmatpush3.msra.mxu1 %v5927_v40 }
 0xd4f   :  { %4410 = vmatprep.subr.mxu1 %v4955_v0 }
 0xdef   :  { %v2018_v7 = vpop.f32.mrf.mxu1 }
 0xdf0   :  { %v2022_v46 = vadd.f32 %v2018_v7, %v768_v42 }
 0xdf1   :  { %v4304_v48 = vpop.f32.mrf.mxu1 }
 0xdf2   :  { %v2977_v3 = vmul.f32 -1.442695, %v2022_v46  ;;  %4773 = vtanh.f32 %v2022_v46 }
 0xdf4   :  { %4775 = vpow2.f32 %v2977_v3 }
 0xdff   :  { %v4774_v5 = vpop.eup %4773 }
 0xe00   :  { %2032 = vrot.lane.b32.xlu0 %v4774_v5, %s4959_s27 }
 0xe01   :  { %v4776_v8 = vpop.eup %4775 }
 0xe02   :  { %v2026_v10 = vadd.f32 1.0, %v4776_v8 }
 0xe04   :  { %4777 = vrcp.f32 %v2026_v10 }
 0xe11   :  { %v4778_v11 = vpop.eup %4777 }
 0xe12   :  { %2030 = vrot.lane.b32.xlu1 %v4778_v11, %s4958_s24 }
 0xe16   :  { %2034 = vrot.lane.b32.xlu1 %v4778_v11, %s4957_s23 }
 0xe72   :  { %v2033_v28 = vpop.permute.xlu0 %2032 }
 0xe73   :  { %v2037_v57 = vmul.f32 %v4778_v11, %v2033_v28 }
 0xe84   :  { %v2031_v52 = vpop.permute.xlu1 %2030 }
 0xe85   :  { %v2036_v12 = vmul.f32 %v2031_v52, %v1875_v37 }
 0xe87   :  { %v2038_v13 = vadd.f32 %v2037_v57, %v2036_v12  ;;  %v2967_v12 = vmul.f32 -1.442695, %v5980_v45 }
 0xe88   :  { %v2035_v15 = vpop.permute.xlu1 %2034 }
 0xe89   :  { %4779 = vtanh.f32 %v2038_v13 }
 0xe96   :  { %v4780_v14 = vpop.eup %4779 }
 0xe97   :  { %v6080_v31 = vmul.f32 %v4780_v14, %v2035_v15 }
 0xe99   :  { %4373 = vmatmul.mubr.msk.f32.vlgmr.msra.gmra.mxu1 %vm89_vm2, %v6080_v31 }
 0xe9a   :  { %4411 = vmatpush3.msra.mxu1 %v5837_v47  ;;  %4442 = vmatprep.mubr.msk.f32.mxu1 %vm4956_vm0, %v4955_v0 }
 0xe9b   :  { %4412 = vmatprep.subr.mxu1 %v4955_v0 }
 0xe9c   :  { %4413 = vmatpush3.msra.mxu1 %v5843_v49 }
 0xe9d   :  { %4414 = vmatprep.subr.mxu1 %v4955_v0 }
 0xe9e   :  { %4415 = vmatpush3.msra.mxu1 %v5849_v53 }
 0xe9f   :  { %4416 = vmatprep.subr.mxu1 %v4955_v0 }
 0xea0   :  { %4417 = vmatpush3.msra.mxu1 %v5855_v56 }
 0xea1   :  { %4418 = vmatprep.subr.mxu1 %v4955_v0 }
 0xea2   :  { %4419 = vmatpush3.msra.mxu1 %v5861_v58 }
 0xea3   :  { %4420 = vmatprep.subr.mxu1 %v4955_v0 }
 0xea4   :  { %4421 = vmatpush3.msra.mxu1 %v5867_v60 }
 0xea5   :  { %4422 = vmatprep.subr.mxu1 %v4955_v0 }
 0xea6   :  { %4423 = vmatpush3.msra.mxu1 %v5873_v59 }
 0xea7   :  { %4424 = vmatprep.subr.mxu1 %v4955_v0 }
 0xea8   :  { %4425 = vmatpush3.msra.mxu1 %v5879_v63 }
 0xea9   :  { %4426 = vmatprep.subr.mxu1 %v4955_v0 }
 0xeaa   :  { %4427 = vmatpush3.msra.mxu1 %v5885_v4 }
 0xeab   :  { %4428 = vmatprep.subr.mxu1 %v4955_v0 }
 0xeac   :  { %4429 = vmatpush3.msra.mxu1 %v5891_v30 }
 0xead   :  { %4430 = vmatprep.subr.mxu1 %v4955_v0 }
 0xeae   :  { %4431 = vmatpush3.msra.mxu1 %v5897_v32 }
 0xeaf   :  { %4432 = vmatprep.subr.mxu1 %v4955_v0 }
 0xeb0   :  { %4433 = vmatpush3.msra.mxu1 %v5903_v33 }
 0xeb1   :  { %4434 = vmatprep.subr.mxu1 %v4955_v0 }
 0xeb2   :  { %4435 = vmatpush3.msra.mxu1 %v5909_v9 }
 0xeb3   :  { %4436 = vmatprep.subr.mxu1 %v4955_v0 }
 0xeb4   :  { %4437 = vmatpush3.msra.mxu1 %v5915_v34 }
 0xeb5   :  { %4438 = vmatprep.subr.mxu1 %v4955_v0 }
 0xeb6   :  { %4439 = vmatpush3.msra.mxu1 %v5921_v6 }
 0xeb7   :  { %4440 = vmatprep.subr.mxu1 %v4955_v0 }
 0xeb8   :  { %4441 = vmatpush3.msra.mxu1 %v5927_v40 }
 0xeb9   :  { %4480 = vmatprep.subr.mxu1 %v4955_v0 }
 0xf59   :  { %v2181_v17 = vpop.f32.mrf.mxu1 }
 0xf5a   :  { %v2185_v18 = vadd.f32 %v2181_v17, %v931_v16 }
 0xf5b   :  { %v4374_v19 = vpop.f32.mrf.mxu1 }
 0xf5c   :  { %v2981_v27 = vmul.f32 -1.442695, %v2185_v18  ;;  %4781 = vtanh.f32 %v2185_v18 }
 0xf5e   :  { %4783 = vpow2.f32 %v2981_v27 }
 0xf69   :  { %v4782_v25 = vpop.eup %4781 }
 0xf6a   :  { %2195 = vrot.lane.b32.xlu1 %v4782_v25, %s4959_s27 }
 0xf6b   :  { %v4784_v50 = vpop.eup %4783 }
 0xf6c   :  { %v2189_v51 = vadd.f32 1.0, %v4784_v50 }
 0xf6e   :  { %4785 = vrcp.f32 %v2189_v51 }
 0xf7b   :  { %v4786_v21 = vpop.eup %4785 }
 0xf7c   :  { %2193 = vrot.lane.b32.xlu0 %v4786_v21, %s4958_s24 }
 0xf80   :  { %2197 = vrot.lane.b32.xlu0 %v4786_v21, %s4957_s23 }
 0xfdc   :  { %v2196_v22 = vpop.permute.xlu1 %2195 }
 0xfdd   :  { %v2200_v2 = vmul.f32 %v4786_v21, %v2196_v22 }
 0xfee   :  { %v2194_v23 = vpop.permute.xlu0 %2193 }
 0xfef   :  { %v2199_v55 = vmul.f32 %v2194_v23, %v2038_v13  ;;  %v1257_v13 = vadd.f32 %v5985_v1, %v5828_v26 }
 0xff1   :  { %v2201_v24 = vadd.f32 %v2200_v2, %v2199_v55 }
 0xff2   :  { %v2198_v35 = vpop.permute.xlu0 %2197 }
 0xff3   :  { %4787 = vtanh.f32 %v2201_v24 }
0x1000   :  { %v4788_v29 = vpop.eup %4787 }
0x1001   :  { %v6124_v62 = vmul.f32 %v4788_v29, %v2198_v35 }
0x1003   :  { %4443 = vmatmul.mubr.msk.f32.vlgmr.msra.gmra.mxu1 %vm89_vm2, %v6124_v62 }
0x1004   :  { %4481 = vmatpush3.msra.mxu1 %v5837_v47  ;;  %4512 = vmatprep.mubr.msk.f32.mxu1 %vm4956_vm0, %v4955_v0 }
0x1005   :  { %4482 = vmatprep.subr.mxu1 %v4955_v0 }
0x1006   :  { %4483 = vmatpush3.msra.mxu1 %v5843_v49 }
0x1007   :  { %4484 = vmatprep.subr.mxu1 %v4955_v0 }
0x1008   :  { %4485 = vmatpush3.msra.mxu1 %v5849_v53 }
0x1009   :  { %4486 = vmatprep.subr.mxu1 %v4955_v0 }
0x100a   :  { %4487 = vmatpush3.msra.mxu1 %v5855_v56 }
0x100b   :  { %4488 = vmatprep.subr.mxu1 %v4955_v0 }
0x100c   :  { %4489 = vmatpush3.msra.mxu1 %v5861_v58 }
0x100d   :  { %4490 = vmatprep.subr.mxu1 %v4955_v0 }
0x100e   :  { %4491 = vmatpush3.msra.mxu1 %v5867_v60 }
0x100f   :  { %4492 = vmatprep.subr.mxu1 %v4955_v0 }
0x1010   :  { %4493 = vmatpush3.msra.mxu1 %v5873_v59 }
0x1011   :  { %4494 = vmatprep.subr.mxu1 %v4955_v0 }
0x1012   :  { %4495 = vmatpush3.msra.mxu1 %v5879_v63 }
0x1013   :  { %4496 = vmatprep.subr.mxu1 %v4955_v0 }
0x1014   :  { %4497 = vmatpush3.msra.mxu1 %v5885_v4 }
0x1015   :  { %4498 = vmatprep.subr.mxu1 %v4955_v0 }
0x1016   :  { %4499 = vmatpush3.msra.mxu1 %v5891_v30 }
0x1017   :  { %4500 = vmatprep.subr.mxu1 %v4955_v0 }
0x1018   :  { %4501 = vmatpush3.msra.mxu1 %v5897_v32 }
0x1019   :  { %4502 = vmatprep.subr.mxu1 %v4955_v0 }
0x101a   :  { %4503 = vmatpush3.msra.mxu1 %v5903_v33 }
0x101b   :  { %4504 = vmatprep.subr.mxu1 %v4955_v0 }
0x101c   :  { %4505 = vmatpush3.msra.mxu1 %v5909_v9 }
0x101d   :  { %4506 = vmatprep.subr.mxu1 %v4955_v0 }
0x101e   :  { %4507 = vmatpush3.msra.mxu1 %v5915_v34 }
0x101f   :  { %4508 = vmatprep.subr.mxu1 %v4955_v0 }
0x1020   :  { %4509 = vmatpush3.msra.mxu1 %v5921_v6 }
0x1021   :  { %4510 = vmatprep.subr.mxu1 %v4955_v0 }
0x1022   :  { %4511 = vmatpush3.msra.mxu1 %v5927_v40 }
0x1023   :  { %4550 = vmatprep.subr.mxu1 %v4955_v0 }
0x10c3   :  { %v2344_v37 = vpop.f32.mrf.mxu1 }
0x10c4   :  { %v2348_v39 = vadd.f32 %v2344_v37, %v1094_v36 }
0x10c5   :  { %v4444_v41 = vpop.f32.mrf.mxu1 }
0x10c6   :  { %v2985_v42 = vmul.f32 -1.442695, %v2348_v39  ;;  %4789 = vtanh.f32 %v2348_v39 }
0x10c8   :  { %4791 = vpow2.f32 %v2985_v42  ;;  %v6277_v42 = vld [vmem:[#allocation8 + $0x78] sm:$0xff] }
0x10d3   :  { %v4790_v7 = vpop.eup %4789 }
0x10d4   :  { %2358 = vrot.lane.b32.xlu0 %v4790_v7, %s4959_s27  ;;  %v6287_v7 = vld [vmem:[#allocation8 + $0x68] sm:$0xff] }
0x10d5   :  { %v4792_v46 = vpop.eup %4791 }
0x10d6   :  { %v2352_v48 = vadd.f32 1.0, %v4792_v46  ;;  %v6291_v46 = vld [vmem:[#allocation8 + $0x60] sm:$0xff] }
0x10d8   :  { %4793 = vrcp.f32 %v2352_v48  ;;  %v6295_v48 = vld [vmem:[#allocation8 + $0x58] sm:$0xff] }
0x10e5   :  { %v4794_v3 = vpop.eup %4793 }
0x10e6   :  { %2356 = vrot.lane.b32.xlu1 %v4794_v3, %s4958_s24 }
0x10ea   :  { %2360 = vrot.lane.b32.xlu1 %v4794_v3, %s4957_s23 }
0x1146   :  { %v2359_v5 = vpop.permute.xlu0 %2358 }
0x1147   :  { %v2363_v54 = vmul.f32 %v4794_v3, %v2359_v5  ;;  %v6299_v3 = vld [vmem:[#allocation8 + $0x50] sm:$0xff]  ;;  %v6303_v5 = vld [vmem:[#allocation8 + $0x48] sm:$0xff] }
0x1158   :  { %v2357_v8 = vpop.permute.xlu1 %2356 }
0x1159   :  { %v2362_v10 = vmul.f32 %v2357_v8, %v2201_v24 }
0x115b   :  { %v6168_v11 = vadd.f32 %v2363_v54, %v2362_v10  ;;  %v6307_v10 = vld [vmem:[#allocation8 + $0x40] sm:$0xff] }
0x115c   :  { %v2361_v52 = vpop.permute.xlu1 %2360 }
0x115d   :  { %4795 = vtanh.f32 %v6168_v11 }
0x115e   :  { %4797 = vpow2.f32 %v2967_v12  ;;  %v6324_v12 = vld [vmem:[#allocation8 + $0x28] sm:$0xff] }
0x116a   :  { %v4796_v28 = vpop.eup %4795 }
0x116b   :  { %v6171_v57 = vmul.f32 %v4796_v28, %v2361_v52  ;;  %v4798_v14 = vpop.eup %4797  ;;  %v6316_v28 = vld [vmem:[#allocation8 + $0x38] sm:$0xff]  ;;  %v6320_v52 = vld [vmem:[#allocation8 + $0x30] sm:$0xff] }
0x116c   :  { %v1500_v18 = vadd.f32 1.0, %v4798_v14  ;;  %v6332_v14 = vld [vmem:[#allocation8 + $0x18] sm:$0xff] }
0x116d   :  { %4513 = vmatmul.mubr.msk.f32.vlgmr.msra.gmra.mxu1 %vm89_vm2, %v6171_v57 }
0x116e   :  { %4551 = vmatpush3.msra.mxu1 %v5837_v47  ;;  %4582 = vmatprep.mubr.msk.f32.mxu1 %vm4956_vm0, %v4955_v0 }
0x116f   :  { %4552 = vmatprep.subr.mxu1 %v4955_v0 }
0x1170   :  { %4553 = vmatpush3.msra.mxu1 %v5843_v49 }
0x1171   :  { %4554 = vmatprep.subr.mxu1 %v4955_v0 }
0x1172   :  { %4555 = vmatpush3.msra.mxu1 %v5849_v53 }
0x1173   :  { %4556 = vmatprep.subr.mxu1 %v4955_v0 }
0x1174   :  { %4557 = vmatpush3.msra.mxu1 %v5855_v56 }
0x1175   :  { %4558 = vmatprep.subr.mxu1 %v4955_v0 }
0x1176   :  { %4559 = vmatpush3.msra.mxu1 %v5861_v58 }
0x1177   :  { %4560 = vmatprep.subr.mxu1 %v4955_v0 }
0x1178   :  { %4561 = vmatpush3.msra.mxu1 %v5867_v60 }
0x1179   :  { %4562 = vmatprep.subr.mxu1 %v4955_v0 }
0x117a   :  { %4563 = vmatpush3.msra.mxu1 %v5873_v59 }
0x117b   :  { %4564 = vmatprep.subr.mxu1 %v4955_v0 }
0x117c   :  { %4565 = vmatpush3.msra.mxu1 %v5879_v63 }
0x117d   :  { %4566 = vmatprep.subr.mxu1 %v4955_v0 }
0x117e   :  { %4567 = vmatpush3.msra.mxu1 %v5885_v4 }
0x117f   :  { %4568 = vmatprep.subr.mxu1 %v4955_v0 }
0x1180   :  { %4569 = vmatpush3.msra.mxu1 %v5891_v30 }
0x1181   :  { %4570 = vmatprep.subr.mxu1 %v4955_v0 }
0x1182   :  { %4571 = vmatpush3.msra.mxu1 %v5897_v32 }
0x1183   :  { %4572 = vmatprep.subr.mxu1 %v4955_v0 }
0x1184   :  { %4573 = vmatpush3.msra.mxu1 %v5903_v33 }
0x1185   :  { %4574 = vmatprep.subr.mxu1 %v4955_v0 }
0x1186   :  { %4575 = vmatpush3.msra.mxu1 %v5909_v9 }
0x1187   :  { %4576 = vmatprep.subr.mxu1 %v4955_v0 }
0x1188   :  { %4577 = vmatpush3.msra.mxu1 %v5915_v34 }
0x1189   :  { %4578 = vmatprep.subr.mxu1 %v4955_v0 }
0x118a   :  { %4579 = vmatpush3.msra.mxu1 %v5921_v6 }
0x118b   :  { %4580 = vmatprep.subr.mxu1 %v4955_v0 }
0x118c   :  { %4581 = vmatpush3.msra.mxu1 %v5927_v40 }
0x118d   :  { %4620 = vmatprep.subr.mxu1 %v4955_v0 }
0x122d   :  { %v2507_v15 = vpop.f32.mrf.mxu1 }
0x122e   :  { %v2511_v16 = vadd.f32 %v2507_v15, %v1257_v13  ;;  %v6328_v13 = vld [vmem:[#allocation8 + $0x20] sm:$0xff]  ;;  %v6336_v15 = vld [vmem:[#allocation8 + $0x10] sm:$0xff] }
0x122f   :  { %v4514_v17 = vpop.f32.mrf.mxu1 }
0x1230   :  { %v2989_v19 = vmul.f32 -1.442695, %v2511_v16  ;;  %4799 = vtanh.f32 %v2511_v16  ;;  %v6340_v16 = vld [vmem:[#allocation8 + $0x8] sm:$0xff]  ;;  %v6344_v17 = vld [vmem:[#allocation8] sm:$0xff] }
0x1232   :  { %4801 = vpow2.f32 %v2989_v19 }
0x1233   :  { %4803 = vrcp.f32 %v1500_v18 }
0x123d   :  { %v4800_v27 = vpop.eup %4799 }
0x123e   :  { %2521 = vrot.lane.b32.xlu1 %v4800_v27, %s4959_s27 }
0x123f   :  { %v4802_v25 = vpop.eup %4801 }
0x1240   :  { %v2515_v50 = vadd.f32 1.0, %v4802_v25  ;;  %v6214_v51 = vpop.eup %4803 }
0x1242   :  { %4805 = vrcp.f32 %v2515_v50  ;;  %1504 = vrot.lane.b32.xlu1 %v6214_v51, %s4958_s24  ;;  %v6576_v50 = vld [vmem:[%s6662_s8] ss:$0 sm:$0xff] }
0x1243   :  { %4807 = vtanh.f32 %v5980_v45 }
0x124f   :  { %v4806_v26 = vpop.eup %4805 }
0x1250   :  { %2519 = vrot.lane.b32.xlu0 %v4806_v26, %s4958_s24  ;;  %v4808_v21 = vpop.eup %4807 }
0x1254   :  { %2523 = vrot.lane.b32.xlu0 %v4806_v26, %s4957_s23 }
0x1258   :  { %1506 = vrot.lane.b32.xlu0 %v4808_v21, %s4959_s27 }
0x12b0   :  { %v2522_v22 = vpop.permute.xlu1 %2521 }
0x12b1   :  { %v2526_v2 = vmul.f32 %v4806_v26, %v2522_v22 }
0x12c2   :  { %v2520_v23 = vpop.permute.xlu0 %2519 }
0x12c3   :  { %v2525_v55 = vmul.f32 %v2520_v23, %v6168_v11 }
0x12c5   :  { %v6223_v24 = vadd.f32 %v2526_v2, %v2525_v55 }
0x12c6   :  { %v2524_v35 = vpop.permute.xlu0 %2523 }
0x12c7   :  { %4809 = vtanh.f32 %v6223_v24 }
0x12d4   :  { %v4810_v29 = vpop.eup %4809 }
0x12d5   :  { %v6226_v45 = vmul.f32 %v4810_v29, %v2524_v35 }
0x12d7   :  { %4583 = vmatmul.mubr.msk.f32.vlgmr.msra.gmra.mxu1 %vm89_vm2, %v6226_v45 }
0x12d8   :  { %4621 = vmatpush3.msra.mxu1 %v5837_v47  ;;  %4652 = vmatprep.mubr.msk.f32.mxu1 %vm4956_vm0, %v4955_v0  ;;  %v1420_v47 = vadd.f32 %v5985_v1, %v5978_v43 }
0x12d9   :  { %4622 = vmatprep.subr.mxu1 %v4955_v0 }
0x12da   :  { %4623 = vmatpush3.msra.mxu1 %v5843_v49 }
0x12db   :  { %4624 = vmatprep.subr.mxu1 %v4955_v0 }
0x12dc   :  { %4625 = vmatpush3.msra.mxu1 %v5849_v53 }
0x12dd   :  { %4626 = vmatprep.subr.mxu1 %v4955_v0 }
0x12de   :  { %4627 = vmatpush3.msra.mxu1 %v5855_v56 }
0x12df   :  { %4628 = vmatprep.subr.mxu1 %v4955_v0 }
0x12e0   :  { %4629 = vmatpush3.msra.mxu1 %v5861_v58 }
0x12e1   :  { %4630 = vmatprep.subr.mxu1 %v4955_v0 }
0x12e2   :  { %4631 = vmatpush3.msra.mxu1 %v5867_v60 }
0x12e3   :  { %4632 = vmatprep.subr.mxu1 %v4955_v0 }
0x12e4   :  { %4633 = vmatpush3.msra.mxu1 %v5873_v59 }
0x12e5   :  { %4634 = vmatprep.subr.mxu1 %v4955_v0 }
0x12e6   :  { %4635 = vmatpush3.msra.mxu1 %v5879_v63 }
0x12e7   :  { %4636 = vmatprep.subr.mxu1 %v4955_v0 }
0x12e8   :  { %4637 = vmatpush3.msra.mxu1 %v5885_v4 }
0x12e9   :  { %4638 = vmatprep.subr.mxu1 %v4955_v0 }
0x12ea   :  { %4639 = vmatpush3.msra.mxu1 %v5891_v30  ;;  %v1507_v30 = vpop.permute.xlu0 %1506 }
0x12eb   :  { %4640 = vmatprep.subr.mxu1 %v4955_v0 }
0x12ec   :  { %4641 = vmatpush3.msra.mxu1 %v5897_v32  ;;  %v1505_v32 = vpop.permute.xlu1 %1504 }
0x12ed   :  { %4642 = vmatprep.subr.mxu1 %v4955_v0 }
0x12ee   :  { %4643 = vmatpush3.msra.mxu1 %v5903_v33  ;;  %v1511_v33 = vmul.f32 %v6214_v51, %v1507_v30 }
0x12ef   :  { %4644 = vmatprep.subr.mxu1 %v4955_v0 }
0x12f0   :  { %4645 = vmatpush3.msra.mxu1 %v5909_v9  ;;  %v1510_v9 = vmul.f32 %v1505_v32, %v5834_v38  ;;  %v6281_v38 = vld [vmem:[#allocation8 + $0x70] sm:$0xff] }
0x12f1   :  { %4646 = vmatprep.subr.mxu1 %v4955_v0 }
0x12f2   :  { %4647 = vmatpush3.msra.mxu1 %v5915_v34  ;;  %v1512_v34 = vadd.f32 %v1511_v33, %v1510_v9 }
0x12f3   :  { %4648 = vmatprep.subr.mxu1 %v4955_v0 }
0x12f4   :  { %4649 = vmatpush3.msra.mxu1 %v5921_v6 }
0x12f5   :  { %4650 = vmatprep.subr.mxu1 %v4955_v0 }
0x12f6   :  { %4651 = vmatpush3.msra.mxu1 %v5927_v40 }
0x1397   :  { %v2670_v49 = vpop.f32.mrf.mxu1 }
0x1398   :  { %v2674_v53 = vadd.f32 %v2670_v49, %v1420_v47 }
0x1399   :  { %v4584_v56 = vpop.f32.mrf.mxu1 }
0x139a   :  { %v2993_v58 = vmul.f32 -1.442695, %v2674_v53  ;;  %4811 = vtanh.f32 %v2674_v53 }
0x139c   :  { %4813 = vpow2.f32 %v2993_v58 }
0x13a7   :  { %v4812_v60 = vpop.eup %4811 }
0x13a8   :  { %2684 = vrot.lane.b32.xlu0 %v4812_v60, %s4959_s27 }
0x13a9   :  { %v4814_v59 = vpop.eup %4813 }
0x13aa   :  { %v2678_v63 = vadd.f32 1.0, %v4814_v59 }
0x13ac   :  { %4815 = vrcp.f32 %v2678_v63 }
0x13ad   :  { %4817 = vtanh.f32 %v1512_v34 }
0x13b9   :  { %v4816_v4 = vpop.eup %4815 }
0x13ba   :  { %2686 = vrot.lane.b32.xlu0 %v4816_v4, %s4957_s23  ;;  %2682 = vrot.lane.b32.xlu1 %v4816_v4, %s4958_s24  ;;  %v4818_v37 = vpop.eup %4817 }
0x13be   :  { %1508 = vrot.lane.b32.xlu1 %v6214_v51, %s4957_s23 }
0x141a   :  { %v2685_v6 = vpop.permute.xlu0 %2684 }
0x141b   :  { %v2689_v43 = vmul.f32 %v4816_v4, %v2685_v6 }
0x142c   :  { %v2683_v40 = vpop.permute.xlu1 %2682  ;;  %v2687_v54 = vpop.permute.xlu0 %2686 }
0x142d   :  { %v2688_v1 = vmul.f32 %v2683_v40, %v6223_v24 }
0x142f   :  { %v6274_v36 = vadd.f32 %v2689_v43, %v2688_v1 }
0x1430   :  { %v1509_v39 = vpop.permute.xlu1 %1508 }
0x1431   :  { %4819 = vtanh.f32 %v6274_v36  ;;  %v1514_v41 = vmul.f32 %v4818_v37, %v1509_v39 }
0x1433   :  { %4128 = vmatmul.mubr.msk.f32.vlgmr.msra.gmra.mxu0 %vm89_vm2, %v1514_v41 }
0x1434   :  { %4166 = vmatpush3.msra.mxu0 %v6277_v42  ;;  %4197 = vmatprep.mubr.msk.f32.mxu0 %vm4956_vm0, %v4955_v0 }
0x1435   :  { %4167 = vmatprep.subr.mxu0 %v4955_v0 }
0x1436   :  { %4168 = vmatpush3.msra.mxu0 %v6281_v38 }
0x1437   :  { %4169 = vmatprep.subr.mxu0 %v4955_v0 }
0x1438   :  { %4170 = vmatpush3.msra.mxu0 %v6287_v7 }
0x1439   :  { %4171 = vmatprep.subr.mxu0 %v4955_v0 }
0x143a   :  { %4172 = vmatpush3.msra.mxu0 %v6291_v46 }
0x143b   :  { %4173 = vmatprep.subr.mxu0 %v4955_v0 }
0x143c   :  { %4174 = vmatpush3.msra.mxu0 %v6295_v48 }
0x143d   :  { %4175 = vmatprep.subr.mxu0 %v4955_v0 }
0x143e   :  { %v4820_v8 = vpop.eup %4819  ;;  %4176 = vmatpush3.msra.mxu0 %v6299_v3 }
0x143f   :  { %4177 = vmatprep.subr.mxu0 %v4955_v0  ;;  %v6309_v11 = vmul.f32 %v4820_v8, %v2687_v54 }
0x1440   :  { %4178 = vmatpush3.msra.mxu0 %v6303_v5 }
0x1441   :  { %4179 = vmatprep.subr.mxu0 %v4955_v0  ;;  %4653 = vmatmul.mubr.msk.f32.vlgmr.msra.gmra.mxu1 %vm89_vm2, %v6309_v11 }
0x1442   :  { %4180 = vmatpush3.msra.mxu0 %v6307_v10 }
0x1443   :  { %4181 = vmatprep.subr.mxu0 %v4955_v0 }
0x1444   :  { %4182 = vmatpush3.msra.mxu0 %v6316_v28 }
0x1445   :  { %4183 = vmatprep.subr.mxu0 %v4955_v0 }
0x1446   :  { %4184 = vmatpush3.msra.mxu0 %v6320_v52 }
0x1447   :  { %4185 = vmatprep.subr.mxu0 %v4955_v0 }
0x1448   :  { %4186 = vmatpush3.msra.mxu0 %v6324_v12 }
0x1449   :  { %4187 = vmatprep.subr.mxu0 %v4955_v0 }
0x144a   :  { %4188 = vmatpush3.msra.mxu0 %v6328_v13 }
0x144b   :  { %4189 = vmatprep.subr.mxu0 %v4955_v0 }
0x144c   :  { %4190 = vmatpush3.msra.mxu0 %v6332_v14 }
0x144d   :  { %4191 = vmatprep.subr.mxu0 %v4955_v0 }
0x144e   :  { %4192 = vmatpush3.msra.mxu0 %v6336_v15 }
0x144f   :  { %4193 = vmatprep.subr.mxu0 %v4955_v0 }
0x1450   :  { %4194 = vmatpush3.msra.mxu0 %v6340_v16 }
0x1451   :  { %4195 = vmatprep.subr.mxu0 %v4955_v0 }
0x1452   :  { %4196 = vmatpush3.msra.mxu0 %v6344_v17 }
0x1453   :  { %4198 = vmatmul.mubr.msk.f32.vlgmr.msra.gmra.mxu0 %vm89_vm2, %v5992_v20  ;;  %4235 = vmatprep.subr.mxu0 %v4955_v0 }
0x1454   :  { %4236 = vmatpush3.msra.mxu0 %v6277_v42  ;;  %4267 = vmatprep.mubr.msk.f32.mxu0 %vm4956_vm0, %v4955_v0 }
0x1455   :  { %4237 = vmatprep.subr.mxu0 %v4955_v0 }
0x1456   :  { %4238 = vmatpush3.msra.mxu0 %v6281_v38 }
0x1457   :  { %4239 = vmatprep.subr.mxu0 %v4955_v0 }
0x1458   :  { %4240 = vmatpush3.msra.mxu0 %v6287_v7 }
0x1459   :  { %4241 = vmatprep.subr.mxu0 %v4955_v0 }
0x145a   :  { %4242 = vmatpush3.msra.mxu0 %v6291_v46 }
0x145b   :  { %4243 = vmatprep.subr.mxu0 %v4955_v0 }
0x145c   :  { %4244 = vmatpush3.msra.mxu0 %v6295_v48 }
0x145d   :  { %4245 = vmatprep.subr.mxu0 %v4955_v0 }
0x145e   :  { %4246 = vmatpush3.msra.mxu0 %v6299_v3 }
0x145f   :  { %4247 = vmatprep.subr.mxu0 %v4955_v0 }
0x1460   :  { %4248 = vmatpush3.msra.mxu0 %v6303_v5 }
0x1461   :  { %4249 = vmatprep.subr.mxu0 %v4955_v0 }
0x1462   :  { %4250 = vmatpush3.msra.mxu0 %v6307_v10 }
0x1463   :  { %4251 = vmatprep.subr.mxu0 %v4955_v0 }
0x1464   :  { %4252 = vmatpush3.msra.mxu0 %v6316_v28 }
0x1465   :  { %4253 = vmatprep.subr.mxu0 %v4955_v0 }
0x1466   :  { %4254 = vmatpush3.msra.mxu0 %v6320_v52 }
0x1467   :  { %4255 = vmatprep.subr.mxu0 %v4955_v0 }
0x1468   :  { %4256 = vmatpush3.msra.mxu0 %v6324_v12 }
0x1469   :  { %4257 = vmatprep.subr.mxu0 %v4955_v0 }
0x146a   :  { %4258 = vmatpush3.msra.mxu0 %v6328_v13 }
0x146b   :  { %4259 = vmatprep.subr.mxu0 %v4955_v0 }
0x146c   :  { %4260 = vmatpush3.msra.mxu0 %v6332_v14 }
0x146d   :  { %4261 = vmatprep.subr.mxu0 %v4955_v0 }
0x146e   :  { %4262 = vmatpush3.msra.mxu0 %v6336_v15 }
0x146f   :  { %4263 = vmatprep.subr.mxu0 %v4955_v0 }
0x1470   :  { %4264 = vmatpush3.msra.mxu0 %v6340_v16 }
0x1471   :  { %4265 = vmatprep.subr.mxu0 %v4955_v0 }
0x1472   :  { %4266 = vmatpush3.msra.mxu0 %v6344_v17 }
0x1473   :  { %4268 = vmatmul.mubr.msk.f32.vlgmr.msra.gmra.mxu0 %vm89_vm2, %v6036_v44  ;;  %4305 = vmatprep.subr.mxu0 %v4955_v0 }
0x1474   :  { %4306 = vmatpush3.msra.mxu0 %v6277_v42  ;;  %4337 = vmatprep.mubr.msk.f32.mxu0 %vm4956_vm0, %v4955_v0 }
0x1475   :  { %4307 = vmatprep.subr.mxu0 %v4955_v0 }
0x1476   :  { %4308 = vmatpush3.msra.mxu0 %v6281_v38 }
0x1477   :  { %4309 = vmatprep.subr.mxu0 %v4955_v0 }
0x1478   :  { %4310 = vmatpush3.msra.mxu0 %v6287_v7 }
0x1479   :  { %4311 = vmatprep.subr.mxu0 %v4955_v0 }
0x147a   :  { %4312 = vmatpush3.msra.mxu0 %v6291_v46 }
0x147b   :  { %4313 = vmatprep.subr.mxu0 %v4955_v0 }
0x147c   :  { %4314 = vmatpush3.msra.mxu0 %v6295_v48 }
0x147d   :  { %4315 = vmatprep.subr.mxu0 %v4955_v0 }
0x147e   :  { %4316 = vmatpush3.msra.mxu0 %v6299_v3 }
0x147f   :  { %4317 = vmatprep.subr.mxu0 %v4955_v0 }
0x1480   :  { %4318 = vmatpush3.msra.mxu0 %v6303_v5 }
0x1481   :  { %4319 = vmatprep.subr.mxu0 %v4955_v0 }
0x1482   :  { %4320 = vmatpush3.msra.mxu0 %v6307_v10 }
0x1483   :  { %4321 = vmatprep.subr.mxu0 %v4955_v0 }
0x1484   :  { %4322 = vmatpush3.msra.mxu0 %v6316_v28 }
0x1485   :  { %4323 = vmatprep.subr.mxu0 %v4955_v0 }
0x1486   :  { %4324 = vmatpush3.msra.mxu0 %v6320_v52 }
0x1487   :  { %4325 = vmatprep.subr.mxu0 %v4955_v0 }
0x1488   :  { %4326 = vmatpush3.msra.mxu0 %v6324_v12 }
0x1489   :  { %4327 = vmatprep.subr.mxu0 %v4955_v0 }
0x148a   :  { %4328 = vmatpush3.msra.mxu0 %v6328_v13 }
0x148b   :  { %4329 = vmatprep.subr.mxu0 %v4955_v0 }
0x148c   :  { %4330 = vmatpush3.msra.mxu0 %v6332_v14 }
0x148d   :  { %4331 = vmatprep.subr.mxu0 %v4955_v0 }
0x148e   :  { %4332 = vmatpush3.msra.mxu0 %v6336_v15 }
0x148f   :  { %4333 = vmatprep.subr.mxu0 %v4955_v0 }
0x1490   :  { %4334 = vmatpush3.msra.mxu0 %v6340_v16 }
0x1491   :  { %4335 = vmatprep.subr.mxu0 %v4955_v0 }
0x1492   :  { %4336 = vmatpush3.msra.mxu0 %v6344_v17 }
0x1493   :  { %4338 = vmatmul.mubr.msk.f32.vlgmr.msra.gmra.mxu0 %vm89_vm2, %v6080_v31  ;;  %4375 = vmatprep.subr.mxu0 %v4955_v0  ;;  %v4862_v31 = vld [vmem:[%s6660_s6] ss:$0 sm:$0xff] }
0x1494   :  { %4376 = vmatpush3.msra.mxu0 %v6277_v42  ;;  %4407 = vmatprep.mubr.msk.f32.mxu0 %vm4956_vm0, %v4955_v0 }
0x1495   :  { %4377 = vmatprep.subr.mxu0 %v4955_v0 }
0x1496   :  { %4378 = vmatpush3.msra.mxu0 %v6281_v38 }
0x1497   :  { %4379 = vmatprep.subr.mxu0 %v4955_v0 }
0x1498   :  { %4380 = vmatpush3.msra.mxu0 %v6287_v7 }
0x1499   :  { %4381 = vmatprep.subr.mxu0 %v4955_v0 }
0x149a   :  { %4382 = vmatpush3.msra.mxu0 %v6291_v46 }
0x149b   :  { %4383 = vmatprep.subr.mxu0 %v4955_v0 }
0x149c   :  { %4384 = vmatpush3.msra.mxu0 %v6295_v48 }
0x149d   :  { %4385 = vmatprep.subr.mxu0 %v4955_v0 }
0x149e   :  { %4386 = vmatpush3.msra.mxu0 %v6299_v3 }
0x149f   :  { %4387 = vmatprep.subr.mxu0 %v4955_v0 }
0x14a0   :  { %4388 = vmatpush3.msra.mxu0 %v6303_v5 }
0x14a1   :  { %4389 = vmatprep.subr.mxu0 %v4955_v0 }
0x14a2   :  { %4390 = vmatpush3.msra.mxu0 %v6307_v10 }
0x14a3   :  { %4391 = vmatprep.subr.mxu0 %v4955_v0 }
0x14a4   :  { %4392 = vmatpush3.msra.mxu0 %v6316_v28 }
0x14a5   :  { %4393 = vmatprep.subr.mxu0 %v4955_v0 }
0x14a6   :  { %4394 = vmatpush3.msra.mxu0 %v6320_v52 }
0x14a7   :  { %4395 = vmatprep.subr.mxu0 %v4955_v0 }
0x14a8   :  { %4396 = vmatpush3.msra.mxu0 %v6324_v12 }
0x14a9   :  { %4397 = vmatprep.subr.mxu0 %v4955_v0 }
0x14aa   :  { %4398 = vmatpush3.msra.mxu0 %v6328_v13 }
0x14ab   :  { %4399 = vmatprep.subr.mxu0 %v4955_v0 }
0x14ac   :  { %4400 = vmatpush3.msra.mxu0 %v6332_v14 }
0x14ad   :  { %4401 = vmatprep.subr.mxu0 %v4955_v0 }
0x14ae   :  { %4402 = vmatpush3.msra.mxu0 %v6336_v15 }
0x14af   :  { %4403 = vmatprep.subr.mxu0 %v4955_v0 }
0x14b0   :  { %4404 = vmatpush3.msra.mxu0 %v6340_v16 }
0x14b1   :  { %4405 = vmatprep.subr.mxu0 %v4955_v0 }
0x14b2   :  { %4406 = vmatpush3.msra.mxu0 %v6344_v17 }
0x14b3   :  { %4408 = vmatmul.mubr.msk.f32.vlgmr.msra.gmra.mxu0 %vm89_vm2, %v6124_v62  ;;  %4445 = vmatprep.subr.mxu0 %v4955_v0 }
0x14b4   :  { %4446 = vmatpush3.msra.mxu0 %v6277_v42  ;;  %4477 = vmatprep.mubr.msk.f32.mxu0 %vm4956_vm0, %v4955_v0 }
0x14b5   :  { %4447 = vmatprep.subr.mxu0 %v4955_v0 }
0x14b6   :  { %4448 = vmatpush3.msra.mxu0 %v6281_v38 }
0x14b7   :  { %4449 = vmatprep.subr.mxu0 %v4955_v0 }
0x14b8   :  { %4450 = vmatpush3.msra.mxu0 %v6287_v7 }
0x14b9   :  { %4451 = vmatprep.subr.mxu0 %v4955_v0 }
0x14ba   :  { %4452 = vmatpush3.msra.mxu0 %v6291_v46 }
0x14bb   :  { %4453 = vmatprep.subr.mxu0 %v4955_v0 }
0x14bc   :  { %4454 = vmatpush3.msra.mxu0 %v6295_v48 }
0x14bd   :  { %4455 = vmatprep.subr.mxu0 %v4955_v0 }
0x14be   :  { %4456 = vmatpush3.msra.mxu0 %v6299_v3 }
0x14bf   :  { %4457 = vmatprep.subr.mxu0 %v4955_v0 }
0x14c0   :  { %4458 = vmatpush3.msra.mxu0 %v6303_v5 }
0x14c1   :  { %4459 = vmatprep.subr.mxu0 %v4955_v0 }
0x14c2   :  { %4460 = vmatpush3.msra.mxu0 %v6307_v10 }
0x14c3   :  { %4461 = vmatprep.subr.mxu0 %v4955_v0 }
0x14c4   :  { %4462 = vmatpush3.msra.mxu0 %v6316_v28 }
0x14c5   :  { %4463 = vmatprep.subr.mxu0 %v4955_v0 }
0x14c6   :  { %4464 = vmatpush3.msra.mxu0 %v6320_v52 }
0x14c7   :  { %4465 = vmatprep.subr.mxu0 %v4955_v0 }
0x14c8   :  { %4466 = vmatpush3.msra.mxu0 %v6324_v12 }
0x14c9   :  { %4467 = vmatprep.subr.mxu0 %v4955_v0 }
0x14ca   :  { %4468 = vmatpush3.msra.mxu0 %v6328_v13 }
0x14cb   :  { %4469 = vmatprep.subr.mxu0 %v4955_v0 }
0x14cc   :  { %4470 = vmatpush3.msra.mxu0 %v6332_v14 }
0x14cd   :  { %4471 = vmatprep.subr.mxu0 %v4955_v0 }
0x14ce   :  { %4472 = vmatpush3.msra.mxu0 %v6336_v15 }
0x14cf   :  { %4473 = vmatprep.subr.mxu0 %v4955_v0 }
0x14d0   :  { %4474 = vmatpush3.msra.mxu0 %v6340_v16 }
0x14d1   :  { %4475 = vmatprep.subr.mxu0 %v4955_v0 }
0x14d2   :  { %4476 = vmatpush3.msra.mxu0 %v6344_v17 }
0x14d3   :  { %4478 = vmatmul.mubr.msk.f32.vlgmr.msra.gmra.mxu0 %vm89_vm2, %v6171_v57  ;;  %4515 = vmatprep.subr.mxu0 %v4955_v0 }
0x14d4   :  { %4516 = vmatpush3.msra.mxu0 %v6277_v42  ;;  %4547 = vmatprep.mubr.msk.f32.mxu0 %vm4956_vm0, %v4955_v0 }
0x14d5   :  { %4517 = vmatprep.subr.mxu0 %v4955_v0 }
0x14d6   :  { %4518 = vmatpush3.msra.mxu0 %v6281_v38 }
0x14d7   :  { %4519 = vmatprep.subr.mxu0 %v4955_v0 }
0x14d8   :  { %4520 = vmatpush3.msra.mxu0 %v6287_v7 }
0x14d9   :  { %4521 = vmatprep.subr.mxu0 %v4955_v0 }
0x14da   :  { %4522 = vmatpush3.msra.mxu0 %v6291_v46 }
0x14db   :  { %4523 = vmatprep.subr.mxu0 %v4955_v0 }
0x14dc   :  { %4524 = vmatpush3.msra.mxu0 %v6295_v48 }
0x14dd   :  { %4525 = vmatprep.subr.mxu0 %v4955_v0 }
0x14de   :  { %4526 = vmatpush3.msra.mxu0 %v6299_v3 }
0x14df   :  { %4527 = vmatprep.subr.mxu0 %v4955_v0 }
0x14e0   :  { %4528 = vmatpush3.msra.mxu0 %v6303_v5 }
0x14e1   :  { %4529 = vmatprep.subr.mxu0 %v4955_v0 }
0x14e2   :  { %4530 = vmatpush3.msra.mxu0 %v6307_v10 }
0x14e3   :  { %4531 = vmatprep.subr.mxu0 %v4955_v0 }
0x14e4   :  { %4532 = vmatpush3.msra.mxu0 %v6316_v28 }
0x14e5   :  { %4533 = vmatprep.subr.mxu0 %v4955_v0 }
0x14e6   :  { %4534 = vmatpush3.msra.mxu0 %v6320_v52 }
0x14e7   :  { %4535 = vmatprep.subr.mxu0 %v4955_v0 }
0x14e8   :  { %4536 = vmatpush3.msra.mxu0 %v6324_v12 }
0x14e9   :  { %4537 = vmatprep.subr.mxu0 %v4955_v0 }
0x14ea   :  { %4538 = vmatpush3.msra.mxu0 %v6328_v13 }
0x14eb   :  { %4539 = vmatprep.subr.mxu0 %v4955_v0 }
0x14ec   :  { %4540 = vmatpush3.msra.mxu0 %v6332_v14 }
0x14ed   :  { %4541 = vmatprep.subr.mxu0 %v4955_v0 }
0x14ee   :  { %4542 = vmatpush3.msra.mxu0 %v6336_v15 }
0x14ef   :  { %4543 = vmatprep.subr.mxu0 %v4955_v0 }
0x14f0   :  { %4544 = vmatpush3.msra.mxu0 %v6340_v16 }
0x14f1   :  { %4545 = vmatprep.subr.mxu0 %v4955_v0 }
0x14f2   :  { %4546 = vmatpush3.msra.mxu0 %v6344_v17 }
0x14f3   :  { %4548 = vmatmul.mubr.msk.f32.vlgmr.msra.gmra.mxu0 %vm89_vm2, %v6226_v45  ;;  %4585 = vmatprep.subr.mxu0 %v4955_v0  ;;  %v1582_v20 = vpop.f32.mrf.mxu0 }
0x14f4   :  { %4586 = vmatpush3.msra.mxu0 %v6277_v42  ;;  %4617 = vmatprep.mubr.msk.f32.mxu0 %vm4956_vm0, %v4955_v0  ;;  %v1583_v62 = vadd.f32 %v4862_v31, %v1582_v20 }
0x14f5   :  { %4587 = vmatprep.subr.mxu0 %v4955_v0  ;;  %v4129_v44 = vpop.f32.mrf.mxu0 }
0x14f6   :  { %4588 = vmatpush3.msra.mxu0 %v6281_v38 }
0x14f7   :  { %4589 = vmatprep.subr.mxu0 %v4955_v0 }
0x14f8   :  { %4590 = vmatpush3.msra.mxu0 %v6287_v7 }
0x14f9   :  { %4591 = vmatprep.subr.mxu0 %v4955_v0 }
0x14fa   :  { %4592 = vmatpush3.msra.mxu0 %v6291_v46 }
0x14fb   :  { %4593 = vmatprep.subr.mxu0 %v4955_v0 }
0x14fc   :  { %4594 = vmatpush3.msra.mxu0 %v6295_v48 }
0x14fd   :  { %4595 = vmatprep.subr.mxu0 %v4955_v0 }
0x14fe   :  { %4596 = vmatpush3.msra.mxu0 %v6299_v3 }
0x14ff   :  { %4597 = vmatprep.subr.mxu0 %v4955_v0 }
0x1500   :  { %4598 = vmatpush3.msra.mxu0 %v6303_v5 }
0x1501   :  { %4599 = vmatprep.subr.mxu0 %v4955_v0  ;;  %v2833_v57 = vpop.f32.mrf.mxu1 }
0x1502   :  { %4600 = vmatpush3.msra.mxu0 %v6307_v10  ;;  %v2837_v18 = vadd.f32 %v2833_v57, %v1583_v62 }
0x1503   :  { %4601 = vmatprep.subr.mxu0 %v4955_v0  ;;  %v4654_v19 = vpop.f32.mrf.mxu1 }
0x1504   :  { %v2997_v27 = vmul.f32 -1.442695, %v2837_v18  ;;  %4821 = vtanh.f32 %v2837_v18  ;;  %4602 = vmatpush3.msra.mxu0 %v6316_v28 }
0x1505   :  { %4603 = vmatprep.subr.mxu0 %v4955_v0 }
0x1506   :  { %4823 = vpow2.f32 %v2997_v27  ;;  %4604 = vmatpush3.msra.mxu0 %v6320_v52 }
0x1507   :  { %4605 = vmatprep.subr.mxu0 %v4955_v0 }
0x1508   :  { %4606 = vmatpush3.msra.mxu0 %v6324_v12 }
0x1509   :  { %4607 = vmatprep.subr.mxu0 %v4955_v0 }
0x150a   :  { %4608 = vmatpush3.msra.mxu0 %v6328_v13 }
0x150b   :  { %4609 = vmatprep.subr.mxu0 %v4955_v0 }
0x150c   :  { %4610 = vmatpush3.msra.mxu0 %v6332_v14 }
0x150d   :  { %4611 = vmatprep.subr.mxu0 %v4955_v0 }
0x150e   :  { %4612 = vmatpush3.msra.mxu0 %v6336_v15 }
0x150f   :  { %4613 = vmatprep.subr.mxu0 %v4955_v0 }
0x1510   :  { %4614 = vmatpush3.msra.mxu0 %v6340_v16 }
0x1511   :  { %v4822_v25 = vpop.eup %4821  ;;  %4615 = vmatprep.subr.mxu0 %v4955_v0 }
0x1512   :  { %4616 = vmatpush3.msra.mxu0 %v6344_v17  ;;  %2847 = vrot.lane.b32.xlu0 %v4822_v25, %s4959_s27 }
0x1513   :  { %v4824_v51 = vpop.eup %4823  ;;  %4618 = vmatmul.mubr.msk.f32.vlgmr.msra.gmra.mxu0 %vm89_vm2, %v6309_v11  ;;  %v1783_v26 = vpop.f32.mrf.mxu0  ;;  %4655 = vmatprep.subr.mxu0 %v4955_v0 }
0x1514   :  { %v2841_v21 = vadd.f32 1.0, %v4824_v51  ;;  %v1784_v22 = vadd.f32 %v6576_v50, %v1783_v26  ;;  %4656 = vmatpush3.msra.mxu0 %v6277_v42  ;;  %4687 = vmatprep.mubr.msk.f32.mxu0 %vm4956_vm0, %v4955_v0 }
0x1515   :  { %v4199_v23 = vpop.f32.mrf.mxu0  ;;  %4657 = vmatprep.subr.mxu0 %v4955_v0 }
0x1516   :  { %4825 = vrcp.f32 %v2841_v21  ;;  %1787 = vst [vmem:[%s6663_s9] sm:$0xff] %v1784_v22  ;;  %4658 = vmatpush3.msra.mxu0 %v6281_v38 }
0x1517   :  { %4659 = vmatprep.subr.mxu0 %v4955_v0 }
0x1518   :  { %4660 = vmatpush3.msra.mxu0 %v6287_v7 }
0x1519   :  { %4661 = vmatprep.subr.mxu0 %v4955_v0 }
0x151a   :  { %4662 = vmatpush3.msra.mxu0 %v6291_v46 }
0x151b   :  { %4663 = vmatprep.subr.mxu0 %v4955_v0 }
0x151c   :  { %4664 = vmatpush3.msra.mxu0 %v6295_v48 }
0x151d   :  { %4665 = vmatprep.subr.mxu0 %v4955_v0 }
0x151e   :  { %4666 = vmatpush3.msra.mxu0 %v6299_v3 }
0x151f   :  { %4667 = vmatprep.subr.mxu0 %v4955_v0 }
0x1520   :  { %4668 = vmatpush3.msra.mxu0 %v6303_v5 }
0x1521   :  { %4669 = vmatprep.subr.mxu0 %v4955_v0 }
0x1522   :  { %4670 = vmatpush3.msra.mxu0 %v6307_v10 }
0x1523   :  { %v4826_v2 = vpop.eup %4825  ;;  %4671 = vmatprep.subr.mxu0 %v4955_v0 }
0x1524   :  { %2845 = vrot.lane.b32.xlu1 %v4826_v2, %s4958_s24  ;;  %4672 = vmatpush3.msra.mxu0 %v6316_v28 }
0x1525   :  { %4673 = vmatprep.subr.mxu0 %v4955_v0 }
0x1526   :  { %4674 = vmatpush3.msra.mxu0 %v6320_v52 }
0x1527   :  { %4675 = vmatprep.subr.mxu0 %v4955_v0 }
0x1528   :  { %2849 = vrot.lane.b32.xlu1 %v4826_v2, %s4957_s23  ;;  %4676 = vmatpush3.msra.mxu0 %v6324_v12 }
0x1529   :  { %4677 = vmatprep.subr.mxu0 %v4955_v0 }
0x152a   :  { %4678 = vmatpush3.msra.mxu0 %v6328_v13 }
0x152b   :  { %4679 = vmatprep.subr.mxu0 %v4955_v0 }
0x152c   :  { %4680 = vmatpush3.msra.mxu0 %v6332_v14 }
0x152d   :  { %4681 = vmatprep.subr.mxu0 %v4955_v0 }
0x152e   :  { %4682 = vmatpush3.msra.mxu0 %v6336_v15 }
0x152f   :  { %4683 = vmatprep.subr.mxu0 %v4955_v0 }
0x1530   :  { %4684 = vmatpush3.msra.mxu0 %v6340_v16 }
0x1531   :  { %4685 = vmatprep.subr.mxu0 %v4955_v0 }
0x1532   :  { %4686 = vmatpush3.msra.mxu0 %v6344_v17 }
0x1533   :  { %v1945_v55 = vpop.f32.mrf.mxu0 }
0x1534   :  { %v1946_v24 = vadd.f32 %v6576_v50, %v1945_v55 }
0x1535   :  { %v4269_v29 = vpop.f32.mrf.mxu0 }
0x1536   :  { %2975 = vst [vmem:[%s6663_s9 + $0x8] sm:$0xff] %v1946_v24 }
0x1553   :  { %v2108_v35 = vpop.f32.mrf.mxu0 }
0x1554   :  { %v2109_v45 = vadd.f32 %v6576_v50, %v2108_v35 }
0x1555   :  { %v4339_v47 = vpop.f32.mrf.mxu0 }
0x1556   :  { %2979 = vst [vmem:[%s6663_s9 + $0x10] sm:$0xff] %v2109_v45 }
0x1573   :  { %v2271_v49 = vpop.f32.mrf.mxu0 }
0x1574   :  { %v2272_v0 = vadd.f32 %v6576_v50, %v2271_v49 }
0x1575   :  { %v4409_v53 = vpop.f32.mrf.mxu0 }
0x1576   :  { %2983 = vst [vmem:[%s6663_s9 + $0x18] sm:$0xff] %v2272_v0 }
0x1584   :  { %v2848_v58 = vpop.permute.xlu0 %2847 }
0x1585   :  { %v2852_v4 = vmul.f32 %v4826_v2, %v2848_v58 }
0x1593   :  { %v2434_v56 = vpop.f32.mrf.mxu0 }
0x1594   :  { %v2435_v60 = vadd.f32 %v6576_v50, %v2434_v56 }
0x1595   :  { %v4479_v59 = vpop.f32.mrf.mxu0 }
0x1596   :  { %2987 = vst [vmem:[%s6663_s9 + $0x20] sm:$0xff] %v2435_v60  ;;  %v2846_v63 = vpop.permute.xlu1 %2845 }
0x1597   :  { %v2851_v30 = vmul.f32 %v2846_v63, %v6274_v36 }
0x1599   :  { %v2853_v32 = vadd.f32 %v2852_v4, %v2851_v30 }
0x159a   :  { %v2850_v9 = vpop.permute.xlu1 %2849 }
0x159b   :  { %4827 = vtanh.f32 %v2853_v32 }
0x15a8   :  { %v4828_v33 = vpop.eup %4827 }
0x15a9   :  { %v2855_v34 = vmul.f32 %v4828_v33, %v2850_v9 }
0x15ab   :  { %4688 = vmatmul.mubr.msk.f32.vlgmr.msra.gmra.mxu0 %vm89_vm2, %v2855_v34 }
0x15b3   :  { %v2597_v6 = vpop.f32.mrf.mxu0 }
0x15b4   :  { %v2598_v40 = vadd.f32 %v6576_v50, %v2597_v6 }
0x15b5   :  { %v4549_v43 = vpop.f32.mrf.mxu0 }
0x15b6   :  { %2991 = vst [vmem:[%s6663_s9 + $0x28] sm:$0xff] %v2598_v40 }
0x15d3   :  { %v2760_v1 = vpop.f32.mrf.mxu0 }
0x15d4   :  { %v2761_v37 = vadd.f32 %v6576_v50, %v2760_v1 }
0x15d5   :  { %v4619_v36 = vpop.f32.mrf.mxu0 }
0x15d6   :  { %2995 = vst [vmem:[%s6663_s9 + $0x30] sm:$0xff] %v2761_v37 }
0x166b   :  { %v2923_v39 = vpop.f32.mrf.mxu0 }
0x166c   :  { %v2924_v61 = vadd.f32 %v6576_v50, %v2923_v39 }
0x166d   :  { %v4689_v41 = vpop.f32.mrf.mxu0 }
0x166e   :  { %2999 = vst [vmem:[%s6663_s9 + $0x38] sm:$0xff] %v2924_v61 }
0x166f   :  { %2933 = vsyncpa [#allocation4], 1 }
0x1670   :  { %2934 = vsyncpa [#allocation6], 1 }
0x1671   :  { %2935 = vsyncpa [#allocation9], 1 }

</bundles_post_ra>
